<compile_context>
chip_gen: v5e
topology: v5e:2x2
jax: 0.10.0
libtpu: 0.0.40
codegen_flags: <defaults>
</compile_context>

<pallas_src>
import functools

import jax
import jax.numpy as jnp
from jax.experimental import pallas as pl
from jax.experimental.pallas import tpu as pltpu


def _silu(x):
    return x * jax.nn.sigmoid(x)


def _nbody_kernel(xv_ref, wproj_ref, whh_ref, wn1_ref, bvec_ref, wglob_ref, vglob_ref,
                  out_ref, *, n_layers, n_heads):
    xv = xv_ref[...].astype(jnp.float32)          # (Bt, N, 6) = [x | vel]
    x = xv[..., 0:3]                              # (Bt, N, 3)  equivariant positions
    vel = xv[..., 3:6]                            # (Bt, N, 3)  equivariant velocities
    bt, n, _ = x.shape
    hdim = vglob_ref.shape[-1]
    dh = hdim // n_heads
    inv_sqrt_dh = 1.0 / (dh ** 0.5)
    inv_nm1 = 1.0 / max(n - 1, 1)                 # guard n == 1
    rows = bt * n

    # ---- packed parameters ---------------------------------------------------------
    vglob = vglob_ref[...]                        # (6, H) f32
    wv1, bv1, bv2 = vglob[0:1], vglob[1:2], vglob[2:3]
    bs1, ws2 = vglob[3:4], vglob[4:5]
    bs2 = vglob[5:6, 0:1]                         # (1, 1)
    wglob = wglob_ref[...]                        # (2, H, H) f32 = [wv2 | ws1]
    wv2, ws1 = wglob[0], wglob[1]

    w_proj = wproj_ref[...].astype(jnp.bfloat16)  # (L, H, 4H)
    w_hh = whh_ref[...].astype(jnp.bfloat16)      # (L, 3, H, H) = [we2 | wc1 | wn2]
    w_n1 = wn1_ref[...].astype(jnp.bfloat16)      # (L, 2H, H)
    b_vec = bvec_ref[...]                         # (L, 12, H) f32 bias / vector slab

    # ---- vel_norm MLP: Linear(1,H) -> SiLU -> Linear(H,H) ---------------------------
    vnorm = jnp.sqrt(jnp.sum(vel * vel, axis=-1, keepdims=True)).reshape(rows, 1)
    h = jnp.dot(_silu(vnorm * wv1 + bv1), wv2,
                preferred_element_type=jnp.float32) + bv2               # (rows, H) f32

    # self-edge mask (i == j), hoisted out of the layer loop
    row_i = jax.lax.broadcasted_iota(jnp.int32, (n, n), 0)
    col_j = jax.lax.broadcasted_iota(jnp.int32, (n, n), 1)
    self_mask = (row_i == col_j)[None, :, :]                            # (1, N, N)

    # ---- EnTransformer layers (unrolled; fine for small n_layers) -------------------
    # TODO(synk): for large n_layers/H, move this loop onto an inner "arbitrary" grid
    # axis with h/x carried in VMEM scratch so only one layer's weights are resident.
    for l in range(n_layers):
        bvec = b_vec[l]                           # (12, H)
        we_d, be2 = bvec[4:5], bvec[5:6]
        bc1, wc2 = bvec[6:7], bvec[7:8]
        bn1, bn2 = bvec[8:9], bvec[9:10]
        bc2 = bvec[10:11, 0:1]

        # squared pairwise distances without the (N, N, 3) diff tensor (clamped >= 0)
        xsq = jnp.sum(x * x, axis=-1)                                   # (Bt, N)
        gram = jnp.einsum('bid,bjd->bij', x, x,
                          preferred_element_type=jnp.float32)           # (Bt, N, N)
        dist2 = jnp.maximum(xsq[:, :, None] + xsq[:, None, :] - 2.0 * gram, 0.0)

        # fused projections: [edge_src | edge_dst | q | k]
        proj = jnp.dot(h.astype(jnp.bfloat16), w_proj[l],
                       preferred_element_type=jnp.float32)              # (rows, 4H)
        a_src = (proj[:, 0 * hdim:1 * hdim] + bvec[0:1]).reshape(bt, n, hdim)
        a_dst = (proj[:, 1 * hdim:2 * hdim] + bvec[1:2]).reshape(bt, n, hdim)
        q = (proj[:, 2 * hdim:3 * hdim] + bvec[2:3]).reshape(bt, n, hdim)
        k = (proj[:, 3 * hdim:4 * hdim] + bvec[3:4]).reshape(bt, n, hdim)

        # edge MLP on [h_i, h_j, dist2]: Linear -> SiLU -> Linear -> SiLU
        pre = (a_src[:, :, None, :] + a_dst[:, None, :, :]
               + dist2[..., None] * we_d[None])                         # (Bt, N, N, H)
        m_in = _silu(pre).astype(jnp.bfloat16).reshape(bt * n * n, hdim)
        m_flat = _silu(jnp.dot(m_in, w_hh[l, 0],
                               preferred_element_type=jnp.float32) + be2)  # (Bt*N*N, H)

        # equivariant coordinate update FIRST (shortens (Bt,N,N,H) live ranges):
        #   x_i += mean_{j != i} (x_i - x_j) * phi_x(m_ij)
        c_pre = _silu(jnp.dot(m_flat.astype(jnp.bfloat16), w_hh[l, 1],
                              preferred_element_type=jnp.float32) + bc1)
        c = jnp.sum(c_pre * wc2, axis=-1, keepdims=True) + bc2          # (Bt*N*N, 1)
        cmat = c.reshape(bt, n, n)
        crow = jnp.sum(cmat, axis=2, keepdims=True)                     # (Bt, N, 1)
        cx = jnp.einsum('bij,bjd->bid', cmat, x,
                        preferred_element_type=jnp.float32)             # (Bt, N, 3)
        x = x + (x * crow - cx) * inv_nm1

        # multi-head attention: per-head scores with the neighbour axis j on lanes
        p_parts = []
        for g in range(n_heads):
            qg = q[:, :, g * dh:(g + 1) * dh]
            kg = k[:, :, g * dh:(g + 1) * dh]
            sg = jnp.einsum('bid,bjd->bij', qg, kg,
                            preferred_element_type=jnp.float32) * inv_sqrt_dh
            sg = jnp.where(self_mask, -1e9, sg)                         # mask i == j
            sg = sg - jnp.max(sg, axis=-1, keepdims=True)               # lane reduce
            eg = jnp.exp(sg)
            pg = eg * (1.0 / jnp.sum(eg, axis=-1, keepdims=True))       # (Bt, N, N)
            p_parts.append(jnp.broadcast_to(pg[..., None], (bt, n, n, dh)))
        p_full = jnp.concatenate(p_parts, axis=-1)                      # (Bt, N, N, H)
        agg = jnp.sum(p_full * m_flat.reshape(bt, n, n, hdim), axis=2)  # (Bt, N, H)

        # residual node update: h += MLP([h, agg])
        cat = jnp.concatenate([h, agg.reshape(rows, hdim)],
                              axis=-1).astype(jnp.bfloat16)             # (rows, 2H)
        n1 = _silu(jnp.dot(cat, w_n1[l], preferred_element_type=jnp.float32) + bn1)
        h = h + jnp.dot(n1.astype(jnp.bfloat16), w_hh[l, 2],
                        preferred_element_type=jnp.float32) + bn2

    # ---- pos_scale MLP: Linear(H,H) -> SiLU -> Linear(H,1) --------------------------
    sp = _silu(jnp.dot(h, ws1, preferred_element_type=jnp.float32) + bs1)
    scale = jnp.sum(sp * ws2, axis=-1, keepdims=True) + bs2             # (rows, 1)

    out_ref[...] = (x + scale.reshape(bt, n, 1) * vel).astype(out_ref.dtype)


def make_params(key, hidden_nf, n_layers):
    """Deterministic synthetic parameters (weights ~ N(0, 1/fan_in), biases = 0),
    packed into the stacked arrays expected by the kernel:
      w_proj (L, H, 4H)    fused [edge_src | edge_dst | q | k] projection
      w_hh   (L, 3, H, H)  [we2 | wc1 | wn2]
      w_n1   (L, 2H, H)    node-MLP first layer (input = concat[h, agg])
      b_vec  (L, 12, H)    rows 0-3: b_proj chunks, 4: we_d, 5: be2, 6: bc1,
                           7: wc2, 8: bn1, 9: bn2, 10[,0]: bc2, 11: pad
      w_glob (2, H, H)     [wv2 | ws1]
      v_glob (6, H)        rows 0: wv1, 1: bv1, 2: bv2, 3: bs1, 4: ws2, 5[,0]: bs2
    """
    H, L = hidden_nf, n_layers
    ks = iter(jax.random.split(key, 16))

    def w(shape, fan_in):
        return jax.random.normal(next(ks), shape, jnp.float32) * (fan_in ** -0.5)

    w_proj = w((L, H, 4 * H), H)
    w_hh = jnp.stack([w((L, H, H), H), w((L, H, H), H), w((L, H, H), H)], axis=1)
    w_n1 = w((L, 2 * H, H), 2 * H)
    b_vec = jnp.zeros((L, 12, H), jnp.float32)
    b_vec = b_vec.at[:, 4, :].set(w((L, H), 1))       # we_d
    b_vec = b_vec.at[:, 7, :].set(w((L, H), H))       # wc2
    w_glob = jnp.stack([w((H, H), H), w((H, H), H)], axis=0)
    v_glob = jnp.zeros((6, H), jnp.float32)
    v_glob = v_glob.at[0, :].set(w((H,), 1))          # wv1
    v_glob = v_glob.at[4, :].set(w((H,), H))          # ws2
    return [w_proj, w_hh, w_n1, b_vec, w_glob, v_glob]


def _select_batch_block(b, n, h, params, budget_bytes):
    """Largest divisor Bt of B that (a) keeps >= 2 grid steps when B >= 2 (so v7x can use
    both TensorCores on the 'parallel' axis) and (b) keeps the estimated per-step VMEM
    footprint under budget_bytes (edge tensors dominate: O(Bt*N^2*H) f32)."""
    param_bytes = 2 * sum(int(p.size) * p.dtype.itemsize for p in params)  # double-buffered

    def fits(bt):
        edge = bt * n * n * h * 4          # one (Bt, N, N, H) f32 tensor
        node = bt * n * h * 4 * 10         # h / proj / q / k / agg / ... node tensors
        io = 2 * 2 * bt * n * 8 * 4        # double-buffered in/out tiles
        return 4 * edge + node + io + param_bytes <= budget_bytes

    cap = max(b // 2, 1) if b >= 2 else 1
    bt = 1
    for cand in range(1, cap + 1):
        if b % cand == 0 and fits(cand):
            bt = cand
    return bt


def nbody_transformer_forward(charge, x, vel, params, *, n_layers, n_heads,
                              vmem_budget_bytes=36 * 1024 * 1024):
    if charge.ndim != 2:
        raise ValueError(
            f"Expected charge to have 2 dimensions [batch_size, n_nodes], got shape {charge.shape}")
    B, N = charge.shape
    H = params[-1].shape[-1]
    if H % n_heads:
        raise ValueError(f"hidden_nf={H} must be divisible by n_heads={n_heads}")
    Bt = _select_batch_block(B, N, H, params, vmem_budget_bytes)

    xv = jnp.concatenate([x, vel], axis=-1)                             # (B, N, 6)

    kernel = functools.partial(_nbody_kernel, n_layers=n_layers, n_heads=n_heads)
    xv_spec = pl.BlockSpec((Bt, N, 6), lambda b: (b, 0, 0))
    # Grid-invariant parameter blocks (full arrays, block index fixed at 0); Pallas skips
    # re-DMA for unchanged block indices so they are fetched once.
    # TODO(synk): mark these single-buffered (pipeline_mode=pl.Buffered(1)) once that path
    # is validated on all target generations to reclaim the second buffer's VMEM.
    param_specs = [
        pl.BlockSpec(p.shape, (lambda nd: (lambda b: (0,) * nd))(p.ndim))
        for p in params
    ]

    grid_spec = pltpu.PrefetchScalarGridSpec(
        num_scalar_prefetch=0,
        grid=(B // Bt,),
        in_specs=[xv_spec] + param_specs,
        out_specs=pl.BlockSpec((Bt, N, 3), lambda b: (b, 0, 0)),
    )

    return pl.pallas_call(
        kernel,
        out_shape=jax.ShapeDtypeStruct((B, N, 3), jnp.float32),
        grid_spec=grid_spec,
        compiler_params=pltpu.CompilerParams(
            dimension_semantics=("parallel",),
            # 48 MiB: above the 32 MiB scoped default, below v7x's 64 MiB physical VMEM.
            vmem_limit_bytes=48 * 1024 * 1024),
    )(xv, *params)


if __name__ == "__main__":
    # small shapes consistent with the module's forward
    B, N = 2, 8
    HIDDEN, LAYERS, HEADS = 32, 2, 4

    key = jax.random.PRNGKey(0)
    kc, kx, kv, kp = jax.random.split(key, 4)
    charge = jax.random.randint(kc, (B, N), 0, 3).astype(jnp.float32)   # [B, N] invariant
    x = jax.random.normal(kx, (B, N, 3), jnp.float32)                   # [B, N, 3] equivariant
    vel = jax.random.normal(kv, (B, N, 3), jnp.float32)                 # [B, N, 3] equivariant
    params = make_params(kp, HIDDEN, LAYERS)

    pred_pos = nbody_transformer_forward(charge, x, vel, params,
                                         n_layers=LAYERS, n_heads=HEADS)
    jax.block_until_ready(pred_pos)
    assert pred_pos.shape == (B, N, 3)
    assert bool(jnp.all(jnp.isfinite(pred_pos)))
    print("KERNEL_OK")
</pallas_src>

<mosaic_0001>
module attributes {stable_mosaic.version = 11 : i64} {
  func.func @_nbody_kernel(%arg0: i32, %arg1: memref<1x8x6xf32, #tpu.memory_space<vmem>>, %arg2: memref<2x32x128xf32, #tpu.memory_space<vmem>>, %arg3: memref<2x3x32x32xf32, #tpu.memory_space<vmem>>, %arg4: memref<2x64x32xf32, #tpu.memory_space<vmem>>, %arg5: memref<2x12x32xf32, #tpu.memory_space<vmem>>, %arg6: memref<2x32x32xf32, #tpu.memory_space<vmem>>, %arg7: memref<6x32xf32, #tpu.memory_space<vmem>>, %arg8: memref<1x8x3xf32, #tpu.memory_space<vmem>>) attributes {dimension_semantics = [#tpu.dimension_semantics<parallel>], iteration_bounds = array<i64: 2>, scalar_prefetch = 0 : i64, scratch_operands = 0 : i64, tpu.core_type = #tpu.core_type<tc>, window_params = [{transform_indices = @transform_0, window_bounds = array<i64: 1, 8, 6>}, {pipeline_mode = #tpu.pipeline_mode<synchronous>, transform_indices = @transform_1, window_bounds = array<i64: 2, 32, 128>}, {pipeline_mode = #tpu.pipeline_mode<synchronous>, transform_indices = @transform_2, window_bounds = array<i64: 2, 3, 32, 32>}, {pipeline_mode = #tpu.pipeline_mode<synchronous>, transform_indices = @transform_3, window_bounds = array<i64: 2, 64, 32>}, {pipeline_mode = #tpu.pipeline_mode<synchronous>, transform_indices = @transform_4, window_bounds = array<i64: 2, 12, 32>}, {pipeline_mode = #tpu.pipeline_mode<synchronous>, transform_indices = @transform_5, window_bounds = array<i64: 2, 32, 32>}, {pipeline_mode = #tpu.pipeline_mode<synchronous>, transform_indices = @transform_6, window_bounds = array<i64: 6, 32>}, {transform_indices = @transform_7, window_bounds = array<i64: 1, 8, 3>}]} {
    %c0 = arith.constant 0 : index
    %c0_0 = arith.constant 0 : index
    %c0_1 = arith.constant 0 : index
    %0 = vector.load %arg1[%c0, %c0_0, %c0_1] : memref<1x8x6xf32, #tpu.memory_space<vmem>>, vector<1x8x6xf32>
    %1 = vector.extract_strided_slice %0 {offsets = [0, 0, 0], sizes = [1, 8, 3], strides = [1, 1, 1]} : vector<1x8x6xf32> to vector<1x8x3xf32>
    %2 = vector.extract_strided_slice %0 {offsets = [0, 0, 3], sizes = [1, 8, 3], strides = [1, 1, 1]} : vector<1x8x6xf32> to vector<1x8x3xf32>
    %c0_2 = arith.constant 0 : index
    %c0_3 = arith.constant 0 : index
    %3 = vector.load %arg7[%c0_2, %c0_3] : memref<6x32xf32, #tpu.memory_space<vmem>>, vector<6x32xf32>
    %4 = vector.extract_strided_slice %3 {offsets = [0, 0], sizes = [1, 32], strides = [1, 1]} : vector<6x32xf32> to vector<1x32xf32>
    %5 = vector.extract_strided_slice %3 {offsets = [1, 0], sizes = [1, 32], strides = [1, 1]} : vector<6x32xf32> to vector<1x32xf32>
    %6 = vector.extract_strided_slice %3 {offsets = [2, 0], sizes = [1, 32], strides = [1, 1]} : vector<6x32xf32> to vector<1x32xf32>
    %7 = vector.extract_strided_slice %3 {offsets = [3, 0], sizes = [1, 32], strides = [1, 1]} : vector<6x32xf32> to vector<1x32xf32>
    %8 = vector.extract_strided_slice %3 {offsets = [4, 0], sizes = [1, 32], strides = [1, 1]} : vector<6x32xf32> to vector<1x32xf32>
    %9 = vector.extract_strided_slice %3 {offsets = [5, 0], sizes = [1, 1], strides = [1, 1]} : vector<6x32xf32> to vector<1x1xf32>
    %c0_4 = arith.constant 0 : index
    %c0_5 = arith.constant 0 : index
    %c0_6 = arith.constant 0 : index
    %10 = vector.load %arg6[%c0_4, %c0_5, %c0_6] : memref<2x32x32xf32, #tpu.memory_space<vmem>>, vector<2x32x32xf32>
    %11 = vector.extract_strided_slice %10 {offsets = [0, 0, 0], sizes = [1, 32, 32], strides = [1, 1, 1]} : vector<2x32x32xf32> to vector<1x32x32xf32>
    %12 = vector.shape_cast %11 : vector<1x32x32xf32> to vector<32x32xf32>
    %13 = vector.extract_strided_slice %10 {offsets = [1, 0, 0], sizes = [1, 32, 32], strides = [1, 1, 1]} : vector<2x32x32xf32> to vector<1x32x32xf32>
    %14 = vector.shape_cast %13 : vector<1x32x32xf32> to vector<32x32xf32>
    %c0_7 = arith.constant 0 : index
    %c0_8 = arith.constant 0 : index
    %c0_9 = arith.constant 0 : index
    %15 = vector.load %arg2[%c0_7, %c0_8, %c0_9] : memref<2x32x128xf32, #tpu.memory_space<vmem>>, vector<2x32x128xf32>
    %16 = arith.truncf %15 : vector<2x32x128xf32> to vector<2x32x128xbf16>
    %c0_10 = arith.constant 0 : index
    %c0_11 = arith.constant 0 : index
    %c0_12 = arith.constant 0 : index
    %c0_13 = arith.constant 0 : index
    %17 = vector.load %arg3[%c0_10, %c0_11, %c0_12, %c0_13] : memref<2x3x32x32xf32, #tpu.memory_space<vmem>>, vector<2x3x32x32xf32>
    %18 = arith.truncf %17 : vector<2x3x32x32xf32> to vector<2x3x32x32xbf16>
    %c0_14 = arith.constant 0 : index
    %c0_15 = arith.constant 0 : index
    %c0_16 = arith.constant 0 : index
    %19 = vector.load %arg4[%c0_14, %c0_15, %c0_16] : memref<2x64x32xf32, #tpu.memory_space<vmem>>, vector<2x64x32xf32>
    %20 = arith.truncf %19 : vector<2x64x32xf32> to vector<2x64x32xbf16>
    %c0_17 = arith.constant 0 : index
    %c0_18 = arith.constant 0 : index
    %c0_19 = arith.constant 0 : index
    %21 = vector.load %arg5[%c0_17, %c0_18, %c0_19] : memref<2x12x32xf32, #tpu.memory_space<vmem>>, vector<2x12x32xf32>
    %22 = arith.mulf %2, %2 : vector<1x8x3xf32>
    %cst = arith.constant dense<0.000000e+00> : vector<1x8xf32>
    %23 = vector.multi_reduction <add>, %22, %cst [2] : vector<1x8x3xf32> to vector<1x8xf32>
    %24 = vector.shape_cast %23 : vector<1x8xf32> to vector<1x8x1xf32>
    %25 = math.sqrt %24 : vector<1x8x1xf32>
    %26 = vector.shape_cast %25 : vector<1x8x1xf32> to vector<8x1xf32>
    %27 = vector.broadcast %26 : vector<8x1xf32> to vector<8x32xf32>
    %28 = vector.broadcast %4 : vector<1x32xf32> to vector<8x32xf32>
    %29 = arith.mulf %27, %28 : vector<8x32xf32>
    %30 = vector.broadcast %5 : vector<1x32xf32> to vector<8x32xf32>
    %31 = arith.addf %29, %30 : vector<8x32xf32>
    %32 = arith.negf %31 : vector<8x32xf32>
    %33 = math.exp %32 : vector<8x32xf32>
    %cst_20 = arith.constant 1.000000e+00 : f32
    %34 = vector.broadcast %cst_20 : f32 to vector<8x32xf32>
    %35 = arith.addf %34, %33 : vector<8x32xf32>
    %36 = arith.divf %34, %35 : vector<8x32xf32>
    %37 = arith.mulf %31, %36 : vector<8x32xf32>
    %cst_21 = arith.constant dense<0.000000e+00> : vector<8x32xf32>
    %38 = tpu.matmul %37, %12, %cst_21 {dimension_numbers = #tpu.dot_dimension_numbers<[1], [0], [0], [1], [0, 0, 1, 1], [], []>} : vector<8x32xf32>, vector<32x32xf32>, vector<8x32xf32> -> vector<8x32xf32>
    %39 = vector.broadcast %6 : vector<1x32xf32> to vector<8x32xf32>
    %40 = arith.addf %38, %39 : vector<8x32xf32>
    %41 = tpu.iota {dimensions = array<i32: 0>} : vector<8x8xi32>
    %42 = tpu.iota {dimensions = array<i32: 1>} : vector<8x8xi32>
    %43 = arith.cmpi eq, %41, %42 : vector<8x8xi32>
    %44 = vector.shape_cast %43 : vector<8x8xi1> to vector<1x8x8xi1>
    %45 = vector.extract_strided_slice %21 {offsets = [0, 0, 0], sizes = [1, 12, 32], strides = [1, 1, 1]} : vector<2x12x32xf32> to vector<1x12x32xf32>
    %46 = vector.shape_cast %45 : vector<1x12x32xf32> to vector<12x32xf32>
    %47 = vector.extract_strided_slice %46 {offsets = [4, 0], sizes = [1, 32], strides = [1, 1]} : vector<12x32xf32> to vector<1x32xf32>
    %48 = vector.extract_strided_slice %46 {offsets = [5, 0], sizes = [1, 32], strides = [1, 1]} : vector<12x32xf32> to vector<1x32xf32>
    %49 = vector.extract_strided_slice %46 {offsets = [6, 0], sizes = [1, 32], strides = [1, 1]} : vector<12x32xf32> to vector<1x32xf32>
    %50 = vector.extract_strided_slice %46 {offsets = [7, 0], sizes = [1, 32], strides = [1, 1]} : vector<12x32xf32> to vector<1x32xf32>
    %51 = vector.extract_strided_slice %46 {offsets = [8, 0], sizes = [1, 32], strides = [1, 1]} : vector<12x32xf32> to vector<1x32xf32>
    %52 = vector.extract_strided_slice %46 {offsets = [9, 0], sizes = [1, 32], strides = [1, 1]} : vector<12x32xf32> to vector<1x32xf32>
    %53 = vector.extract_strided_slice %46 {offsets = [10, 0], sizes = [1, 1], strides = [1, 1]} : vector<12x32xf32> to vector<1x1xf32>
    %54 = arith.mulf %1, %1 : vector<1x8x3xf32>
    %cst_22 = arith.constant dense<0.000000e+00> : vector<1x8xf32>
    %55 = vector.multi_reduction <add>, %54, %cst_22 [2] : vector<1x8x3xf32> to vector<1x8xf32>
    "tpu.trace_start"() <{level = 10 : i32, message = "bid,bjd->bij"}> : () -> ()
    %cst_23 = arith.constant dense<0.000000e+00> : vector<1x8x8xf32>
    %56 = tpu.matmul %1, %1, %cst_23 {dimension_numbers = #tpu.dot_dimension_numbers<[2], [2], [1], [1], [0, 0, 0, 1, 1, 1], [0], [0]>} : vector<1x8x3xf32>, vector<1x8x3xf32>, vector<1x8x8xf32> -> vector<1x8x8xf32>
    "tpu.trace_stop"() : () -> ()
    %57 = vector.shape_cast %55 : vector<1x8xf32> to vector<1x8x1xf32>
    %58 = vector.shape_cast %55 : vector<1x8xf32> to vector<1x1x8xf32>
    %59 = vector.broadcast %57 : vector<1x8x1xf32> to vector<1x8x8xf32>
    %60 = vector.broadcast %58 : vector<1x1x8xf32> to vector<1x8x8xf32>
    %61 = arith.addf %59, %60 : vector<1x8x8xf32>
    %cst_24 = arith.constant 2.000000e+00 : f32
    %62 = vector.broadcast %cst_24 : f32 to vector<1x8x8xf32>
    %63 = arith.mulf %62, %56 : vector<1x8x8xf32>
    %64 = arith.subf %61, %63 : vector<1x8x8xf32>
    %cst_25 = arith.constant 0.000000e+00 : f32
    %65 = vector.broadcast %cst_25 : f32 to vector<1x8x8xf32>
    %66 = arith.maximumf %64, %65 : vector<1x8x8xf32>
    %67 = arith.truncf %40 : vector<8x32xf32> to vector<8x32xbf16>
    %68 = vector.extract_strided_slice %16 {offsets = [0, 0, 0], sizes = [1, 32, 128], strides = [1, 1, 1]} : vector<2x32x128xbf16> to vector<1x32x128xbf16>
    %69 = vector.shape_cast %68 : vector<1x32x128xbf16> to vector<32x128xbf16>
    %cst_26 = arith.constant dense<0.000000e+00> : vector<8x128xf32>
    %70 = tpu.matmul %67, %69, %cst_26 {dimension_numbers = #tpu.dot_dimension_numbers<[1], [0], [0], [1], [0, 0, 1, 1], [], []>} : vector<8x32xbf16>, vector<32x128xbf16>, vector<8x128xf32> -> vector<8x128xf32>
    %71 = vector.extract_strided_slice %70 {offsets = [0, 0], sizes = [8, 32], strides = [1, 1]} : vector<8x128xf32> to vector<8x32xf32>
    %72 = vector.extract_strided_slice %46 {offsets = [0, 0], sizes = [1, 32], strides = [1, 1]} : vector<12x32xf32> to vector<1x32xf32>
    %73 = vector.broadcast %72 : vector<1x32xf32> to vector<8x32xf32>
    %74 = arith.addf %71, %73 : vector<8x32xf32>
    %75 = vector.shape_cast %74 : vector<8x32xf32> to vector<1x8x32xf32>
    %76 = vector.extract_strided_slice %70 {offsets = [0, 32], sizes = [8, 32], strides = [1, 1]} : vector<8x128xf32> to vector<8x32xf32>
    %77 = vector.extract_strided_slice %46 {offsets = [1, 0], sizes = [1, 32], strides = [1, 1]} : vector<12x32xf32> to vector<1x32xf32>
    %78 = vector.broadcast %77 : vector<1x32xf32> to vector<8x32xf32>
    %79 = arith.addf %76, %78 : vector<8x32xf32>
    %80 = vector.shape_cast %79 : vector<8x32xf32> to vector<1x8x32xf32>
    %81 = vector.extract_strided_slice %70 {offsets = [0, 64], sizes = [8, 32], strides = [1, 1]} : vector<8x128xf32> to vector<8x32xf32>
    %82 = vector.extract_strided_slice %46 {offsets = [2, 0], sizes = [1, 32], strides = [1, 1]} : vector<12x32xf32> to vector<1x32xf32>
    %83 = vector.broadcast %82 : vector<1x32xf32> to vector<8x32xf32>
    %84 = arith.addf %81, %83 : vector<8x32xf32>
    %85 = vector.shape_cast %84 : vector<8x32xf32> to vector<1x8x32xf32>
    %86 = vector.extract_strided_slice %70 {offsets = [0, 96], sizes = [8, 32], strides = [1, 1]} : vector<8x128xf32> to vector<8x32xf32>
    %87 = vector.extract_strided_slice %46 {offsets = [3, 0], sizes = [1, 32], strides = [1, 1]} : vector<12x32xf32> to vector<1x32xf32>
    %88 = vector.broadcast %87 : vector<1x32xf32> to vector<8x32xf32>
    %89 = arith.addf %86, %88 : vector<8x32xf32>
    %90 = vector.shape_cast %89 : vector<8x32xf32> to vector<1x8x32xf32>
    %91 = vector.shape_cast %75 : vector<1x8x32xf32> to vector<1x8x1x32xf32>
    %92 = vector.shape_cast %80 : vector<1x8x32xf32> to vector<1x1x8x32xf32>
    %93 = vector.broadcast %91 : vector<1x8x1x32xf32> to vector<1x8x8x32xf32>
    %94 = vector.broadcast %92 : vector<1x1x8x32xf32> to vector<1x8x8x32xf32>
    %95 = arith.addf %93, %94 : vector<1x8x8x32xf32>
    %96 = vector.shape_cast %66 : vector<1x8x8xf32> to vector<1x8x8x1xf32>
    %97 = vector.shape_cast %47 : vector<1x32xf32> to vector<1x1x32xf32>
    %98 = vector.shape_cast %97 : vector<1x1x32xf32> to vector<1x1x1x32xf32>
    %99 = vector.broadcast %96 : vector<1x8x8x1xf32> to vector<1x8x8x32xf32>
    %100 = vector.broadcast %98 : vector<1x1x1x32xf32> to vector<1x8x8x32xf32>
    %101 = arith.mulf %99, %100 : vector<1x8x8x32xf32>
    %102 = arith.addf %95, %101 : vector<1x8x8x32xf32>
    %103 = arith.negf %102 : vector<1x8x8x32xf32>
    %104 = math.exp %103 : vector<1x8x8x32xf32>
    %cst_27 = arith.constant 1.000000e+00 : f32
    %105 = vector.broadcast %cst_27 : f32 to vector<1x8x8x32xf32>
    %106 = arith.addf %105, %104 : vector<1x8x8x32xf32>
    %107 = arith.divf %105, %106 : vector<1x8x8x32xf32>
    %108 = arith.mulf %102, %107 : vector<1x8x8x32xf32>
    %109 = arith.truncf %108 : vector<1x8x8x32xf32> to vector<1x8x8x32xbf16>
    %110 = vector.shape_cast %109 : vector<1x8x8x32xbf16> to vector<64x32xbf16>
    %111 = vector.extract_strided_slice %18 {offsets = [0, 0, 0, 0], sizes = [1, 1, 32, 32], strides = [1, 1, 1, 1]} : vector<2x3x32x32xbf16> to vector<1x1x32x32xbf16>
    %112 = vector.shape_cast %111 : vector<1x1x32x32xbf16> to vector<32x32xbf16>
    %cst_28 = arith.constant dense<0.000000e+00> : vector<64x32xf32>
    %113 = tpu.matmul %110, %112, %cst_28 {dimension_numbers = #tpu.dot_dimension_numbers<[1], [0], [0], [1], [0, 0, 1, 1], [], []>} : vector<64x32xbf16>, vector<32x32xbf16>, vector<64x32xf32> -> vector<64x32xf32>
    %114 = vector.broadcast %48 : vector<1x32xf32> to vector<64x32xf32>
    %115 = arith.addf %113, %114 : vector<64x32xf32>
    %116 = arith.negf %115 : vector<64x32xf32>
    %117 = math.exp %116 : vector<64x32xf32>
    %cst_29 = arith.constant 1.000000e+00 : f32
    %118 = vector.broadcast %cst_29 : f32 to vector<64x32xf32>
    %119 = arith.addf %118, %117 : vector<64x32xf32>
    %120 = arith.divf %118, %119 : vector<64x32xf32>
    %121 = arith.mulf %115, %120 : vector<64x32xf32>
    %122 = arith.truncf %121 : vector<64x32xf32> to vector<64x32xbf16>
    %123 = vector.extract_strided_slice %18 {offsets = [0, 1, 0, 0], sizes = [1, 1, 32, 32], strides = [1, 1, 1, 1]} : vector<2x3x32x32xbf16> to vector<1x1x32x32xbf16>
    %124 = vector.shape_cast %123 : vector<1x1x32x32xbf16> to vector<32x32xbf16>
    %cst_30 = arith.constant dense<0.000000e+00> : vector<64x32xf32>
    %125 = tpu.matmul %122, %124, %cst_30 {dimension_numbers = #tpu.dot_dimension_numbers<[1], [0], [0], [1], [0, 0, 1, 1], [], []>} : vector<64x32xbf16>, vector<32x32xbf16>, vector<64x32xf32> -> vector<64x32xf32>
    %126 = vector.broadcast %49 : vector<1x32xf32> to vector<64x32xf32>
    %127 = arith.addf %125, %126 : vector<64x32xf32>
    %128 = arith.negf %127 : vector<64x32xf32>
    %129 = math.exp %128 : vector<64x32xf32>
    %cst_31 = arith.constant 1.000000e+00 : f32
    %130 = vector.broadcast %cst_31 : f32 to vector<64x32xf32>
    %131 = arith.addf %130, %129 : vector<64x32xf32>
    %132 = arith.divf %130, %131 : vector<64x32xf32>
    %133 = arith.mulf %127, %132 : vector<64x32xf32>
    %134 = vector.broadcast %50 : vector<1x32xf32> to vector<64x32xf32>
    %135 = arith.mulf %133, %134 : vector<64x32xf32>
    %cst_32 = arith.constant dense<0.000000e+00> : vector<64xf32>
    %136 = vector.multi_reduction <add>, %135, %cst_32 [1] : vector<64x32xf32> to vector<64xf32>
    %137 = vector.shape_cast %136 : vector<64xf32> to vector<64x1xf32>
    %138 = vector.broadcast %53 : vector<1x1xf32> to vector<64x1xf32>
    %139 = arith.addf %137, %138 : vector<64x1xf32>
    %140 = vector.shape_cast %139 : vector<64x1xf32> to vector<1x8x8xf32>
    %cst_33 = arith.constant dense<0.000000e+00> : vector<1x8xf32>
    %141 = vector.multi_reduction <add>, %140, %cst_33 [2] : vector<1x8x8xf32> to vector<1x8xf32>
    %142 = vector.shape_cast %141 : vector<1x8xf32> to vector<1x8x1xf32>
    "tpu.trace_start"() <{level = 10 : i32, message = "bij,bjd->bid"}> : () -> ()
    %cst_34 = arith.constant dense<0.000000e+00> : vector<1x8x3xf32>
    %143 = tpu.matmul %140, %1, %cst_34 {dimension_numbers = #tpu.dot_dimension_numbers<[2], [1], [1], [2], [0, 0, 0, 1, 1, 2], [0], [0]>} : vector<1x8x8xf32>, vector<1x8x3xf32>, vector<1x8x3xf32> -> vector<1x8x3xf32>
    "tpu.trace_stop"() : () -> ()
    %144 = vector.broadcast %142 : vector<1x8x1xf32> to vector<1x8x3xf32>
    %145 = arith.mulf %1, %144 : vector<1x8x3xf32>
    %146 = arith.subf %145, %143 : vector<1x8x3xf32>
    %cst_35 = arith.constant 0.142857149 : f32
    %147 = vector.broadcast %cst_35 : f32 to vector<1x8x3xf32>
    %148 = arith.mulf %146, %147 : vector<1x8x3xf32>
    %149 = arith.addf %1, %148 : vector<1x8x3xf32>
    %150 = vector.extract_strided_slice %85 {offsets = [0, 0, 0], sizes = [1, 8, 8], strides = [1, 1, 1]} : vector<1x8x32xf32> to vector<1x8x8xf32>
    %151 = vector.extract_strided_slice %90 {offsets = [0, 0, 0], sizes = [1, 8, 8], strides = [1, 1, 1]} : vector<1x8x32xf32> to vector<1x8x8xf32>
    "tpu.trace_start"() <{level = 10 : i32, message = "bid,bjd->bij"}> : () -> ()
    %cst_36 = arith.constant dense<0.000000e+00> : vector<1x8x8xf32>
    %152 = tpu.matmul %150, %151, %cst_36 {dimension_numbers = #tpu.dot_dimension_numbers<[2], [2], [1], [1], [0, 0, 0, 1, 1, 1], [0], [0]>} : vector<1x8x8xf32>, vector<1x8x8xf32>, vector<1x8x8xf32> -> vector<1x8x8xf32>
    "tpu.trace_stop"() : () -> ()
    %cst_37 = arith.constant 0.353553385 : f32
    %153 = vector.broadcast %cst_37 : f32 to vector<1x8x8xf32>
    %154 = arith.mulf %152, %153 : vector<1x8x8xf32>
    %cst_38 = arith.constant -1.000000e+09 : f32
    %155 = vector.broadcast %cst_38 : f32 to vector<1x8x8xf32>
    %156 = arith.select %44, %155, %154 : vector<1x8x8xi1>, vector<1x8x8xf32>
    %cst_39 = arith.constant dense<0xFF800000> : vector<1x8xf32>
    %157 = vector.multi_reduction <maximumf>, %156, %cst_39 [2] : vector<1x8x8xf32> to vector<1x8xf32>
    %158 = vector.shape_cast %157 : vector<1x8xf32> to vector<1x8x1xf32>
    %159 = vector.broadcast %158 : vector<1x8x1xf32> to vector<1x8x8xf32>
    %160 = arith.subf %156, %159 : vector<1x8x8xf32>
    %161 = math.exp %160 : vector<1x8x8xf32>
    %cst_40 = arith.constant dense<0.000000e+00> : vector<1x8xf32>
    %162 = vector.multi_reduction <add>, %161, %cst_40 [2] : vector<1x8x8xf32> to vector<1x8xf32>
    %163 = vector.shape_cast %162 : vector<1x8xf32> to vector<1x8x1xf32>
    %cst_41 = arith.constant 1.000000e+00 : f32
    %164 = vector.broadcast %cst_41 : f32 to vector<1x8x1xf32>
    %165 = arith.divf %164, %163 : vector<1x8x1xf32>
    %166 = vector.broadcast %165 : vector<1x8x1xf32> to vector<1x8x8xf32>
    %167 = arith.mulf %161, %166 : vector<1x8x8xf32>
    %168 = vector.shape_cast %167 : vector<1x8x8xf32> to vector<1x8x8x1xf32>
    %169 = vector.shape_cast %168 : vector<1x8x8x1xf32> to vector<1x8x8x1xf32>
    %170 = vector.broadcast %169 : vector<1x8x8x1xf32> to vector<1x8x8x8xf32>
    %171 = vector.extract_strided_slice %85 {offsets = [0, 0, 8], sizes = [1, 8, 8], strides = [1, 1, 1]} : vector<1x8x32xf32> to vector<1x8x8xf32>
    %172 = vector.extract_strided_slice %90 {offsets = [0, 0, 8], sizes = [1, 8, 8], strides = [1, 1, 1]} : vector<1x8x32xf32> to vector<1x8x8xf32>
    "tpu.trace_start"() <{level = 10 : i32, message = "bid,bjd->bij"}> : () -> ()
    %cst_42 = arith.constant dense<0.000000e+00> : vector<1x8x8xf32>
    %173 = tpu.matmul %171, %172, %cst_42 {dimension_numbers = #tpu.dot_dimension_numbers<[2], [2], [1], [1], [0, 0, 0, 1, 1, 1], [0], [0]>} : vector<1x8x8xf32>, vector<1x8x8xf32>, vector<1x8x8xf32> -> vector<1x8x8xf32>
    "tpu.trace_stop"() : () -> ()
    %cst_43 = arith.constant 0.353553385 : f32
    %174 = vector.broadcast %cst_43 : f32 to vector<1x8x8xf32>
    %175 = arith.mulf %173, %174 : vector<1x8x8xf32>
    %cst_44 = arith.constant -1.000000e+09 : f32
    %176 = vector.broadcast %cst_44 : f32 to vector<1x8x8xf32>
    %177 = arith.select %44, %176, %175 : vector<1x8x8xi1>, vector<1x8x8xf32>
    %cst_45 = arith.constant dense<0xFF800000> : vector<1x8xf32>
    %178 = vector.multi_reduction <maximumf>, %177, %cst_45 [2] : vector<1x8x8xf32> to vector<1x8xf32>
    %179 = vector.shape_cast %178 : vector<1x8xf32> to vector<1x8x1xf32>
    %180 = vector.broadcast %179 : vector<1x8x1xf32> to vector<1x8x8xf32>
    %181 = arith.subf %177, %180 : vector<1x8x8xf32>
    %182 = math.exp %181 : vector<1x8x8xf32>
    %cst_46 = arith.constant dense<0.000000e+00> : vector<1x8xf32>
    %183 = vector.multi_reduction <add>, %182, %cst_46 [2] : vector<1x8x8xf32> to vector<1x8xf32>
    %184 = vector.shape_cast %183 : vector<1x8xf32> to vector<1x8x1xf32>
    %cst_47 = arith.constant 1.000000e+00 : f32
    %185 = vector.broadcast %cst_47 : f32 to vector<1x8x1xf32>
    %186 = arith.divf %185, %184 : vector<1x8x1xf32>
    %187 = vector.broadcast %186 : vector<1x8x1xf32> to vector<1x8x8xf32>
    %188 = arith.mulf %182, %187 : vector<1x8x8xf32>
    %189 = vector.shape_cast %188 : vector<1x8x8xf32> to vector<1x8x8x1xf32>
    %190 = vector.shape_cast %189 : vector<1x8x8x1xf32> to vector<1x8x8x1xf32>
    %191 = vector.broadcast %190 : vector<1x8x8x1xf32> to vector<1x8x8x8xf32>
    %192 = vector.extract_strided_slice %85 {offsets = [0, 0, 16], sizes = [1, 8, 8], strides = [1, 1, 1]} : vector<1x8x32xf32> to vector<1x8x8xf32>
    %193 = vector.extract_strided_slice %90 {offsets = [0, 0, 16], sizes = [1, 8, 8], strides = [1, 1, 1]} : vector<1x8x32xf32> to vector<1x8x8xf32>
    "tpu.trace_start"() <{level = 10 : i32, message = "bid,bjd->bij"}> : () -> ()
    %cst_48 = arith.constant dense<0.000000e+00> : vector<1x8x8xf32>
    %194 = tpu.matmul %192, %193, %cst_48 {dimension_numbers = #tpu.dot_dimension_numbers<[2], [2], [1], [1], [0, 0, 0, 1, 1, 1], [0], [0]>} : vector<1x8x8xf32>, vector<1x8x8xf32>, vector<1x8x8xf32> -> vector<1x8x8xf32>
    "tpu.trace_stop"() : () -> ()
    %cst_49 = arith.constant 0.353553385 : f32
    %195 = vector.broadcast %cst_49 : f32 to vector<1x8x8xf32>
    %196 = arith.mulf %194, %195 : vector<1x8x8xf32>
    %cst_50 = arith.constant -1.000000e+09 : f32
    %197 = vector.broadcast %cst_50 : f32 to vector<1x8x8xf32>
    %198 = arith.select %44, %197, %196 : vector<1x8x8xi1>, vector<1x8x8xf32>
    %cst_51 = arith.constant dense<0xFF800000> : vector<1x8xf32>
    %199 = vector.multi_reduction <maximumf>, %198, %cst_51 [2] : vector<1x8x8xf32> to vector<1x8xf32>
    %200 = vector.shape_cast %199 : vector<1x8xf32> to vector<1x8x1xf32>
    %201 = vector.broadcast %200 : vector<1x8x1xf32> to vector<1x8x8xf32>
    %202 = arith.subf %198, %201 : vector<1x8x8xf32>
    %203 = math.exp %202 : vector<1x8x8xf32>
    %cst_52 = arith.constant dense<0.000000e+00> : vector<1x8xf32>
    %204 = vector.multi_reduction <add>, %203, %cst_52 [2] : vector<1x8x8xf32> to vector<1x8xf32>
    %205 = vector.shape_cast %204 : vector<1x8xf32> to vector<1x8x1xf32>
    %cst_53 = arith.constant 1.000000e+00 : f32
    %206 = vector.broadcast %cst_53 : f32 to vector<1x8x1xf32>
    %207 = arith.divf %206, %205 : vector<1x8x1xf32>
    %208 = vector.broadcast %207 : vector<1x8x1xf32> to vector<1x8x8xf32>
    %209 = arith.mulf %203, %208 : vector<1x8x8xf32>
    %210 = vector.shape_cast %209 : vector<1x8x8xf32> to vector<1x8x8x1xf32>
    %211 = vector.shape_cast %210 : vector<1x8x8x1xf32> to vector<1x8x8x1xf32>
    %212 = vector.broadcast %211 : vector<1x8x8x1xf32> to vector<1x8x8x8xf32>
    %213 = vector.extract_strided_slice %85 {offsets = [0, 0, 24], sizes = [1, 8, 8], strides = [1, 1, 1]} : vector<1x8x32xf32> to vector<1x8x8xf32>
    %214 = vector.extract_strided_slice %90 {offsets = [0, 0, 24], sizes = [1, 8, 8], strides = [1, 1, 1]} : vector<1x8x32xf32> to vector<1x8x8xf32>
    "tpu.trace_start"() <{level = 10 : i32, message = "bid,bjd->bij"}> : () -> ()
    %cst_54 = arith.constant dense<0.000000e+00> : vector<1x8x8xf32>
    %215 = tpu.matmul %213, %214, %cst_54 {dimension_numbers = #tpu.dot_dimension_numbers<[2], [2], [1], [1], [0, 0, 0, 1, 1, 1], [0], [0]>} : vector<1x8x8xf32>, vector<1x8x8xf32>, vector<1x8x8xf32> -> vector<1x8x8xf32>
    "tpu.trace_stop"() : () -> ()
    %cst_55 = arith.constant 0.353553385 : f32
    %216 = vector.broadcast %cst_55 : f32 to vector<1x8x8xf32>
    %217 = arith.mulf %215, %216 : vector<1x8x8xf32>
    %cst_56 = arith.constant -1.000000e+09 : f32
    %218 = vector.broadcast %cst_56 : f32 to vector<1x8x8xf32>
    %219 = arith.select %44, %218, %217 : vector<1x8x8xi1>, vector<1x8x8xf32>
    %cst_57 = arith.constant dense<0xFF800000> : vector<1x8xf32>
    %220 = vector.multi_reduction <maximumf>, %219, %cst_57 [2] : vector<1x8x8xf32> to vector<1x8xf32>
    %221 = vector.shape_cast %220 : vector<1x8xf32> to vector<1x8x1xf32>
    %222 = vector.broadcast %221 : vector<1x8x1xf32> to vector<1x8x8xf32>
    %223 = arith.subf %219, %222 : vector<1x8x8xf32>
    %224 = math.exp %223 : vector<1x8x8xf32>
    %cst_58 = arith.constant dense<0.000000e+00> : vector<1x8xf32>
    %225 = vector.multi_reduction <add>, %224, %cst_58 [2] : vector<1x8x8xf32> to vector<1x8xf32>
    %226 = vector.shape_cast %225 : vector<1x8xf32> to vector<1x8x1xf32>
    %cst_59 = arith.constant 1.000000e+00 : f32
    %227 = vector.broadcast %cst_59 : f32 to vector<1x8x1xf32>
    %228 = arith.divf %227, %226 : vector<1x8x1xf32>
    %229 = vector.broadcast %228 : vector<1x8x1xf32> to vector<1x8x8xf32>
    %230 = arith.mulf %224, %229 : vector<1x8x8xf32>
    %231 = vector.shape_cast %230 : vector<1x8x8xf32> to vector<1x8x8x1xf32>
    %232 = vector.shape_cast %231 : vector<1x8x8x1xf32> to vector<1x8x8x1xf32>
    %233 = vector.broadcast %232 : vector<1x8x8x1xf32> to vector<1x8x8x8xf32>
    %234 = tpu.concatenate %170, %191, %212, %233 in 3 : vector<1x8x8x8xf32>, vector<1x8x8x8xf32>, vector<1x8x8x8xf32>, vector<1x8x8x8xf32> -> vector<1x8x8x32xf32>
    %235 = vector.shape_cast %121 : vector<64x32xf32> to vector<1x8x8x32xf32>
    %236 = arith.mulf %234, %235 : vector<1x8x8x32xf32>
    %cst_60 = arith.constant dense<0.000000e+00> : vector<1x8x32xf32>
    %237 = vector.multi_reduction <add>, %236, %cst_60 [2] : vector<1x8x8x32xf32> to vector<1x8x32xf32>
    %238 = vector.shape_cast %237 : vector<1x8x32xf32> to vector<8x32xf32>
    %239 = tpu.concatenate %40, %238 in 1 : vector<8x32xf32>, vector<8x32xf32> -> vector<8x64xf32>
    %240 = arith.truncf %239 : vector<8x64xf32> to vector<8x64xbf16>
    %241 = vector.extract_strided_slice %20 {offsets = [0, 0, 0], sizes = [1, 64, 32], strides = [1, 1, 1]} : vector<2x64x32xbf16> to vector<1x64x32xbf16>
    %242 = vector.shape_cast %241 : vector<1x64x32xbf16> to vector<64x32xbf16>
    %cst_61 = arith.constant dense<0.000000e+00> : vector<8x32xf32>
    %243 = tpu.matmul %240, %242, %cst_61 {dimension_numbers = #tpu.dot_dimension_numbers<[1], [0], [0], [1], [0, 0, 1, 1], [], []>} : vector<8x64xbf16>, vector<64x32xbf16>, vector<8x32xf32> -> vector<8x32xf32>
    %244 = vector.broadcast %51 : vector<1x32xf32> to vector<8x32xf32>
    %245 = arith.addf %243, %244 : vector<8x32xf32>
    %246 = arith.negf %245 : vector<8x32xf32>
    %247 = math.exp %246 : vector<8x32xf32>
    %cst_62 = arith.constant 1.000000e+00 : f32
    %248 = vector.broadcast %cst_62 : f32 to vector<8x32xf32>
    %249 = arith.addf %248, %247 : vector<8x32xf32>
    %250 = arith.divf %248, %249 : vector<8x32xf32>
    %251 = arith.mulf %245, %250 : vector<8x32xf32>
    %252 = arith.truncf %251 : vector<8x32xf32> to vector<8x32xbf16>
    %253 = vector.extract_strided_slice %18 {offsets = [0, 2, 0, 0], sizes = [1, 1, 32, 32], strides = [1, 1, 1, 1]} : vector<2x3x32x32xbf16> to vector<1x1x32x32xbf16>
    %254 = vector.shape_cast %253 : vector<1x1x32x32xbf16> to vector<32x32xbf16>
    %cst_63 = arith.constant dense<0.000000e+00> : vector<8x32xf32>
    %255 = tpu.matmul %252, %254, %cst_63 {dimension_numbers = #tpu.dot_dimension_numbers<[1], [0], [0], [1], [0, 0, 1, 1], [], []>} : vector<8x32xbf16>, vector<32x32xbf16>, vector<8x32xf32> -> vector<8x32xf32>
    %256 = arith.addf %40, %255 : vector<8x32xf32>
    %257 = vector.broadcast %52 : vector<1x32xf32> to vector<8x32xf32>
    %258 = arith.addf %256, %257 : vector<8x32xf32>
    %259 = vector.extract_strided_slice %21 {offsets = [1, 0, 0], sizes = [1, 12, 32], strides = [1, 1, 1]} : vector<2x12x32xf32> to vector<1x12x32xf32>
    %260 = vector.shape_cast %259 : vector<1x12x32xf32> to vector<12x32xf32>
    %261 = vector.extract_strided_slice %260 {offsets = [4, 0], sizes = [1, 32], strides = [1, 1]} : vector<12x32xf32> to vector<1x32xf32>
    %262 = vector.extract_strided_slice %260 {offsets = [5, 0], sizes = [1, 32], strides = [1, 1]} : vector<12x32xf32> to vector<1x32xf32>
    %263 = vector.extract_strided_slice %260 {offsets = [6, 0], sizes = [1, 32], strides = [1, 1]} : vector<12x32xf32> to vector<1x32xf32>
    %264 = vector.extract_strided_slice %260 {offsets = [7, 0], sizes = [1, 32], strides = [1, 1]} : vector<12x32xf32> to vector<1x32xf32>
    %265 = vector.extract_strided_slice %260 {offsets = [8, 0], sizes = [1, 32], strides = [1, 1]} : vector<12x32xf32> to vector<1x32xf32>
    %266 = vector.extract_strided_slice %260 {offsets = [9, 0], sizes = [1, 32], strides = [1, 1]} : vector<12x32xf32> to vector<1x32xf32>
    %267 = vector.extract_strided_slice %260 {offsets = [10, 0], sizes = [1, 1], strides = [1, 1]} : vector<12x32xf32> to vector<1x1xf32>
    %268 = arith.mulf %149, %149 : vector<1x8x3xf32>
    %cst_64 = arith.constant dense<0.000000e+00> : vector<1x8xf32>
    %269 = vector.multi_reduction <add>, %268, %cst_64 [2] : vector<1x8x3xf32> to vector<1x8xf32>
    "tpu.trace_start"() <{level = 10 : i32, message = "bid,bjd->bij"}> : () -> ()
    %cst_65 = arith.constant dense<0.000000e+00> : vector<1x8x8xf32>
    %270 = tpu.matmul %149, %149, %cst_65 {dimension_numbers = #tpu.dot_dimension_numbers<[2], [2], [1], [1], [0, 0, 0, 1, 1, 1], [0], [0]>} : vector<1x8x3xf32>, vector<1x8x3xf32>, vector<1x8x8xf32> -> vector<1x8x8xf32>
    "tpu.trace_stop"() : () -> ()
    %271 = vector.shape_cast %269 : vector<1x8xf32> to vector<1x8x1xf32>
    %272 = vector.shape_cast %269 : vector<1x8xf32> to vector<1x1x8xf32>
    %273 = vector.broadcast %271 : vector<1x8x1xf32> to vector<1x8x8xf32>
    %274 = vector.broadcast %272 : vector<1x1x8xf32> to vector<1x8x8xf32>
    %275 = arith.addf %273, %274 : vector<1x8x8xf32>
    %cst_66 = arith.constant 2.000000e+00 : f32
    %276 = vector.broadcast %cst_66 : f32 to vector<1x8x8xf32>
    %277 = arith.mulf %276, %270 : vector<1x8x8xf32>
    %278 = arith.subf %275, %277 : vector<1x8x8xf32>
    %cst_67 = arith.constant 0.000000e+00 : f32
    %279 = vector.broadcast %cst_67 : f32 to vector<1x8x8xf32>
    %280 = arith.maximumf %278, %279 : vector<1x8x8xf32>
    %281 = arith.truncf %258 : vector<8x32xf32> to vector<8x32xbf16>
    %282 = vector.extract_strided_slice %16 {offsets = [1, 0, 0], sizes = [1, 32, 128], strides = [1, 1, 1]} : vector<2x32x128xbf16> to vector<1x32x128xbf16>
    %283 = vector.shape_cast %282 : vector<1x32x128xbf16> to vector<32x128xbf16>
    %cst_68 = arith.constant dense<0.000000e+00> : vector<8x128xf32>
    %284 = tpu.matmul %281, %283, %cst_68 {dimension_numbers = #tpu.dot_dimension_numbers<[1], [0], [0], [1], [0, 0, 1, 1], [], []>} : vector<8x32xbf16>, vector<32x128xbf16>, vector<8x128xf32> -> vector<8x128xf32>
    %285 = vector.extract_strided_slice %284 {offsets = [0, 0], sizes = [8, 32], strides = [1, 1]} : vector<8x128xf32> to vector<8x32xf32>
    %286 = vector.extract_strided_slice %260 {offsets = [0, 0], sizes = [1, 32], strides = [1, 1]} : vector<12x32xf32> to vector<1x32xf32>
    %287 = vector.broadcast %286 : vector<1x32xf32> to vector<8x32xf32>
    %288 = arith.addf %285, %287 : vector<8x32xf32>
    %289 = vector.shape_cast %288 : vector<8x32xf32> to vector<1x8x32xf32>
    %290 = vector.extract_strided_slice %284 {offsets = [0, 32], sizes = [8, 32], strides = [1, 1]} : vector<8x128xf32> to vector<8x32xf32>
    %291 = vector.extract_strided_slice %260 {offsets = [1, 0], sizes = [1, 32], strides = [1, 1]} : vector<12x32xf32> to vector<1x32xf32>
    %292 = vector.broadcast %291 : vector<1x32xf32> to vector<8x32xf32>
    %293 = arith.addf %290, %292 : vector<8x32xf32>
    %294 = vector.shape_cast %293 : vector<8x32xf32> to vector<1x8x32xf32>
    %295 = vector.extract_strided_slice %284 {offsets = [0, 64], sizes = [8, 32], strides = [1, 1]} : vector<8x128xf32> to vector<8x32xf32>
    %296 = vector.extract_strided_slice %260 {offsets = [2, 0], sizes = [1, 32], strides = [1, 1]} : vector<12x32xf32> to vector<1x32xf32>
    %297 = vector.broadcast %296 : vector<1x32xf32> to vector<8x32xf32>
    %298 = arith.addf %295, %297 : vector<8x32xf32>
    %299 = vector.shape_cast %298 : vector<8x32xf32> to vector<1x8x32xf32>
    %300 = vector.extract_strided_slice %284 {offsets = [0, 96], sizes = [8, 32], strides = [1, 1]} : vector<8x128xf32> to vector<8x32xf32>
    %301 = vector.extract_strided_slice %260 {offsets = [3, 0], sizes = [1, 32], strides = [1, 1]} : vector<12x32xf32> to vector<1x32xf32>
    %302 = vector.broadcast %301 : vector<1x32xf32> to vector<8x32xf32>
    %303 = arith.addf %300, %302 : vector<8x32xf32>
    %304 = vector.shape_cast %303 : vector<8x32xf32> to vector<1x8x32xf32>
    %305 = vector.shape_cast %289 : vector<1x8x32xf32> to vector<1x8x1x32xf32>
    %306 = vector.shape_cast %294 : vector<1x8x32xf32> to vector<1x1x8x32xf32>
    %307 = vector.broadcast %305 : vector<1x8x1x32xf32> to vector<1x8x8x32xf32>
    %308 = vector.broadcast %306 : vector<1x1x8x32xf32> to vector<1x8x8x32xf32>
    %309 = arith.addf %307, %308 : vector<1x8x8x32xf32>
    %310 = vector.shape_cast %280 : vector<1x8x8xf32> to vector<1x8x8x1xf32>
    %311 = vector.shape_cast %261 : vector<1x32xf32> to vector<1x1x32xf32>
    %312 = vector.shape_cast %311 : vector<1x1x32xf32> to vector<1x1x1x32xf32>
    %313 = vector.broadcast %310 : vector<1x8x8x1xf32> to vector<1x8x8x32xf32>
    %314 = vector.broadcast %312 : vector<1x1x1x32xf32> to vector<1x8x8x32xf32>
    %315 = arith.mulf %313, %314 : vector<1x8x8x32xf32>
    %316 = arith.addf %309, %315 : vector<1x8x8x32xf32>
    %317 = arith.negf %316 : vector<1x8x8x32xf32>
    %318 = math.exp %317 : vector<1x8x8x32xf32>
    %cst_69 = arith.constant 1.000000e+00 : f32
    %319 = vector.broadcast %cst_69 : f32 to vector<1x8x8x32xf32>
    %320 = arith.addf %319, %318 : vector<1x8x8x32xf32>
    %321 = arith.divf %319, %320 : vector<1x8x8x32xf32>
    %322 = arith.mulf %316, %321 : vector<1x8x8x32xf32>
    %323 = arith.truncf %322 : vector<1x8x8x32xf32> to vector<1x8x8x32xbf16>
    %324 = vector.shape_cast %323 : vector<1x8x8x32xbf16> to vector<64x32xbf16>
    %325 = vector.extract_strided_slice %18 {offsets = [1, 0, 0, 0], sizes = [1, 1, 32, 32], strides = [1, 1, 1, 1]} : vector<2x3x32x32xbf16> to vector<1x1x32x32xbf16>
    %326 = vector.shape_cast %325 : vector<1x1x32x32xbf16> to vector<32x32xbf16>
    %cst_70 = arith.constant dense<0.000000e+00> : vector<64x32xf32>
    %327 = tpu.matmul %324, %326, %cst_70 {dimension_numbers = #tpu.dot_dimension_numbers<[1], [0], [0], [1], [0, 0, 1, 1], [], []>} : vector<64x32xbf16>, vector<32x32xbf16>, vector<64x32xf32> -> vector<64x32xf32>
    %328 = vector.broadcast %262 : vector<1x32xf32> to vector<64x32xf32>
    %329 = arith.addf %327, %328 : vector<64x32xf32>
    %330 = arith.negf %329 : vector<64x32xf32>
    %331 = math.exp %330 : vector<64x32xf32>
    %cst_71 = arith.constant 1.000000e+00 : f32
    %332 = vector.broadcast %cst_71 : f32 to vector<64x32xf32>
    %333 = arith.addf %332, %331 : vector<64x32xf32>
    %334 = arith.divf %332, %333 : vector<64x32xf32>
    %335 = arith.mulf %329, %334 : vector<64x32xf32>
    %336 = arith.truncf %335 : vector<64x32xf32> to vector<64x32xbf16>
    %337 = vector.extract_strided_slice %18 {offsets = [1, 1, 0, 0], sizes = [1, 1, 32, 32], strides = [1, 1, 1, 1]} : vector<2x3x32x32xbf16> to vector<1x1x32x32xbf16>
    %338 = vector.shape_cast %337 : vector<1x1x32x32xbf16> to vector<32x32xbf16>
    %cst_72 = arith.constant dense<0.000000e+00> : vector<64x32xf32>
    %339 = tpu.matmul %336, %338, %cst_72 {dimension_numbers = #tpu.dot_dimension_numbers<[1], [0], [0], [1], [0, 0, 1, 1], [], []>} : vector<64x32xbf16>, vector<32x32xbf16>, vector<64x32xf32> -> vector<64x32xf32>
    %340 = vector.broadcast %263 : vector<1x32xf32> to vector<64x32xf32>
    %341 = arith.addf %339, %340 : vector<64x32xf32>
    %342 = arith.negf %341 : vector<64x32xf32>
    %343 = math.exp %342 : vector<64x32xf32>
    %cst_73 = arith.constant 1.000000e+00 : f32
    %344 = vector.broadcast %cst_73 : f32 to vector<64x32xf32>
    %345 = arith.addf %344, %343 : vector<64x32xf32>
    %346 = arith.divf %344, %345 : vector<64x32xf32>
    %347 = arith.mulf %341, %346 : vector<64x32xf32>
    %348 = vector.broadcast %264 : vector<1x32xf32> to vector<64x32xf32>
    %349 = arith.mulf %347, %348 : vector<64x32xf32>
    %cst_74 = arith.constant dense<0.000000e+00> : vector<64xf32>
    %350 = vector.multi_reduction <add>, %349, %cst_74 [1] : vector<64x32xf32> to vector<64xf32>
    %351 = vector.shape_cast %350 : vector<64xf32> to vector<64x1xf32>
    %352 = vector.broadcast %267 : vector<1x1xf32> to vector<64x1xf32>
    %353 = arith.addf %351, %352 : vector<64x1xf32>
    %354 = vector.shape_cast %353 : vector<64x1xf32> to vector<1x8x8xf32>
    %cst_75 = arith.constant dense<0.000000e+00> : vector<1x8xf32>
    %355 = vector.multi_reduction <add>, %354, %cst_75 [2] : vector<1x8x8xf32> to vector<1x8xf32>
    %356 = vector.shape_cast %355 : vector<1x8xf32> to vector<1x8x1xf32>
    "tpu.trace_start"() <{level = 10 : i32, message = "bij,bjd->bid"}> : () -> ()
    %cst_76 = arith.constant dense<0.000000e+00> : vector<1x8x3xf32>
    %357 = tpu.matmul %354, %149, %cst_76 {dimension_numbers = #tpu.dot_dimension_numbers<[2], [1], [1], [2], [0, 0, 0, 1, 1, 2], [0], [0]>} : vector<1x8x8xf32>, vector<1x8x3xf32>, vector<1x8x3xf32> -> vector<1x8x3xf32>
    "tpu.trace_stop"() : () -> ()
    %358 = vector.broadcast %356 : vector<1x8x1xf32> to vector<1x8x3xf32>
    %359 = arith.mulf %149, %358 : vector<1x8x3xf32>
    %360 = arith.subf %359, %357 : vector<1x8x3xf32>
    %cst_77 = arith.constant 0.142857149 : f32
    %361 = vector.broadcast %cst_77 : f32 to vector<1x8x3xf32>
    %362 = arith.mulf %360, %361 : vector<1x8x3xf32>
    %363 = arith.addf %149, %362 : vector<1x8x3xf32>
    %364 = vector.extract_strided_slice %299 {offsets = [0, 0, 0], sizes = [1, 8, 8], strides = [1, 1, 1]} : vector<1x8x32xf32> to vector<1x8x8xf32>
    %365 = vector.extract_strided_slice %304 {offsets = [0, 0, 0], sizes = [1, 8, 8], strides = [1, 1, 1]} : vector<1x8x32xf32> to vector<1x8x8xf32>
    "tpu.trace_start"() <{level = 10 : i32, message = "bid,bjd->bij"}> : () -> ()
    %cst_78 = arith.constant dense<0.000000e+00> : vector<1x8x8xf32>
    %366 = tpu.matmul %364, %365, %cst_78 {dimension_numbers = #tpu.dot_dimension_numbers<[2], [2], [1], [1], [0, 0, 0, 1, 1, 1], [0], [0]>} : vector<1x8x8xf32>, vector<1x8x8xf32>, vector<1x8x8xf32> -> vector<1x8x8xf32>
    "tpu.trace_stop"() : () -> ()
    %cst_79 = arith.constant 0.353553385 : f32
    %367 = vector.broadcast %cst_79 : f32 to vector<1x8x8xf32>
    %368 = arith.mulf %366, %367 : vector<1x8x8xf32>
    %cst_80 = arith.constant -1.000000e+09 : f32
    %369 = vector.broadcast %cst_80 : f32 to vector<1x8x8xf32>
    %370 = arith.select %44, %369, %368 : vector<1x8x8xi1>, vector<1x8x8xf32>
    %cst_81 = arith.constant dense<0xFF800000> : vector<1x8xf32>
    %371 = vector.multi_reduction <maximumf>, %370, %cst_81 [2] : vector<1x8x8xf32> to vector<1x8xf32>
    %372 = vector.shape_cast %371 : vector<1x8xf32> to vector<1x8x1xf32>
    %373 = vector.broadcast %372 : vector<1x8x1xf32> to vector<1x8x8xf32>
    %374 = arith.subf %370, %373 : vector<1x8x8xf32>
    %375 = math.exp %374 : vector<1x8x8xf32>
    %cst_82 = arith.constant dense<0.000000e+00> : vector<1x8xf32>
    %376 = vector.multi_reduction <add>, %375, %cst_82 [2] : vector<1x8x8xf32> to vector<1x8xf32>
    %377 = vector.shape_cast %376 : vector<1x8xf32> to vector<1x8x1xf32>
    %cst_83 = arith.constant 1.000000e+00 : f32
    %378 = vector.broadcast %cst_83 : f32 to vector<1x8x1xf32>
    %379 = arith.divf %378, %377 : vector<1x8x1xf32>
    %380 = vector.broadcast %379 : vector<1x8x1xf32> to vector<1x8x8xf32>
    %381 = arith.mulf %375, %380 : vector<1x8x8xf32>
    %382 = vector.shape_cast %381 : vector<1x8x8xf32> to vector<1x8x8x1xf32>
    %383 = vector.shape_cast %382 : vector<1x8x8x1xf32> to vector<1x8x8x1xf32>
    %384 = vector.broadcast %383 : vector<1x8x8x1xf32> to vector<1x8x8x8xf32>
    %385 = vector.extract_strided_slice %299 {offsets = [0, 0, 8], sizes = [1, 8, 8], strides = [1, 1, 1]} : vector<1x8x32xf32> to vector<1x8x8xf32>
    %386 = vector.extract_strided_slice %304 {offsets = [0, 0, 8], sizes = [1, 8, 8], strides = [1, 1, 1]} : vector<1x8x32xf32> to vector<1x8x8xf32>
    "tpu.trace_start"() <{level = 10 : i32, message = "bid,bjd->bij"}> : () -> ()
    %cst_84 = arith.constant dense<0.000000e+00> : vector<1x8x8xf32>
    %387 = tpu.matmul %385, %386, %cst_84 {dimension_numbers = #tpu.dot_dimension_numbers<[2], [2], [1], [1], [0, 0, 0, 1, 1, 1], [0], [0]>} : vector<1x8x8xf32>, vector<1x8x8xf32>, vector<1x8x8xf32> -> vector<1x8x8xf32>
    "tpu.trace_stop"() : () -> ()
    %cst_85 = arith.constant 0.353553385 : f32
    %388 = vector.broadcast %cst_85 : f32 to vector<1x8x8xf32>
    %389 = arith.mulf %387, %388 : vector<1x8x8xf32>
    %cst_86 = arith.constant -1.000000e+09 : f32
    %390 = vector.broadcast %cst_86 : f32 to vector<1x8x8xf32>
    %391 = arith.select %44, %390, %389 : vector<1x8x8xi1>, vector<1x8x8xf32>
    %cst_87 = arith.constant dense<0xFF800000> : vector<1x8xf32>
    %392 = vector.multi_reduction <maximumf>, %391, %cst_87 [2] : vector<1x8x8xf32> to vector<1x8xf32>
    %393 = vector.shape_cast %392 : vector<1x8xf32> to vector<1x8x1xf32>
    %394 = vector.broadcast %393 : vector<1x8x1xf32> to vector<1x8x8xf32>
    %395 = arith.subf %391, %394 : vector<1x8x8xf32>
    %396 = math.exp %395 : vector<1x8x8xf32>
    %cst_88 = arith.constant dense<0.000000e+00> : vector<1x8xf32>
    %397 = vector.multi_reduction <add>, %396, %cst_88 [2] : vector<1x8x8xf32> to vector<1x8xf32>
    %398 = vector.shape_cast %397 : vector<1x8xf32> to vector<1x8x1xf32>
    %cst_89 = arith.constant 1.000000e+00 : f32
    %399 = vector.broadcast %cst_89 : f32 to vector<1x8x1xf32>
    %400 = arith.divf %399, %398 : vector<1x8x1xf32>
    %401 = vector.broadcast %400 : vector<1x8x1xf32> to vector<1x8x8xf32>
    %402 = arith.mulf %396, %401 : vector<1x8x8xf32>
    %403 = vector.shape_cast %402 : vector<1x8x8xf32> to vector<1x8x8x1xf32>
    %404 = vector.shape_cast %403 : vector<1x8x8x1xf32> to vector<1x8x8x1xf32>
    %405 = vector.broadcast %404 : vector<1x8x8x1xf32> to vector<1x8x8x8xf32>
    %406 = vector.extract_strided_slice %299 {offsets = [0, 0, 16], sizes = [1, 8, 8], strides = [1, 1, 1]} : vector<1x8x32xf32> to vector<1x8x8xf32>
    %407 = vector.extract_strided_slice %304 {offsets = [0, 0, 16], sizes = [1, 8, 8], strides = [1, 1, 1]} : vector<1x8x32xf32> to vector<1x8x8xf32>
    "tpu.trace_start"() <{level = 10 : i32, message = "bid,bjd->bij"}> : () -> ()
    %cst_90 = arith.constant dense<0.000000e+00> : vector<1x8x8xf32>
    %408 = tpu.matmul %406, %407, %cst_90 {dimension_numbers = #tpu.dot_dimension_numbers<[2], [2], [1], [1], [0, 0, 0, 1, 1, 1], [0], [0]>} : vector<1x8x8xf32>, vector<1x8x8xf32>, vector<1x8x8xf32> -> vector<1x8x8xf32>
    "tpu.trace_stop"() : () -> ()
    %cst_91 = arith.constant 0.353553385 : f32
    %409 = vector.broadcast %cst_91 : f32 to vector<1x8x8xf32>
    %410 = arith.mulf %408, %409 : vector<1x8x8xf32>
    %cst_92 = arith.constant -1.000000e+09 : f32
    %411 = vector.broadcast %cst_92 : f32 to vector<1x8x8xf32>
    %412 = arith.select %44, %411, %410 : vector<1x8x8xi1>, vector<1x8x8xf32>
    %cst_93 = arith.constant dense<0xFF800000> : vector<1x8xf32>
    %413 = vector.multi_reduction <maximumf>, %412, %cst_93 [2] : vector<1x8x8xf32> to vector<1x8xf32>
    %414 = vector.shape_cast %413 : vector<1x8xf32> to vector<1x8x1xf32>
    %415 = vector.broadcast %414 : vector<1x8x1xf32> to vector<1x8x8xf32>
    %416 = arith.subf %412, %415 : vector<1x8x8xf32>
    %417 = math.exp %416 : vector<1x8x8xf32>
    %cst_94 = arith.constant dense<0.000000e+00> : vector<1x8xf32>
    %418 = vector.multi_reduction <add>, %417, %cst_94 [2] : vector<1x8x8xf32> to vector<1x8xf32>
    %419 = vector.shape_cast %418 : vector<1x8xf32> to vector<1x8x1xf32>
    %cst_95 = arith.constant 1.000000e+00 : f32
    %420 = vector.broadcast %cst_95 : f32 to vector<1x8x1xf32>
    %421 = arith.divf %420, %419 : vector<1x8x1xf32>
    %422 = vector.broadcast %421 : vector<1x8x1xf32> to vector<1x8x8xf32>
    %423 = arith.mulf %417, %422 : vector<1x8x8xf32>
    %424 = vector.shape_cast %423 : vector<1x8x8xf32> to vector<1x8x8x1xf32>
    %425 = vector.shape_cast %424 : vector<1x8x8x1xf32> to vector<1x8x8x1xf32>
    %426 = vector.broadcast %425 : vector<1x8x8x1xf32> to vector<1x8x8x8xf32>
    %427 = vector.extract_strided_slice %299 {offsets = [0, 0, 24], sizes = [1, 8, 8], strides = [1, 1, 1]} : vector<1x8x32xf32> to vector<1x8x8xf32>
    %428 = vector.extract_strided_slice %304 {offsets = [0, 0, 24], sizes = [1, 8, 8], strides = [1, 1, 1]} : vector<1x8x32xf32> to vector<1x8x8xf32>
    "tpu.trace_start"() <{level = 10 : i32, message = "bid,bjd->bij"}> : () -> ()
    %cst_96 = arith.constant dense<0.000000e+00> : vector<1x8x8xf32>
    %429 = tpu.matmul %427, %428, %cst_96 {dimension_numbers = #tpu.dot_dimension_numbers<[2], [2], [1], [1], [0, 0, 0, 1, 1, 1], [0], [0]>} : vector<1x8x8xf32>, vector<1x8x8xf32>, vector<1x8x8xf32> -> vector<1x8x8xf32>
    "tpu.trace_stop"() : () -> ()
    %cst_97 = arith.constant 0.353553385 : f32
    %430 = vector.broadcast %cst_97 : f32 to vector<1x8x8xf32>
    %431 = arith.mulf %429, %430 : vector<1x8x8xf32>
    %cst_98 = arith.constant -1.000000e+09 : f32
    %432 = vector.broadcast %cst_98 : f32 to vector<1x8x8xf32>
    %433 = arith.select %44, %432, %431 : vector<1x8x8xi1>, vector<1x8x8xf32>
    %cst_99 = arith.constant dense<0xFF800000> : vector<1x8xf32>
    %434 = vector.multi_reduction <maximumf>, %433, %cst_99 [2] : vector<1x8x8xf32> to vector<1x8xf32>
    %435 = vector.shape_cast %434 : vector<1x8xf32> to vector<1x8x1xf32>
    %436 = vector.broadcast %435 : vector<1x8x1xf32> to vector<1x8x8xf32>
    %437 = arith.subf %433, %436 : vector<1x8x8xf32>
    %438 = math.exp %437 : vector<1x8x8xf32>
    %cst_100 = arith.constant dense<0.000000e+00> : vector<1x8xf32>
    %439 = vector.multi_reduction <add>, %438, %cst_100 [2] : vector<1x8x8xf32> to vector<1x8xf32>
    %440 = vector.shape_cast %439 : vector<1x8xf32> to vector<1x8x1xf32>
    %cst_101 = arith.constant 1.000000e+00 : f32
    %441 = vector.broadcast %cst_101 : f32 to vector<1x8x1xf32>
    %442 = arith.divf %441, %440 : vector<1x8x1xf32>
    %443 = vector.broadcast %442 : vector<1x8x1xf32> to vector<1x8x8xf32>
    %444 = arith.mulf %438, %443 : vector<1x8x8xf32>
    %445 = vector.shape_cast %444 : vector<1x8x8xf32> to vector<1x8x8x1xf32>
    %446 = vector.shape_cast %445 : vector<1x8x8x1xf32> to vector<1x8x8x1xf32>
    %447 = vector.broadcast %446 : vector<1x8x8x1xf32> to vector<1x8x8x8xf32>
    %448 = tpu.concatenate %384, %405, %426, %447 in 3 : vector<1x8x8x8xf32>, vector<1x8x8x8xf32>, vector<1x8x8x8xf32>, vector<1x8x8x8xf32> -> vector<1x8x8x32xf32>
    %449 = vector.shape_cast %335 : vector<64x32xf32> to vector<1x8x8x32xf32>
    %450 = arith.mulf %448, %449 : vector<1x8x8x32xf32>
    %cst_102 = arith.constant dense<0.000000e+00> : vector<1x8x32xf32>
    %451 = vector.multi_reduction <add>, %450, %cst_102 [2] : vector<1x8x8x32xf32> to vector<1x8x32xf32>
    %452 = vector.shape_cast %451 : vector<1x8x32xf32> to vector<8x32xf32>
    %453 = tpu.concatenate %258, %452 in 1 : vector<8x32xf32>, vector<8x32xf32> -> vector<8x64xf32>
    %454 = arith.truncf %453 : vector<8x64xf32> to vector<8x64xbf16>
    %455 = vector.extract_strided_slice %20 {offsets = [1, 0, 0], sizes = [1, 64, 32], strides = [1, 1, 1]} : vector<2x64x32xbf16> to vector<1x64x32xbf16>
    %456 = vector.shape_cast %455 : vector<1x64x32xbf16> to vector<64x32xbf16>
    %cst_103 = arith.constant dense<0.000000e+00> : vector<8x32xf32>
    %457 = tpu.matmul %454, %456, %cst_103 {dimension_numbers = #tpu.dot_dimension_numbers<[1], [0], [0], [1], [0, 0, 1, 1], [], []>} : vector<8x64xbf16>, vector<64x32xbf16>, vector<8x32xf32> -> vector<8x32xf32>
    %458 = vector.broadcast %265 : vector<1x32xf32> to vector<8x32xf32>
    %459 = arith.addf %457, %458 : vector<8x32xf32>
    %460 = arith.negf %459 : vector<8x32xf32>
    %461 = math.exp %460 : vector<8x32xf32>
    %cst_104 = arith.constant 1.000000e+00 : f32
    %462 = vector.broadcast %cst_104 : f32 to vector<8x32xf32>
    %463 = arith.addf %462, %461 : vector<8x32xf32>
    %464 = arith.divf %462, %463 : vector<8x32xf32>
    %465 = arith.mulf %459, %464 : vector<8x32xf32>
    %466 = arith.truncf %465 : vector<8x32xf32> to vector<8x32xbf16>
    %467 = vector.extract_strided_slice %18 {offsets = [1, 2, 0, 0], sizes = [1, 1, 32, 32], strides = [1, 1, 1, 1]} : vector<2x3x32x32xbf16> to vector<1x1x32x32xbf16>
    %468 = vector.shape_cast %467 : vector<1x1x32x32xbf16> to vector<32x32xbf16>
    %cst_105 = arith.constant dense<0.000000e+00> : vector<8x32xf32>
    %469 = tpu.matmul %466, %468, %cst_105 {dimension_numbers = #tpu.dot_dimension_numbers<[1], [0], [0], [1], [0, 0, 1, 1], [], []>} : vector<8x32xbf16>, vector<32x32xbf16>, vector<8x32xf32> -> vector<8x32xf32>
    %470 = arith.addf %258, %469 : vector<8x32xf32>
    %471 = vector.broadcast %266 : vector<1x32xf32> to vector<8x32xf32>
    %472 = arith.addf %470, %471 : vector<8x32xf32>
    %cst_106 = arith.constant dense<0.000000e+00> : vector<8x32xf32>
    %473 = tpu.matmul %472, %14, %cst_106 {dimension_numbers = #tpu.dot_dimension_numbers<[1], [0], [0], [1], [0, 0, 1, 1], [], []>} : vector<8x32xf32>, vector<32x32xf32>, vector<8x32xf32> -> vector<8x32xf32>
    %474 = vector.broadcast %7 : vector<1x32xf32> to vector<8x32xf32>
    %475 = arith.addf %473, %474 : vector<8x32xf32>
    %476 = arith.negf %475 : vector<8x32xf32>
    %477 = math.exp %476 : vector<8x32xf32>
    %cst_107 = arith.constant 1.000000e+00 : f32
    %478 = vector.broadcast %cst_107 : f32 to vector<8x32xf32>
    %479 = arith.addf %478, %477 : vector<8x32xf32>
    %480 = arith.divf %478, %479 : vector<8x32xf32>
    %481 = arith.mulf %475, %480 : vector<8x32xf32>
    %482 = vector.broadcast %8 : vector<1x32xf32> to vector<8x32xf32>
    %483 = arith.mulf %481, %482 : vector<8x32xf32>
    %cst_108 = arith.constant dense<0.000000e+00> : vector<8xf32>
    %484 = vector.multi_reduction <add>, %483, %cst_108 [1] : vector<8x32xf32> to vector<8xf32>
    %485 = vector.shape_cast %484 : vector<8xf32> to vector<8x1xf32>
    %486 = vector.broadcast %9 : vector<1x1xf32> to vector<8x1xf32>
    %487 = arith.addf %485, %486 : vector<8x1xf32>
    %488 = vector.shape_cast %487 : vector<8x1xf32> to vector<1x8x1xf32>
    %489 = vector.broadcast %488 : vector<1x8x1xf32> to vector<1x8x3xf32>
    %490 = arith.mulf %489, %2 : vector<1x8x3xf32>
    %491 = arith.addf %363, %490 : vector<1x8x3xf32>
    %c0_109 = arith.constant 0 : index
    %c0_110 = arith.constant 0 : index
    %c0_111 = arith.constant 0 : index
    %492 = vector.load %arg8[%c0_109, %c0_110, %c0_111] : memref<1x8x3xf32, #tpu.memory_space<vmem>>, vector<1x8x3xf32>
    tpu.vector_store %arg8[%c0_109, %c0_110, %c0_111], %491 {strides = array<i32>} : memref<1x8x3xf32, #tpu.memory_space<vmem>>, vector<1x8x3xf32>,
    return
  }
  func.func @transform_0(%arg0: i32) -> (i32, i32, i32) {
    %c0_i32 = arith.constant 0 : i32
    %c0_i32_0 = arith.constant 0 : i32
    %c0_i32_1 = arith.constant 0 : i32
    return %arg0, %c0_i32, %c0_i32_0 : i32, i32, i32
  }
  func.func @transform_1(%arg0: i32) -> (i32, i32, i32) {
    %c0_i32 = arith.constant 0 : i32
    %c0_i32_0 = arith.constant 0 : i32
    %c0_i32_1 = arith.constant 0 : i32
    %c0_i32_2 = arith.constant 0 : i32
    return %c0_i32, %c0_i32_0, %c0_i32_1 : i32, i32, i32
  }
  func.func @transform_2(%arg0: i32) -> (i32, i32, i32, i32) {
    %c0_i32 = arith.constant 0 : i32
    %c0_i32_0 = arith.constant 0 : i32
    %c0_i32_1 = arith.constant 0 : i32
    %c0_i32_2 = arith.constant 0 : i32
    %c0_i32_3 = arith.constant 0 : i32
    return %c0_i32, %c0_i32_0, %c0_i32_1, %c0_i32_2 : i32, i32, i32, i32
  }
  func.func @transform_3(%arg0: i32) -> (i32, i32, i32) {
    %c0_i32 = arith.constant 0 : i32
    %c0_i32_0 = arith.constant 0 : i32
    %c0_i32_1 = arith.constant 0 : i32
    %c0_i32_2 = arith.constant 0 : i32
    return %c0_i32, %c0_i32_0, %c0_i32_1 : i32, i32, i32
  }
  func.func @transform_4(%arg0: i32) -> (i32, i32, i32) {
    %c0_i32 = arith.constant 0 : i32
    %c0_i32_0 = arith.constant 0 : i32
    %c0_i32_1 = arith.constant 0 : i32
    %c0_i32_2 = arith.constant 0 : i32
    return %c0_i32, %c0_i32_0, %c0_i32_1 : i32, i32, i32
  }
  func.func @transform_5(%arg0: i32) -> (i32, i32, i32) {
    %c0_i32 = arith.constant 0 : i32
    %c0_i32_0 = arith.constant 0 : i32
    %c0_i32_1 = arith.constant 0 : i32
    %c0_i32_2 = arith.constant 0 : i32
    return %c0_i32, %c0_i32_0, %c0_i32_1 : i32, i32, i32
  }
  func.func @transform_6(%arg0: i32) -> (i32, i32) {
    %c0_i32 = arith.constant 0 : i32
    %c0_i32_0 = arith.constant 0 : i32
    %c0_i32_1 = arith.constant 0 : i32
    return %c0_i32, %c0_i32_0 : i32, i32
  }
  func.func @transform_7(%arg0: i32) -> (i32, i32, i32) {
    %c0_i32 = arith.constant 0 : i32
    %c0_i32_0 = arith.constant 0 : i32
    %c0_i32_1 = arith.constant 0 : i32
    return %arg0, %c0_i32, %c0_i32_0 : i32, i32, i32
  }
}

</mosaic_0001>

<bundles_post_ra>
// kernel: tpu_custom_call.1
= control target key start
LH: loop header
LB: loop body
LE: loop exit
PB: predicated region body
PF: predicated region fallthrough
CT: control target
= control target key end

     0   :  { %12 = vsyncpa [#allocation3], 0  ;;  %s5557_s0 = inlined_call_operand.vmem [shape: f32[2,8,6], index: 0, kind: input, shape index: {}]   ;;  %s5558_s1 = inlined_call_operand.hbm [shape: f32[2,32,128], index: 1, kind: input, shape index: {}]   ;;  %s5559_s2 = inlined_call_operand.vmem [shape: f32[2,3,32,32], index: 2, kind: input, shape index: {}]   ;;  %s5560_s3 = inlined_call_operand.vmem [shape: f32[2,64,32], index: 3, kind: input, shape index: {}]   ;;  %s5561_s4 = inlined_call_operand.vmem [shape: f32[2,12,32], index: 4, kind: input, shape index: {}]   ;;  %s5562_s5 = inlined_call_operand.hbm [shape: f32[2,32,32], index: 5, kind: input, shape index: {}]   ;;  %s5563_s6 = inlined_call_operand.vmem [shape: f32[6,32], index: 6, kind: input, shape index: {}]   ;;  %s5564_s7 = inlined_call_operand.vmem [shape: f32[2,8,3], index: 7, kind: output, shape index: {}]  }
   0x1   :  { %13 = vsyncpa [#allocation5], 0  ;;  %s4357_s24 = smov 0  }
   0x2 LB: > { %s213_s27 = sshll.u32 %s5558_s1, 4  ;;  %s3810_s28 = sadd.s32 4294967295, %s4300_s24   ;;  %s4300_s24 = sphi %s4357_s24, %s19_s24   ;;  %s214_s27 = int_to_ptr.hbm [resolvable:$true] %s213_s27 }
   0x3   : > { %p3812_p0 = scmp.ge.s32.totalorder %s4300_s24, 1  ;;  %p202_p1 = scmp.lt.s32.totalorder %s4300_s24, 3 }
   0x4   : > { %p3936_p2 = scmp.eq.s32.totalorder %s3810_s28, 0  ;;  %s4302_s30 = smov [#allocation2]  }
   0x5   : > { %p4368_p3 = pnand %p3812_p0, %p202_p1  ;;  %s215_s8 = sshll.u32 %s4302_s30, 4  ;;  %s216_s8 = int_to_ptr.vmem [resolvable:$true] %s215_s8 }
   0x6   : > { %s236_s11 = sshll.u32 %s5562_s5, 4  ;;  %s4303_s12 = smov [#allocation4]   ;;  %s237_s11 = int_to_ptr.hbm [resolvable:$true] %s236_s11 }
   0x7   : > { %p3929_p4 = pneg %p4368_p3  ;;  %s238_s13 = sshll.u32 %s4303_s12, 4  ;;  %s239_s13 = int_to_ptr.vmem [resolvable:$true] %s238_s13 }
   0x8   : > { %s4304_s14 = smov 128   ;;  %s4305_s15 = smov 8  }
   0x9   : > { %p3930_p5 = pnand %p3936_p2, %p3929_p4  ;;  %264 = sbr.rel (%p4368_p3) target bundleno = 5239 (0x1477), region = 48 }
   0xb   : > { %3932 = dma.hbm_to_vmem [thread:$0]  (!%p3930_p5), %s214_s27, 1024, %s216_s8, [#allocation3], %s4304_s14, %s4304_s14, %s4305_s15  }
   0xc   : > { %3935 = dma.hbm_to_vmem [thread:$0]  (!%p3930_p5), %s237_s11, 1024, %s239_s13, [#allocation5], %s4304_s14, %s4304_s14, %s4305_s15  }
   0xe   : > { %4291 = dma.done.wait (%p3936_p2), [#allocation3], 1024  }
   0xf   : > { %4293 = vsyncadd (%p3936_p2), [#allocation3], 4294966272 }
  0x10   : > { %4295 = dma.done.wait (%p3936_p2), [#allocation5], 1024  }
  0x11   : > { %4297 = vsyncadd (%p3936_p2), [#allocation5], 4294966272  ;;  %p300_p6 = scmp.lt.s32.totalorder %s3810_s28, 1  ;;  %s4306_s20 = smov 125   ;;  %vm5565_vm0 = vcmask 23552   ;;  %v314_v4 = vld [vmem:[#allocation4 + $0x18] sm:$0xff]  ;;  %v489_v39 = vlaneseq }
  0x12   : > { %v313_v5 = vld [vmem:[#allocation4 + $0x10] sm:$0xff]  ;;  %481 = vmatpush.msra.mxu0 %v314_v4  ;;  %v312_v6 = vld [vmem:[#allocation4 + $0x8] sm:$0xff]  ;;  %v311_v7 = vld [vmem:[#allocation4] sm:$0xff]  ;;  %vm465_vm7 = vcmask 261120   ;;  %s4307_s26 = smov 32   ;;  %s4308_s27 = smov 96  }
  0x13   : > { %s5614_s28 = smov (!%p300_p6, %s3810_s28), 1  ;;  %v4402_v14 = vld [vmem:[%s5563_s6] sm:$0x3f]  ;;  %v4408_v40 = vshrl.u32 %v489_v39, 7  ;;  %v321_v41 = vld [vmem:[#allocation2 + $0x10] sm:$0xff]  ;;  %v322_v42 = vld [vmem:[#allocation2 + $0x18] sm:$0xff] }
  0x14   : > { %s5566_s16 = sshll.u32 %s5614_s28, 3  ;;  %482 = vmatpush.msra.mxu0 %v313_v5  ;;  %v440_v17 = vperm.slane %v4402_v14, 0  ;;  %v442_v20 = vperm.slane %v4402_v14, 1  ;;  %v4413_v43 = vld [vmem:[%s5561_s4] sm:$0xff]  ;;  %v329_v44 = vpack.c.bf16 %v321_v41, %v321_v41  ;;  %v330_v45 = vpack.c.bf16 %v322_v42, %v322_v42  ;;  %v320_v57 = vld [vmem:[#allocation2 + $0x8] sm:$0xff]  ;;  %s4309_s29 = smov 64  }
  0x15   : > { %s4392_s19 = scalar_lea.vmem %s5557_s0, %s5566_s16  ;;  %v571_v46 = vperm.slane %v4413_v43, 1  ;;  %3964 = vset.pattern.permute.xlu1 %v4408_v40  ;;  %3963 = vset.pattern.permute.xlu2 %v4408_v40  ;;  %v4419_v50 = vand.u32 127, %v489_v39  ;;  %v319_v56 = vld [vmem:[#allocation2] sm:$0xff]  ;;  %v328_v60 = vpack.c.bf16 %v320_v57, %v320_v57  ;;  %v464_v4 = vperm.slane %v4402_v14, 2  ;;  %s4311_s12 = smov 24  }
  0x16   : > { %v309_v0 = vld [vmem:[%s4392_s19] sm:$0xff]  ;;  %483 = vmatpush.msra.mxu0 %v312_v6  ;;  %v547_v47 = vunpack.c.l.b16 %v329_v44  ;;  %v548_v48 = vunpack.c.l.b16 %v330_v45  ;;  %v327_v59 = vpack.c.bf16 %v319_v56, %v319_v56  ;;  %s4312_s13 = smov 56   ;;  %s4313_s14 = smov 8  }
  0x17   : > { %v419_v1 = vmul.f32 %v309_v0, %v309_v0  ;;  %3823 = vmatpush.xpose.msk.msra.mxu1 %vm5565_vm0, %v309_v0  ;;  %v546_v62 = vunpack.c.l.b16 %v328_v60  ;;  %s4314_s15 = smov 16   ;;  %s4315_s17 = smov 40  }
  0x18   : > { %484 = vmatpush.msra.mxu0 %v311_v7  ;;  %v550_v49 = vpack.c.b16 %v548_v48, %v547_v47  ;;  %v545_v61 = vunpack.c.l.b16 %v327_v59  ;;  %s4316_s18 = smov 48   ;;  %s5611_s9 = sshll.u32 %s5614_s28, 3 }
  0x19   : > { %421 = vrot.lane.b32.xlu0 %v419_v1, %s4306_s20  ;;  %v494_v24 = vsel %vm5565_vm0, %v419_v1, 0.0  ;;  %s307_s11 = scalar_lea.vmem %s5564_s7, %s5611_s9 }
  0x1a   : > { %3824 = vmatmul.msk.f32.vlgmr.msra.gmra.mxu1 %vm5565_vm0, %v309_v0  ;;  %1429 = vmatpush.msrb.mxu0 %v309_v0  ;;  %v549_v0 = vpack.c.b16 %v546_v62, %v545_v61 }
  0x1b   : > { %495 = vadd.xlane.f32.xlu1 %v494_v24  ;;  %562 = vmatpush.bf16.msra.mxu2 %v550_v49  ;;  %v338_v24 = vld [vmem:[%s5559_s2 + $0x18] sm:$0xff] }
  0x1f   : > { %563 = vmatpush.bf16.msra.mxu2 %v549_v0 }
  0x34   : > { %573 = vrot.lane.b32.xlu1 %v571_v46, %s4307_s26 }
  0x8b   : > { %v422_v2 = vpop.permute.xlu0 %421 }
  0x8c   : > { %v425_v3 = vsel %vm5565_vm0, %v422_v2, 0.0 }
  0x8d   : > { %426 = vadd.xlane.f32.xlu0 %v425_v3  ;;  %v583_v3 = vperm.slane %v4413_v43, 3 }
  0x8e   : > { %v496_v52 = vpop.xlane.xlu1 %495 }
  0x8f   : > { %v521_v53 = vperm.slane %v496_v52, %v4419_v50 }
  0x91   : > { %v536_v55 = vadd.f32 %v521_v53, %v496_v52 }
  0x97   : > { %v517_v51 = vpop.f32.mrf.mxu1 }
  0x98   : > { %v537_v54 = vmul.f32 2.0, %v517_v51 }
  0x9a   : > { %v538_v58 = vsub.f32 %v536_v55, %v537_v54 }
  0x9c   : > { %v539_v63 = vmax.f32 %v538_v58, 0.0 }
  0x9e   : > { %v653_v1 = vperm.slane %v539_v63, 4  ;;  %v667_v2 = vperm.slane %v539_v63, 6  ;;  %v639_v14 = vperm.slane %v539_v63, 2 }
  0xa0   : > { %658 = vperm.xlu1 %3964, %v653_v1  }
  0xa8   : > { %672 = vperm.xlu1 %3964, %v667_v2  }
  0xb0   : > { %585 = vrot.lane.b32.xlu1 %v583_v3, %s4308_s27 }
 0x100   : > { %v427_v8 = vpop.xlane.xlu0 %426 }
 0x101   : > { %3978 = vrsqrt.f32 %v427_v8  ;;  %vm435_vm1 = vcmp.eq.f32.partialorder %v427_v8, inf  ;;  %v438_v18 = vand.u32 2147483648, %v427_v8  ;;  %vm437_vm2 = vcmp.eq.f32.partialorder %v427_v8, 0.0 }
 0x107   : > { %v3979_v9 = vpop.eup %3978 }
 0x108   : > { %v429_v10 = vmul.f32 %v3979_v9, %v427_v8 }
 0x10a   : > { %v430_v11 = vmul.f32 %v3979_v9, %v429_v10  ;;  %v574_v10 = vpop.permute.xlu1 %573 }
 0x10c   : > { %v431_v12 = vmul.f32 0.5, %v430_v11 }
 0x10e   : > { %v432_v13 = vsub.f32 1.5, %v431_v12 }
 0x110   : > { %v433_v15 = vmul.f32 %v3979_v9, %v432_v13  ;;  %v632_v9 = vperm.slane %v539_v63, 1 }
 0x112   : > { %v434_v16 = vmul.f32 %v433_v15, %v427_v8  ;;  %v646_v15 = vperm.slane %v539_v63, 3  ;;  %v659_v58 = vpop.permute.xlu1 %658 }
 0x114   : > { %v436_v19 = vsel %vm435_vm1, %v427_v8, %v434_v16  ;;  %v625_v8 = vperm.slane %v539_v63, 0  ;;  %v660_v16 = vperm.slane %v539_v63, 5 }
 0x115   : > { %v439_v21 = vsel %vm437_vm2, %v438_v18, %v436_v19  ;;  %v577_v18 = vperm.slane %v4413_v43, 2 }
 0x116   : > { %v441_v22 = vmul.f32 %v440_v17, %v439_v21  ;;  %630 = vperm.xlu2 %3963, %v625_v8   ;;  %v674_v17 = vperm.slane %v539_v63, 7 }
 0x118   : > { %v443_v23 = vadd.f32 %v442_v20, %v441_v22  ;;  %v569_v20 = vperm.slane %v4413_v43, 0 }
 0x11a   : > { %v3821_v25 = vmul.f32 -1.442695, %v443_v23 }
 0x11c   : > { %3980 = vpow2.f32 %v3821_v25  ;;  %v4447_v25 = vperm.slane %v4413_v43, 4 }
 0x11e   : > { %637 = vperm.xlu2 %3963, %v632_v9   ;;  %v686_v61 = vmul.f32 %v4447_v25, %v659_v58 }
 0x122   : > { %v3981_v26 = vpop.eup %3980 }
 0x123   : > { %v447_v27 = vadd.f32 1.0, %v3981_v26 }
 0x125   : > { %3982 = vrcp.f32 %v447_v27  ;;  %v459_v31 = vand.u32 2147483648, %v447_v27  ;;  %v457_v33 = vand.u32 2147483647, %v447_v27  ;;  %vm453_vm4 = vweird.f32 %v447_v27 }
 0x127   : > { %v460_v35 = vor.u32 1.1754944e-38, %v459_v31  ;;  %vm458_vm6 = vcmp.eq.f32.partialorder %v457_v33, 8.507059e+37  ;;  %v336_v33 = vld [vmem:[%s5559_s2 + $0x8] sm:$0xff] }
 0x128   : > { %v360_v39 = vpack.c.bf16 %v336_v33, %v336_v33 }
 0x12a   : > { %v892_v47 = vunpack.c.l.b16 %v360_v39 }
 0x12b   : > { %v3983_v28 = vpop.eup %3982 }
 0x12c   : > { %v449_v29 = vmul.f32 %v3983_v28, %v447_v27  ;;  %vm454_vm3 = vweird.f32 %v3983_v28  ;;  %v362_v27 = vpack.c.bf16 %v338_v24, %v338_v24  ;;  %v673_v24 = vpop.permute.xlu1 %672 }
 0x12d   : > { %vm455_vm5 = vmor %vm453_vm4, %vm454_vm3 }
 0x12e   : > { %v450_v30 = vsub.f32 1.0, %v449_v29 }
 0x130   : > { %v451_v32 = vmul.f32 %v3983_v28, %v450_v30  ;;  %v894_v30 = vunpack.c.l.b16 %v362_v27 }
 0x132   : > { %v452_v34 = vadd.f32 %v3983_v28, %v451_v32  ;;  %v335_v32 = vld [vmem:[%s5559_s2] sm:$0xff] }
 0x134   : > { %v456_v36 = vsel %vm455_vm5, %v3983_v28, %v452_v34 }
 0x135   : > { %v461_v37 = vsel %vm458_vm6, %v460_v35, %v456_v36 }
 0x136   : > { %v463_v38 = vmul.f32 %v461_v37, %v443_v23  ;;  %v337_v23 = vld [vmem:[%s5559_s2 + $0x10] sm:$0xff] }
 0x137   : > { %v361_v26 = vpack.c.bf16 %v337_v23, %v337_v23 }
 0x138   : > { %3822 = vmatmul.msk.f32.vlgmr.msra.gmra.mxu0 %vm465_vm7, %v463_v38  ;;  %v359_v38 = vpack.c.bf16 %v335_v32, %v335_v32 }
 0x139   : > { %v893_v29 = vunpack.c.l.b16 %v361_v26 }
 0x13a   : > { %v891_v46 = vunpack.c.l.b16 %v359_v38 }
 0x13b   : > { %v896_v37 = vpack.c.b16 %v894_v30, %v893_v29 }
 0x13c   : > { %v895_v52 = vpack.c.b16 %v892_v47, %v891_v46 }
 0x13d   : > { %917 = vmatpush.bf16.msra.mxu3 %v896_v37 }
 0x141   : > { %918 = vmatpush.bf16.msra.mxu3 %v895_v52 }
 0x170   : > { %v631_v19 = vpop.permute.xlu2 %630 }
 0x171   : > { %v682_v35 = vmul.f32 %v4447_v25, %v631_v19 }
 0x178   : > { %v638_v21 = vpop.permute.xlu2 %637 }
 0x179   : > { %v683_v42 = vmul.f32 %v4447_v25, %v638_v21 }
 0x1b5   : > { %v486_v5 = vpop.f32.mrf.mxu0 }
 0x1b6   : > { %v4425_v6 = vadd.f32 %v486_v5, %v464_v4 }
 0x1b8   : > { %v540_v7 = vpack.c.bf16 %v4425_v6, %v4425_v6 }
 0x1ba   : > { %3825 = vmatmul.msk.bf16.vlgmr.msra.gmra.mxu2 %vm465_vm7, %v540_v7 }
 0x23d   : > { %v4430_v11 = vpop.f32.mrf.mxu2 }
 0x23e   : > { %v576_v12 = vadd.f32 %v574_v10, %v4430_v11  ;;  %v4438_v22 = vadd.f32 %v569_v20, %v4430_v11 }
 0x240   : > { %614 = vrot.lane.b32.xlu2 %v576_v12, %s4308_s27  ;;  %v590_v28 = vrot.slane %v4438_v22, 1  ;;  %v597_v34 = vperm.slane %v4438_v22, 0  ;;  %v591_v44 = vrot.slane %v4438_v22, 2  ;;  %v593_v49 = vrot.slane %v4438_v22, 4 }
 0x241   : > { %v592_v0 = vrot.slane %v4438_v22, 3 }
 0x242   : > { %v598_v36 = vperm.slane %v590_v28, 0  ;;  %v599_v54 = vperm.slane %v591_v44, 0  ;;  %v601_v57 = vperm.slane %v593_v49, 0  ;;  %v688_v28 = vmul.f32 %v4447_v25, %v673_v24 }
 0x243   : > { %v600_v5 = vperm.slane %v592_v0, 0 }
 0x245   : > { %v567_v13 = vpop.f32.mrf.mxu2 }
 0x248   : > { %644 = vperm.xlu2 %3963, %v639_v14   ;;  %v595_v14 = vrot.slane %v4438_v22, 6 }
 0x24a   : > { %v603_v21 = vperm.slane %v595_v14, 0 }
 0x250   : > { %651 = vperm.xlu2 %3963, %v646_v15  }
 0x258   : > { %665 = vperm.xlu2 %3963, %v660_v16   ;;  %v594_v16 = vrot.slane %v4438_v22, 5 }
 0x25a   : > { %v602_v26 = vperm.slane %v594_v16, 0 }
 0x260   : > { %679 = vperm.xlu2 %3963, %v674_v17   ;;  %v596_v17 = vrot.slane %v4438_v22, 7 }
 0x262   : > { %v604_v30 = vperm.slane %v596_v17, 0 }
 0x268   : > { %579 = vrot.lane.b32.xlu2 %v577_v18, %s4309_s29 }
 0x29a   : > { %v4450_v31 = vpop.permute.xlu2 %614 }
 0x29b   : > { %v617_v41 = vadd.f32 %v4450_v31, %v597_v34  ;;  %v618_v45 = vadd.f32 %v4450_v31, %v598_v36  ;;  %v619_v59 = vadd.f32 %v4450_v31, %v599_v54  ;;  %v621_v62 = vadd.f32 %v4450_v31, %v601_v57 }
 0x29c   : > { %v620_v10 = vadd.f32 %v4450_v31, %v600_v5  ;;  %v623_v22 = vadd.f32 %v4450_v31, %v603_v21  ;;  %v622_v32 = vadd.f32 %v4450_v31, %v602_v26  ;;  %v624_v37 = vadd.f32 %v4450_v31, %v604_v30 }
 0x29d   : > { %v4464_v48 = vadd.f32 %v682_v35, %v617_v41  ;;  %v4467_v51 = vadd.f32 %v683_v42, %v618_v45  ;;  %v4479_v3 = vadd.f32 %v686_v61, %v621_v62 }
 0x29e   : > { %v4504_v45 = vadd.f32 %v688_v28, %v623_v22 }
 0x29f   : > { %v3826_v53 = vmul.f32 -1.442695, %v4464_v48  ;;  %v3827_v55 = vmul.f32 -1.442695, %v4467_v51  ;;  %v3830_v13 = vmul.f32 -1.442695, %v4479_v3 }
 0x2a0   : > { %v3832_v5 = vmul.f32 -1.442695, %v4504_v45 }
 0x2a1   : > { %3984 = vpow2.f32 %v3826_v53 }
 0x2a2   : > { %v645_v56 = vpop.permute.xlu2 %644  ;;  %3986 = vpow2.f32 %v3827_v55 }
 0x2a3   : > { %v684_v60 = vmul.f32 %v4447_v25, %v645_v56 }
 0x2a5   : > { %v4475_v63 = vadd.f32 %v684_v60, %v619_v59 }
 0x2a7   : > { %v3828_v1 = vmul.f32 -1.442695, %v4475_v63  ;;  %v3985_v2 = vpop.eup %3984 }
 0x2a8   : > { %v3987_v4 = vpop.eup %3986  ;;  %v722_v7 = vadd.f32 1.0, %v3985_v2 }
 0x2a9   : > { %3988 = vpow2.f32 %v3828_v1  ;;  %v4481_v9 = vadd.f32 1.0, %v3987_v4 }
 0x2aa   : > { %v652_v8 = vpop.permute.xlu2 %651  ;;  %3990 = vrcp.f32 %v722_v7  ;;  %vm735_vm8 = vweird.f32 %v722_v7  ;;  %v739_v42 = vand.u32 2147483647, %v722_v7  ;;  %v741_v44 = vand.u32 2147483648, %v722_v7 }
 0x2ab   : > { %v685_v12 = vmul.f32 %v4447_v25, %v652_v8  ;;  %3992 = vrcp.f32 %v4481_v9  ;;  %vm750_vm10 = vweird.f32 %v4481_v9  ;;  %v754_v31 = vand.u32 2147483647, %v4481_v9 }
 0x2ac   : > { %3994 = vpow2.f32 %v3830_v13  ;;  %v756_v55 = vand.u32 2147483648, %v4481_v9  ;;  %vm740_vm13 = vcmp.eq.f32.partialorder %v739_v42, 8.507059e+37  ;;  %v742_v59 = vor.u32 1.1754944e-38, %v741_v44 }
 0x2ad   : > { %v4488_v15 = vadd.f32 %v685_v12, %v620_v10  ;;  %vm755_vm15 = vcmp.eq.f32.partialorder %v754_v31, 8.507059e+37 }
 0x2ae   : > { %v757_v4 = vor.u32 1.1754944e-38, %v756_v55 }
 0x2af   : > { %v3989_v18 = vpop.eup %3988  ;;  %v3829_v19 = vmul.f32 -1.442695, %v4488_v15 }
 0x2b0   : > { %v4493_v20 = vadd.f32 1.0, %v3989_v18  ;;  %v3991_v23 = vpop.eup %3990 }
 0x2b1   : > { %3996 = vpow2.f32 %v3829_v19  ;;  %v3993_v27 = vpop.eup %3992  ;;  %v731_v34 = vmul.f32 %v3991_v23, %v722_v7  ;;  %vm736_vm9 = vweird.f32 %v3991_v23 }
 0x2b2   : > { %3998 = vrcp.f32 %v4493_v20  ;;  %v666_v29 = vpop.permute.xlu2 %665  ;;  %v746_v35 = vmul.f32 %v3993_v27, %v4481_v9  ;;  %v3995_v41 = vpop.eup %3994  ;;  %vm751_vm11 = vweird.f32 %v3993_v27  ;;  %vm737_vm12 = vmor %vm735_vm8, %vm736_vm9  ;;  %vm765_vm2 = vweird.f32 %v4493_v20 }
 0x2b3   : > { %v687_v33 = vmul.f32 %v4447_v25, %v666_v29  ;;  %v732_v38 = vsub.f32 1.0, %v731_v34  ;;  %v4518_v60 = vadd.f32 1.0, %v3995_v41  ;;  %vm752_vm14 = vmor %vm750_vm10, %vm751_vm11  ;;  %v769_v21 = vand.u32 2147483647, %v4493_v20 }
 0x2b4   : > { %v747_v39 = vsub.f32 1.0, %v746_v35 }
 0x2b5   : > { %v4501_v36 = vadd.f32 %v687_v33, %v622_v32  ;;  %v733_v49 = vmul.f32 %v3991_v23, %v732_v38  ;;  %vm770_vm5 = vcmp.eq.f32.partialorder %v769_v21, 8.507059e+37 }
 0x2b6   : > { %v748_v52 = vmul.f32 %v3993_v27, %v747_v39 }
 0x2b7   : > { %v3997_v46 = vpop.eup %3996  ;;  %v3831_v47 = vmul.f32 -1.442695, %v4501_v36  ;;  %v734_v57 = vadd.f32 %v3991_v23, %v733_v49 }
 0x2b8   : > { %v4507_v53 = vpop.eup %3998  ;;  %v4509_v54 = vadd.f32 1.0, %v3997_v46  ;;  %v749_v1 = vadd.f32 %v3993_v27, %v748_v52 }
 0x2b9   : > { %v761_v56 = vmul.f32 %v4507_v53, %v4493_v20  ;;  %4000 = vpow2.f32 %v3831_v47  ;;  %v738_v0 = vsel %vm737_vm12, %v3991_v23, %v734_v57  ;;  %vm766_vm1 = vweird.f32 %v4507_v53 }
 0x2ba   : > { %4002 = vrcp.f32 %v4509_v54  ;;  %v680_v58 = vpop.permute.xlu2 %679  ;;  %v743_v2 = vsel %vm740_vm13, %v742_v59, %v738_v0  ;;  %v753_v7 = vsel %vm752_vm14, %v3993_v27, %v749_v1  ;;  %v771_v23 = vand.u32 2147483648, %v4493_v20  ;;  %vm4544_vm3 = vmor %vm765_vm2, %vm766_vm1 }
 0x2bb   : > { %v762_v61 = vsub.f32 1.0, %v761_v56  ;;  %v689_v62 = vmul.f32 %v4447_v25, %v680_v58  ;;  %v850_v10 = vmul.f32 %v743_v2, %v4464_v48  ;;  %v758_v13 = vsel %vm755_vm15, %v757_v4, %v753_v7 }
 0x2bc   : > { %4004 = vrcp.f32 %v4518_v60  ;;  %v851_v17 = vmul.f32 %v758_v13, %v4467_v51  ;;  %v784_v51 = vand.u32 2147483647, %v4509_v54  ;;  %v786_v26 = vand.u32 2147483648, %v4509_v54 }
 0x2bd   : > { %v4524_v8 = vadd.f32 %v689_v62, %v624_v37  ;;  %v763_v12 = vmul.f32 %v4507_v53, %v762_v61  ;;  %v858_v18 = vpack.c.bf16 %v850_v10, %v850_v10  ;;  %4006 = vpow2.f32 %v3832_v5 }
 0x2be   : > { %v859_v27 = vpack.c.bf16 %v851_v17, %v851_v17  ;;  %v772_v35 = vor.u32 1.1754944e-38, %v771_v23  ;;  %vm780_vm6 = vweird.f32 %v4509_v54  ;;  %vm785_vm9 = vcmp.eq.f32.partialorder %v784_v51, 8.507059e+37 }
 0x2bf   : > { %v4001_v14 = vpop.eup %4000  ;;  %v3833_v25 = vmul.f32 -1.442695, %v4524_v8  ;;  %v764_v48 = vadd.f32 %v4507_v53, %v763_v12  ;;  %v875_v28 = vunpack.c.l.b16 %v858_v18  ;;  %v787_v39 = vor.u32 1.1754944e-38, %v786_v26 }
 0x2c0   : > { %v4003_v16 = vpop.eup %4002  ;;  %v4530_v9 = vadd.f32 1.0, %v4001_v14  ;;  %v876_v33 = vunpack.c.l.b16 %v859_v27  ;;  %vm795_vm14 = vweird.f32 %v4518_v60  ;;  %v801_v7 = vand.u32 2147483648, %v4518_v60 }
 0x2c1   : > { %v776_v19 = vmul.f32 %v4003_v16, %v4509_v54  ;;  %4008 = vpow2.f32 %v3833_v25  ;;  %vm781_vm4 = vweird.f32 %v4003_v16  ;;  %v768_v20 = vsel %vm4544_vm3, %v4507_v53, %v764_v48 }
 0x2c2   : > { %4010 = vrcp.f32 %v4530_v9  ;;  %v4542_v29 = vpop.eup %4004  ;;  %vm782_vm8 = vmor %vm780_vm6, %vm781_vm4  ;;  %v883_v41 = vpack.c.b16 %v876_v33, %v875_v28  ;;  %v773_v44 = vsel %vm770_vm5, %v772_v35, %v768_v20  ;;  %vm810_vm12 = vweird.f32 %v4530_v9 }
 0x2c3   : > { %v777_v24 = vsub.f32 1.0, %v776_v19  ;;  %v4007_v32 = vpop.eup %4006  ;;  %v791_v42 = vmul.f32 %v4542_v29, %v4518_v60  ;;  %v852_v55 = vmul.f32 %v773_v44, %v4475_v63  ;;  %vm796_vm11 = vweird.f32 %v4542_v29 }
 0x2c4   : > { %3834 = vmatmul.msk.bf16.vlgmr.msra.gmra.mxu3 %vm465_vm7, %v883_v41  ;;  %v4559_v31 = vadd.f32 1.0, %v4007_v32  ;;  %v814_v63 = vand.u32 2147483647, %v4530_v9  ;;  %v799_v14 = vand.u32 2147483647, %v4518_v60  ;;  %vm797_vm15 = vmor %vm795_vm14, %vm796_vm11  ;;  %v802_v18 = vor.u32 1.1754944e-38, %v801_v7 }
 0x2c5   : > { %v778_v22 = vmul.f32 %v4003_v16, %v777_v24  ;;  %v792_v56 = vsub.f32 1.0, %v791_v42  ;;  %v860_v59 = vpack.c.bf16 %v852_v55, %v852_v55 }
 0x2c6   : > { %vm815_vm1 = vcmp.eq.f32.partialorder %v814_v63, 8.507059e+37  ;;  %vm800_vm2 = vcmp.eq.f32.partialorder %v799_v14, 8.507059e+37  ;;  %v340_v63 = vld [vmem:[%s5559_s2 + $0x28] sm:$0xff] }
 0x2c7   : > { %v4009_v34 = vpop.eup %4008  ;;  %v779_v37 = vadd.f32 %v4003_v16, %v778_v22  ;;  %v793_v61 = vmul.f32 %v4542_v29, %v792_v56  ;;  %v877_v2 = vunpack.c.l.b16 %v860_v59  ;;  %v364_v7 = vpack.c.bf16 %v340_v63, %v340_v63 }
 0x2c8   : > { %v4011_v38 = vpop.eup %4010  ;;  %v4555_v49 = vadd.f32 1.0, %v4009_v34 }
 0x2c9   : > { %v783_v46 = vsel %vm782_vm8, %v4003_v16, %v779_v37  ;;  %v806_v47 = vmul.f32 %v4011_v38, %v4530_v9  ;;  %vm811_vm10 = vweird.f32 %v4011_v38  ;;  %v794_v4 = vadd.f32 %v4542_v29, %v793_v61 }
 0x2ca   : > { %v788_v52 = vsel %vm785_vm9, %v787_v39, %v783_v46  ;;  %4012 = vrcp.f32 %v4555_v49  ;;  %vm812_vm13 = vmor %vm810_vm12, %vm811_vm10  ;;  %vm840_vm5 = vweird.f32 %v4555_v49  ;;  %v844_v30 = vand.u32 2147483647, %v4555_v49 }
 0x2cb   : > { %v853_v53 = vmul.f32 %v788_v52, %v4488_v15  ;;  %v807_v54 = vsub.f32 1.0, %v806_v47  ;;  %4014 = vrcp.f32 %v4559_v31  ;;  %v816_v15 = vand.u32 2147483648, %v4530_v9 }
 0x2cc   : > { %v798_v16 = vsel %vm797_vm15, %v4542_v29, %v794_v4  ;;  %v846_v29 = vand.u32 2147483648, %v4555_v49  ;;  %vm825_vm8 = vweird.f32 %v4559_v31  ;;  %vm845_vm10 = vcmp.eq.f32.partialorder %v844_v30, 8.507059e+37 }
 0x2cd   : > { %v861_v57 = vpack.c.bf16 %v853_v53, %v853_v53  ;;  %v808_v58 = vmul.f32 %v4011_v38, %v807_v54  ;;  %v817_v25 = vor.u32 1.1754944e-38, %v816_v15  ;;  %v803_v48 = vsel %vm800_vm2, %v802_v18, %v798_v16  ;;  %v339_v15 = vld [vmem:[%s5559_s2 + $0x20] sm:$0xff] }
 0x2ce   : > { %v854_v60 = vmul.f32 %v803_v48, %v4479_v3  ;;  %v829_v3 = vand.u32 2147483647, %v4559_v31  ;;  %v847_v34 = vor.u32 1.1754944e-38, %v846_v29  ;;  %v4590_v54 = vperm.slane %v4413_v43, 5 }
 0x2cf   : > { %v809_v62 = vadd.f32 %v4011_v38, %v808_v58  ;;  %v878_v0 = vunpack.c.l.b16 %v861_v57 }
 0x2d0   : > { %v4013_v1 = vpop.eup %4012  ;;  %v862_v28 = vpack.c.bf16 %v854_v60, %v854_v60  ;;  %vm830_vm11 = vcmp.eq.f32.partialorder %v829_v3, 8.507059e+37 }
 0x2d1   : > { %v4015_v5 = vpop.eup %4014  ;;  %v813_v10 = vsel %vm812_vm13, %v4011_v38, %v809_v62  ;;  %v836_v12 = vmul.f32 %v4013_v1, %v4555_v49  ;;  %v884_v13 = vpack.c.b16 %v878_v0, %v877_v2  ;;  %vm841_vm3 = vweird.f32 %v4013_v1 }
 0x2d2   : > { %v821_v9 = vmul.f32 %v4015_v5, %v4559_v31  ;;  %v818_v17 = vsel %vm815_vm1, %v817_v25, %v813_v10  ;;  %vm826_vm4 = vweird.f32 %v4015_v5  ;;  %vm842_vm6 = vmor %vm840_vm5, %vm841_vm3  ;;  %v879_v33 = vunpack.c.l.b16 %v862_v28 }
 0x2d3   : > { %v837_v19 = vsub.f32 1.0, %v836_v12  ;;  %v855_v21 = vmul.f32 %v818_v17, %v4501_v36  ;;  %v831_v36 = vand.u32 2147483648, %v4559_v31  ;;  %vm827_vm9 = vmor %vm825_vm8, %vm826_vm4  ;;  %v1110_v12 = vunpack.c.l.b16 %v364_v7 }
 0x2d4   : > { %3835 = vmatmul.msk.bf16.gmra.mxu3 %vm465_vm7, %v884_v13  ;;  %v822_v23 = vsub.f32 1.0, %v821_v9 }
 0x2d5   : > { %v838_v24 = vmul.f32 %v4013_v1, %v837_v19  ;;  %v863_v51 = vpack.c.bf16 %v855_v21, %v855_v21  ;;  %v832_v39 = vor.u32 1.1754944e-38, %v831_v36 }
 0x2d6   : > { %v823_v26 = vmul.f32 %v4015_v5, %v822_v23 }
 0x2d7   : > { %v839_v27 = vadd.f32 %v4013_v1, %v838_v24  ;;  %v880_v22 = vunpack.c.l.b16 %v863_v51 }
 0x2d8   : > { %v824_v32 = vadd.f32 %v4015_v5, %v823_v26 }
 0x2d9   : > { %v843_v20 = vsel %vm842_vm6, %v4013_v1, %v839_v27  ;;  %v885_v35 = vpack.c.b16 %v880_v22, %v879_v33 }
 0x2da   : > { %v828_v37 = vsel %vm827_vm9, %v4015_v5, %v824_v32  ;;  %v848_v38 = vsel %vm845_vm10, %v847_v34, %v843_v20  ;;  %v363_v5 = vpack.c.bf16 %v339_v15, %v339_v15 }
 0x2db   : > { %v833_v41 = vsel %vm830_vm11, %v832_v39, %v828_v37  ;;  %v857_v42 = vmul.f32 %v848_v38, %v4524_v8  ;;  %v342_v8 = vld [vmem:[%s5559_s2 + $0x38] sm:$0xff] }
 0x2dc   : > { %v856_v44 = vmul.f32 %v833_v41, %v4504_v45  ;;  %v341_v45 = vld [vmem:[%s5559_s2 + $0x30] sm:$0xff]  ;;  %v366_v59 = vpack.c.bf16 %v342_v8, %v342_v8  ;;  %v1109_v10 = vunpack.c.l.b16 %v363_v5 }
 0x2dd   : > { %v865_v46 = vpack.c.bf16 %v857_v42, %v857_v42  ;;  %v365_v58 = vpack.c.bf16 %v341_v45, %v341_v45 }
 0x2de   : > { %v864_v47 = vpack.c.bf16 %v856_v44, %v856_v44  ;;  %v1112_v62 = vunpack.c.l.b16 %v366_v59  ;;  %v1113_v25 = vpack.c.b16 %v1110_v12, %v1109_v10 }
 0x2df   : > { %v882_v49 = vunpack.c.l.b16 %v865_v46  ;;  %v1111_v61 = vunpack.c.l.b16 %v365_v58 }
 0x2e0   : > { %v881_v52 = vunpack.c.l.b16 %v864_v47 }
 0x2e1   : > { %v1114_v4 = vpack.c.b16 %v1112_v62, %v1111_v61 }
 0x2e2   : > { %v886_v53 = vpack.c.b16 %v882_v49, %v881_v52 }
 0x2e3   : > { %1135 = vmatpush.bf16.msrb.mxu1 %v1114_v4 }
 0x2e4   : > { %3836 = vmatmul.msk.bf16.gmra.mxu3 %vm465_vm7, %v885_v35 }
 0x2e7   : > { %1136 = vmatpush.bf16.msrb.mxu1 %v1113_v25 }
 0x2f4   : > { %3837 = vmatmul.msk.bf16.gmra.mxu3 %vm465_vm7, %v886_v53 }
 0x347   : > { %v920_v31 = vpop.f32.mrf.mxu3 }
 0x348   : > { %v4593_v55 = vadd.f32 %v920_v31, %v4590_v54 }
 0x34a   : > { %v3838_v56 = vmul.f32 -1.442695, %v4593_v55 }
 0x34c   : > { %4016 = vpow2.f32 %v3838_v56 }
 0x34f   : > { %v922_v57 = vpop.f32.mrf.mxu3 }
 0x350   : > { %v4603_v43 = vadd.f32 %v922_v57, %v4590_v54 }
 0x352   : > { %v4017_v0 = vpop.eup %4016  ;;  %v3839_v1 = vmul.f32 -1.442695, %v4603_v43 }
 0x353   : > { %v964_v2 = vadd.f32 1.0, %v4017_v0 }
 0x354   : > { %4018 = vpow2.f32 %v3839_v1 }
 0x355   : > { %4020 = vrcp.f32 %v964_v2  ;;  %v983_v30 = vand.u32 2147483648, %v964_v2  ;;  %vm977_vm13 = vweird.f32 %v964_v2  ;;  %v981_v22 = vand.u32 2147483647, %v964_v2 }
 0x357   : > { %v925_v13 = vpop.f32.mrf.mxu3  ;;  %v984_v38 = vor.u32 1.1754944e-38, %v983_v30  ;;  %vm982_vm1 = vcmp.eq.f32.partialorder %v981_v22, 8.507059e+37 }
 0x358   : > { %v4613_v14 = vadd.f32 %v925_v13, %v4590_v54 }
 0x35a   : > { %v4019_v16 = vpop.eup %4018  ;;  %v3840_v9 = vmul.f32 -1.442695, %v4613_v14 }
 0x35b   : > { %v4021_v17 = vpop.eup %4020  ;;  %v965_v18 = vadd.f32 1.0, %v4019_v16 }
 0x35c   : > { %v973_v19 = vmul.f32 %v4021_v17, %v964_v2  ;;  %4022 = vpow2.f32 %v3840_v9  ;;  %vm978_vm12 = vweird.f32 %v4021_v17 }
 0x35d   : > { %4024 = vrcp.f32 %v965_v18  ;;  %vm4623_vm14 = vmor %vm977_vm13, %vm978_vm12  ;;  %v996_v20 = vand.u32 2147483647, %v965_v18  ;;  %v998_v33 = vand.u32 2147483648, %v965_v18  ;;  %vm992_vm2 = vweird.f32 %v965_v18 }
 0x35e   : > { %v974_v48 = vsub.f32 1.0, %v973_v19 }
 0x35f   : > { %v927_v21 = vpop.f32.mrf.mxu3  ;;  %v999_v47 = vor.u32 1.1754944e-38, %v998_v33  ;;  %vm997_vm4 = vcmp.eq.f32.partialorder %v996_v20, 8.507059e+37 }
 0x360   : > { %v975_v23 = vmul.f32 %v4021_v17, %v974_v48  ;;  %v4617_v24 = vadd.f32 %v927_v21, %v4590_v54 }
 0x362   : > { %v4023_v60 = vpop.eup %4022  ;;  %v3841_v51 = vmul.f32 -1.442695, %v4617_v24  ;;  %v976_v28 = vadd.f32 %v4021_v17, %v975_v23 }
 0x363   : > { %v4025_v26 = vpop.eup %4024  ;;  %v4620_v27 = vadd.f32 1.0, %v4023_v60 }
 0x364   : > { %v988_v29 = vmul.f32 %v4025_v26, %v965_v18  ;;  %4026 = vpow2.f32 %v3841_v51  ;;  %v980_v34 = vsel %vm4623_vm14, %v4021_v17, %v976_v28  ;;  %vm993_vm15 = vweird.f32 %v4025_v26 }
 0x365   : > { %4028 = vrcp.f32 %v4620_v27  ;;  %v985_v46 = vsel %vm982_vm1, %v984_v38, %v980_v34  ;;  %vm994_vm3 = vmor %vm992_vm2, %vm993_vm15  ;;  %v1013_v63 = vand.u32 2147483648, %v4620_v27  ;;  %vm1007_vm6 = vweird.f32 %v4620_v27 }
 0x366   : > { %v989_v32 = vsub.f32 1.0, %v988_v29  ;;  %v4635_v56 = vmul.f32 %v985_v46, %v4593_v55  ;;  %v1011_v2 = vand.u32 2147483647, %v4620_v27 }
 0x367   : > { %v930_v3 = vpop.f32.mrf.mxu3  ;;  %v1014_v9 = vor.u32 1.1754944e-38, %v1013_v63 }
 0x368   : > { %v990_v35 = vmul.f32 %v4025_v26, %v989_v32  ;;  %v4630_v37 = vadd.f32 %v930_v3, %v4590_v54  ;;  %vm1012_vm10 = vcmp.eq.f32.partialorder %v1011_v2, 8.507059e+37 }
 0x36a   : > { %v4027_v39 = vpop.eup %4026  ;;  %v991_v41 = vadd.f32 %v4025_v26, %v990_v35  ;;  %v3842_v42 = vmul.f32 -1.442695, %v4630_v37 }
 0x36b   : > { %v4029_v44 = vpop.eup %4028  ;;  %v967_v49 = vadd.f32 1.0, %v4027_v39 }
 0x36c   : > { %v995_v52 = vsel %vm994_vm3, %v4025_v26, %v991_v41  ;;  %v1003_v53 = vmul.f32 %v4029_v44, %v4620_v27  ;;  %4030 = vpow2.f32 %v3842_v42  ;;  %vm1008_vm5 = vweird.f32 %v4029_v44 }
 0x36d   : > { %v1000_v31 = vsel %vm997_vm4, %v999_v47, %v995_v52  ;;  %4032 = vrcp.f32 %v967_v49  ;;  %vm4653_vm8 = vmor %vm1007_vm6, %vm1008_vm5  ;;  %v1026_v7 = vand.u32 2147483647, %v967_v49  ;;  %v1028_v10 = vand.u32 2147483648, %v967_v49 }
 0x36e   : > { %v4638_v45 = vmul.f32 %v1000_v31, %v4603_v43  ;;  %v1004_v8 = vsub.f32 1.0, %v1003_v53  ;;  %vm1022_vm11 = vweird.f32 %v967_v49 }
 0x36f   : > { %v932_v57 = vpop.f32.mrf.mxu3  ;;  %v1029_v23 = vor.u32 1.1754944e-38, %v1028_v10  ;;  %vm1027_vm13 = vcmp.eq.f32.partialorder %v1026_v7, 8.507059e+37 }
 0x370   : > { %v1100_v58 = vpack.c.bf16 %v4638_v45, %v4635_v56  ;;  %v1005_v59 = vmul.f32 %v4029_v44, %v1004_v8  ;;  %v4643_v61 = vadd.f32 %v932_v57, %v4590_v54 }
 0x372   : > { %v4031_v62 = vpop.eup %4030  ;;  %v3843_v0 = vmul.f32 -1.442695, %v4643_v61  ;;  %3846 = vmatmul.msk.bf16.vlgmr.msrb.gmra.mxu1 %vm465_vm7, %v1100_v58  ;;  %v1006_v15 = vadd.f32 %v4029_v44, %v1005_v59 }
 0x373   : > { %v4033_v1 = vpop.eup %4032  ;;  %v4647_v55 = vadd.f32 1.0, %v4031_v62 }
 0x374   : > { %v1018_v43 = vmul.f32 %v4033_v1, %v967_v49  ;;  %4034 = vpow2.f32 %v3843_v0  ;;  %v1010_v13 = vsel %vm4653_vm8, %v4029_v44, %v1006_v15  ;;  %vm1023_vm9 = vweird.f32 %v4033_v1 }
 0x375   : > { %4036 = vrcp.f32 %v4647_v55  ;;  %v1015_v21 = vsel %vm1012_vm10, %v1014_v9, %v1010_v13  ;;  %vm1024_vm12 = vmor %vm1022_vm11, %vm1023_vm9  ;;  %v1043_v38 = vand.u32 2147483648, %v4647_v55  ;;  %vm1037_vm15 = vweird.f32 %v4647_v55 }
 0x376   : > { %v1019_v4 = vsub.f32 1.0, %v1018_v43  ;;  %v4665_v28 = vmul.f32 %v1015_v21, %v4613_v14 }
 0x377   : > { %v935_v12 = vpop.f32.mrf.mxu3  ;;  %v1044_v47 = vor.u32 1.1754944e-38, %v1043_v38 }
 0x378   : > { %v1020_v25 = vmul.f32 %v4033_v1, %v1019_v4  ;;  %v4660_v16 = vadd.f32 %v935_v12, %v4590_v54 }
 0x37a   : > { %v4035_v17 = vpop.eup %4034  ;;  %v1021_v18 = vadd.f32 %v4033_v1, %v1020_v25  ;;  %v3844_v19 = vmul.f32 -1.442695, %v4660_v16 }
 0x37b   : > { %v4037_v48 = vpop.eup %4036  ;;  %v969_v60 = vadd.f32 1.0, %v4035_v17 }
 0x37c   : > { %v1025_v51 = vsel %vm1024_vm12, %v4033_v1, %v1021_v18  ;;  %v1033_v26 = vmul.f32 %v4037_v48, %v4647_v55  ;;  %4038 = vpow2.f32 %v3844_v19  ;;  %vm1038_vm14 = vweird.f32 %v4037_v48 }
 0x37d   : > { %v1030_v27 = vsel %vm1027_vm13, %v1029_v23, %v1025_v51  ;;  %4040 = vrcp.f32 %v969_v60  ;;  %vm1039_vm1 = vmor %vm1037_vm15, %vm1038_vm14  ;;  %v1058_v41 = vand.u32 2147483648, %v969_v60  ;;  %v1056_v46 = vand.u32 2147483647, %v969_v60  ;;  %v4220_v51 = vld [vmem:[%s5561_s4] sm:$0xff] }
 0x37e   : > { %v4668_v29 = vmul.f32 %v1030_v27, %v4617_v24  ;;  %v1034_v30 = vsub.f32 1.0, %v1033_v26  ;;  %vm1052_vm4 = vweird.f32 %v969_v60  ;;  %v4701_v26 = vperm.slane %v4220_v51, 6 }
 0x37f   : > { %v937_v22 = vpop.f32.mrf.mxu3  ;;  %v1059_v8 = vor.u32 1.1754944e-38, %v1058_v41  ;;  %vm1057_vm6 = vcmp.eq.f32.partialorder %v1056_v46, 8.507059e+37 }
 0x380   : > { %v1035_v32 = vmul.f32 %v4037_v48, %v1034_v30  ;;  %v4671_v36 = vadd.f32 %v937_v22, %v4590_v54  ;;  %v1101_v20 = vpack.c.bf16 %v4668_v29, %v4665_v28  ;;  %v1041_v54 = vand.u32 2147483647, %v4647_v55 }
 0x382   : > { %v4039_v33 = vpop.eup %4038  ;;  %v3845_v3 = vmul.f32 -1.442695, %v4671_v36  ;;  %3847 = vmatmul.msk.bf16.gmra.mxu1 %vm465_vm7, %v1101_v20  ;;  %v1036_v35 = vadd.f32 %v4037_v48, %v1035_v32  ;;  %vm1042_vm3 = vcmp.eq.f32.partialorder %v1041_v54, 8.507059e+37 }
 0x383   : > { %v4041_v34 = vpop.eup %4040  ;;  %v970_v14 = vadd.f32 1.0, %v4039_v33 }
 0x384   : > { %v1048_v24 = vmul.f32 %v4041_v34, %v969_v60  ;;  %4042 = vpow2.f32 %v3845_v3  ;;  %v1040_v42 = vsel %vm1039_vm1, %v4037_v48, %v1036_v35  ;;  %vm1053_vm2 = vweird.f32 %v4041_v34 }
 0x385   : > { %4044 = vrcp.f32 %v970_v14  ;;  %v1045_v31 = vsel %vm1042_vm3, %v1044_v47, %v1040_v42  ;;  %vm1054_vm5 = vmor %vm1052_vm4, %vm1053_vm2  ;;  %v1073_v5 = vand.u32 2147483648, %v970_v14  ;;  %vm1067_vm9 = vweird.f32 %v970_v14 }
 0x386   : > { %v1049_v39 = vsub.f32 1.0, %v1048_v24  ;;  %v4681_v0 = vmul.f32 %v1045_v31, %v4630_v37  ;;  %v1071_v7 = vand.u32 2147483647, %v970_v14 }
 0x387   : > { %v1074_v25 = vor.u32 1.1754944e-38, %v1073_v5 }
 0x388   : > { %v1050_v44 = vmul.f32 %v4041_v34, %v1049_v39  ;;  %vm1072_vm12 = vcmp.eq.f32.partialorder %v1071_v7, 8.507059e+37 }
 0x38a   : > { %v4043_v49 = vpop.eup %4042  ;;  %v1051_v52 = vadd.f32 %v4041_v34, %v1050_v44 }
 0x38b   : > { %v4045_v53 = vpop.eup %4044  ;;  %v971_v57 = vadd.f32 1.0, %v4043_v49 }
 0x38c   : > { %v1055_v58 = vsel %vm1054_vm5, %v4041_v34, %v1051_v52  ;;  %v1063_v59 = vmul.f32 %v4045_v53, %v970_v14  ;;  %vm1068_vm8 = vweird.f32 %v4045_v53 }
 0x38d   : > { %v1060_v62 = vsel %vm1057_vm6, %v1059_v8, %v1055_v58  ;;  %4046 = vrcp.f32 %v971_v57  ;;  %vm1069_vm10 = vmor %vm1067_vm9, %vm1068_vm8  ;;  %v1088_v37 = vand.u32 2147483648, %v971_v57  ;;  %v1086_v13 = vand.u32 2147483647, %v971_v57 }
 0x38e   : > { %v4684_v1 = vmul.f32 %v1060_v62, %v4643_v61  ;;  %v1064_v55 = vsub.f32 1.0, %v1063_v59  ;;  %vm1082_vm13 = vweird.f32 %v971_v57  ;;  %v4713_v58 = vperm.slane %v4220_v51, 7 }
 0x38f   : > { %v1089_v18 = vor.u32 1.1754944e-38, %v1088_v37  ;;  %vm1087_vm15 = vcmp.eq.f32.partialorder %v1086_v13, 8.507059e+37 }
 0x390   : > { %v1065_v15 = vmul.f32 %v4045_v53, %v1064_v55  ;;  %v1102_v43 = vpack.c.bf16 %v4684_v1, %v4681_v0 }
 0x392   : > { %3848 = vmatmul.msk.bf16.gmra.mxu1 %vm465_vm7, %v1102_v43  ;;  %v1066_v2 = vadd.f32 %v4045_v53, %v1065_v15 }
 0x393   : > { %v4047_v63 = vpop.eup %4046 }
 0x394   : > { %v1078_v4 = vmul.f32 %v4047_v63, %v971_v57  ;;  %v1070_v12 = vsel %vm1069_vm10, %v4045_v53, %v1066_v2  ;;  %vm1083_vm11 = vweird.f32 %v4047_v63 }
 0x395   : > { %v1075_v17 = vsel %vm1072_vm12, %v1074_v25, %v1070_v12  ;;  %vm1084_vm14 = vmor %vm1082_vm13, %vm1083_vm11 }
 0x396   : > { %v1079_v10 = vsub.f32 1.0, %v1078_v4  ;;  %v4690_v21 = vmul.f32 %v1075_v17, %v4660_v16 }
 0x398   : > { %v1080_v61 = vmul.f32 %v4047_v63, %v1079_v10 }
 0x39a   : > { %v1081_v9 = vadd.f32 %v4047_v63, %v1080_v61 }
 0x39c   : > { %v1085_v19 = vsel %vm1084_vm14, %v4047_v63, %v1081_v9 }
 0x39d   : > { %v1090_v48 = vsel %vm1087_vm15, %v1089_v18, %v1085_v19 }
 0x39e   : > { %v4693_v23 = vmul.f32 %v1090_v48, %v4671_v36 }
 0x3a0   : > { %v1103_v60 = vpack.c.bf16 %v4693_v23, %v4690_v21 }
 0x3a2   : > { %3849 = vmatmul.msk.bf16.gmra.mxu1 %vm465_vm7, %v1103_v60 }
 0x3ef   : > { %v1138_v27 = vpop.f32.mrf.mxu1 }
 0x3f0   : > { %v1139_v30 = vadd.f32 %v1138_v27, %v4701_v26 }
 0x3f2   : > { %v3850_v22 = vmul.f32 -1.442695, %v1139_v30 }
 0x3f4   : > { %4048 = vpow2.f32 %v3850_v22 }
 0x3f7   : > { %v1140_v16 = vpop.f32.mrf.mxu1 }
 0x3f8   : > { %v1141_v32 = vadd.f32 %v1140_v16, %v4701_v26 }
 0x3fa   : > { %v4049_v36 = vpop.eup %4048  ;;  %v3851_v20 = vmul.f32 -1.442695, %v1141_v32 }
 0x3fb   : > { %v1182_v33 = vadd.f32 1.0, %v4049_v36 }
 0x3fc   : > { %4050 = vpow2.f32 %v3851_v20 }
 0x3fd   : > { %4052 = vrcp.f32 %v1182_v33  ;;  %v1201_v41 = vand.u32 2147483648, %v1182_v33  ;;  %v1199_v46 = vand.u32 2147483647, %v1182_v33  ;;  %vm1195_vm2 = vweird.f32 %v1182_v33 }
 0x3ff   : > { %v1143_v3 = vpop.f32.mrf.mxu1  ;;  %v1202_v8 = vor.u32 1.1754944e-38, %v1201_v41  ;;  %vm1200_vm4 = vcmp.eq.f32.partialorder %v1199_v46, 8.507059e+37 }
 0x400   : > { %v4706_v34 = vadd.f32 %v1143_v3, %v4701_v26 }
 0x402   : > { %v4051_v14 = vpop.eup %4050  ;;  %v3852_v35 = vmul.f32 -1.442695, %v4706_v34 }
 0x403   : > { %v4053_v24 = vpop.eup %4052  ;;  %v1183_v38 = vadd.f32 1.0, %v4051_v14 }
 0x404   : > { %v1191_v54 = vmul.f32 %v4053_v24, %v1182_v33  ;;  %4054 = vpow2.f32 %v3852_v35  ;;  %vm1196_vm1 = vweird.f32 %v4053_v24 }
 0x405   : > { %4056 = vrcp.f32 %v1183_v38  ;;  %vm1197_vm3 = vmor %vm1195_vm2, %vm1196_vm1  ;;  %v1214_v63 = vand.u32 2147483647, %v1183_v38  ;;  %v1216_v2 = vand.u32 2147483648, %v1183_v38  ;;  %vm1210_vm6 = vweird.f32 %v1183_v38 }
 0x406   : > { %v1192_v39 = vsub.f32 1.0, %v1191_v54 }
 0x407   : > { %v1145_v42 = vpop.f32.mrf.mxu1  ;;  %v1217_v9 = vor.u32 1.1754944e-38, %v1216_v2  ;;  %vm1215_vm9 = vcmp.eq.f32.partialorder %v1214_v63, 8.507059e+37 }
 0x408   : > { %v1193_v44 = vmul.f32 %v4053_v24, %v1192_v39  ;;  %v4710_v47 = vadd.f32 %v1145_v42, %v4701_v26 }
 0x40a   : > { %v4055_v49 = vpop.eup %4054  ;;  %v1194_v52 = vadd.f32 %v4053_v24, %v1193_v44  ;;  %v3853_v53 = vmul.f32 -1.442695, %v4710_v47 }
 0x40b   : > { %v4057_v31 = vpop.eup %4056  ;;  %v1184_v57 = vadd.f32 1.0, %v4055_v49 }
 0x40c   : > { %v1198_v59 = vsel %vm1197_vm3, %v4053_v24, %v1194_v52  ;;  %v1206_v62 = vmul.f32 %v4057_v31, %v1183_v38  ;;  %4058 = vpow2.f32 %v3853_v53  ;;  %vm1211_vm5 = vweird.f32 %v4057_v31 }
 0x40d   : > { %v1203_v55 = vsel %vm1200_vm4, %v1202_v8, %v1198_v59  ;;  %4060 = vrcp.f32 %v1184_v57  ;;  %vm1212_vm8 = vmor %vm1210_vm6, %vm1211_vm5  ;;  %v1229_v27 = vand.u32 2147483647, %v1184_v57  ;;  %vm1225_vm11 = vweird.f32 %v1184_v57 }
 0x40e   : > { %v1310_v15 = vmul.f32 %v1203_v55, %v1139_v30  ;;  %v1207_v43 = vsub.f32 1.0, %v1206_v62  ;;  %v1231_v30 = vand.u32 2147483648, %v1184_v57 }
 0x40f   : > { %v1148_v4 = vpop.f32.mrf.mxu1  ;;  %vm1230_vm13 = vcmp.eq.f32.partialorder %v1229_v27, 8.507059e+37 }
 0x410   : > { %v1208_v5 = vmul.f32 %v4057_v31, %v1207_v43  ;;  %v4716_v7 = vadd.f32 %v1148_v4, %v4701_v26  ;;  %v1319_v10 = vmul.f32 %v4713_v58, %v1310_v15 }
 0x412   : > { %v4059_v37 = vpop.eup %4058  ;;  %v1209_v12 = vadd.f32 %v4057_v31, %v1208_v5  ;;  %v3854_v61 = vmul.f32 -1.442695, %v4716_v7  ;;  %v1327_v13 = vsel %vm465_vm7, %v1319_v10, 0.0 }
 0x413   : > { %v4061_v25 = vpop.eup %4060  ;;  %v1185_v17 = vadd.f32 1.0, %v4059_v37  ;;  %1328 = vadd.xlane.f32.xlu1 %v1327_v13 }
 0x414   : > { %v1213_v18 = vsel %vm1212_vm8, %v4057_v31, %v1209_v12  ;;  %v1221_v19 = vmul.f32 %v4061_v25, %v1184_v57  ;;  %4062 = vpow2.f32 %v3854_v61  ;;  %vm1226_vm10 = vweird.f32 %v4061_v25 }
 0x415   : > { %v1218_v48 = vsel %vm1215_vm9, %v1217_v9, %v1213_v18  ;;  %4064 = vrcp.f32 %v1185_v17  ;;  %vm1227_vm12 = vmor %vm1225_vm11, %vm1226_vm10  ;;  %v1244_v46 = vand.u32 2147483647, %v1185_v17  ;;  %v1246_v49 = vand.u32 2147483648, %v1185_v17 }
 0x416   : > { %v1311_v60 = vmul.f32 %v1218_v48, %v1141_v32  ;;  %v1222_v51 = vsub.f32 1.0, %v1221_v19  ;;  %v1232_v32 = vor.u32 1.1754944e-38, %v1231_v30  ;;  %vm1240_vm15 = vweird.f32 %v1185_v17 }
 0x417   : > { %v1150_v22 = vpop.f32.mrf.mxu1  ;;  %vm1245_vm2 = vcmp.eq.f32.partialorder %v1244_v46, 8.507059e+37 }
 0x418   : > { %v1223_v16 = vmul.f32 %v4061_v25, %v1222_v51  ;;  %v4722_v36 = vadd.f32 %v1150_v22, %v4701_v26  ;;  %v1320_v20 = vmul.f32 %v4713_v58, %v1311_v60 }
 0x41a   : > { %v4063_v33 = vpop.eup %4062  ;;  %v1224_v3 = vadd.f32 %v4061_v25, %v1223_v16  ;;  %v3855_v14 = vmul.f32 -1.442695, %v4722_v36  ;;  %v1330_v35 = vsel %vm465_vm7, %v1320_v20, 0.0 }
 0x41b   : > { %v4065_v24 = vpop.eup %4064  ;;  %v1186_v38 = vadd.f32 1.0, %v4063_v33  ;;  %1331 = vadd.xlane.f32.xlu0 %v1330_v35 }
 0x41c   : > { %v1228_v54 = vsel %vm1227_vm12, %v4061_v25, %v1224_v3  ;;  %v1236_v39 = vmul.f32 %v4065_v24, %v1185_v17  ;;  %4066 = vpow2.f32 %v3855_v14  ;;  %vm1241_vm14 = vweird.f32 %v4065_v24 }
 0x41d   : > { %v1233_v41 = vsel %vm1230_vm13, %v1232_v32, %v1228_v54  ;;  %4068 = vrcp.f32 %v1186_v38  ;;  %vm1242_vm1 = vmor %vm1240_vm15, %vm1241_vm14  ;;  %v1259_v37 = vand.u32 2147483647, %v1186_v38  ;;  %v1261_v12 = vand.u32 2147483648, %v1186_v38 }
 0x41e   : > { %v1312_v42 = vmul.f32 %v1233_v41, %v4706_v34  ;;  %v1237_v44 = vsub.f32 1.0, %v1236_v39  ;;  %v1247_v34 = vor.u32 1.1754944e-38, %v1246_v49  ;;  %vm1255_vm4 = vweird.f32 %v1186_v38 }
 0x41f   : > { %v1153_v52 = vpop.f32.mrf.mxu1  ;;  %vm1260_vm6 = vcmp.eq.f32.partialorder %v1259_v37, 8.507059e+37 }
 0x420   : > { %v1238_v53 = vmul.f32 %v4065_v24, %v1237_v44  ;;  %v4729_v31 = vadd.f32 %v1153_v52, %v4701_v26  ;;  %v1321_v8 = vmul.f32 %v4713_v58, %v1312_v42 }
 0x422   : > { %v4067_v57 = vpop.eup %4066  ;;  %v1239_v59 = vadd.f32 %v4065_v24, %v1238_v53  ;;  %v3856_v62 = vmul.f32 -1.442695, %v4729_v31  ;;  %v1333_v55 = vsel %vm465_vm7, %v1321_v8, 0.0 }
 0x423   : > { %v4069_v15 = vpop.eup %4068  ;;  %v1187_v43 = vadd.f32 1.0, %v4067_v57  ;;  %1334 = vadd.xlane.f32.xlu2 %v1333_v55 }
 0x424   : > { %v1243_v63 = vsel %vm1242_vm1, %v4065_v24, %v1239_v59  ;;  %v1251_v2 = vmul.f32 %v4069_v15, %v1186_v38  ;;  %4070 = vpow2.f32 %v3856_v62  ;;  %vm1256_vm3 = vweird.f32 %v4069_v15 }
 0x425   : > { %v1248_v4 = vsel %vm1245_vm2, %v1247_v34, %v1243_v63  ;;  %4072 = vrcp.f32 %v1187_v43  ;;  %vm1257_vm5 = vmor %vm1255_vm4, %vm1256_vm3  ;;  %v1276_v20 = vand.u32 2147483648, %v1187_v43  ;;  %v1274_v3 = vand.u32 2147483647, %v1187_v43 }
 0x426   : > { %v1313_v5 = vmul.f32 %v1248_v4, %v4710_v47  ;;  %v1252_v10 = vsub.f32 1.0, %v1251_v2  ;;  %v1262_v47 = vor.u32 1.1754944e-38, %v1261_v12  ;;  %vm1270_vm9 = vweird.f32 %v1187_v43 }
 0x427   : > { %v1155_v61 = vpop.f32.mrf.mxu1  ;;  %v1277_v54 = vor.u32 1.1754944e-38, %v1276_v20  ;;  %vm1275_vm11 = vcmp.eq.f32.partialorder %v1274_v3, 8.507059e+37 }
 0x428   : > { %v1253_v13 = vmul.f32 %v4069_v15, %v1252_v10  ;;  %v4736_v25 = vadd.f32 %v1155_v61, %v4701_v26  ;;  %v1322_v9 = vmul.f32 %v4713_v58, %v1313_v5 }
 0x42a   : > { %v4071_v17 = vpop.eup %4070  ;;  %v1254_v18 = vadd.f32 %v4069_v15, %v1253_v13  ;;  %v3857_v19 = vmul.f32 -1.442695, %v4736_v25  ;;  %v1336_v48 = vsel %vm465_vm7, %v1322_v9, 0.0 }
 0x42b   : > { %v4073_v60 = vpop.eup %4072  ;;  %v1188_v51 = vadd.f32 1.0, %v4071_v17  ;;  %1337 = vadd.xlane.f32.xlu0 %v1336_v48  ;;  %v586_v48 = vpop.permute.xlu1 %585 }
 0x42c   : > { %v1258_v27 = vsel %vm1257_vm5, %v4069_v15, %v1254_v18  ;;  %v1266_v30 = vmul.f32 %v4073_v60, %v1187_v43  ;;  %4074 = vpow2.f32 %v3857_v19  ;;  %vm1271_vm8 = vweird.f32 %v4073_v60 }
 0x42d   : > { %v1263_v26 = vsel %vm1260_vm6, %v1262_v47, %v1258_v27  ;;  %4076 = vrcp.f32 %v1188_v51  ;;  %vm1272_vm10 = vmor %vm1270_vm9, %vm1271_vm8  ;;  %v1291_v49 = vand.u32 2147483648, %v1188_v51  ;;  %v1289_v53 = vand.u32 2147483647, %v1188_v51 }
 0x42e   : > { %v1314_v22 = vmul.f32 %v1263_v26, %v4716_v7  ;;  %v1267_v16 = vsub.f32 1.0, %v1266_v30  ;;  %vm1285_vm13 = vweird.f32 %v1188_v51  ;;  %v4310_v19 = vmov 0  }
 0x42f   : > { %v1292_v55 = vor.u32 1.1754944e-38, %v1291_v49  ;;  %vm1290_vm15 = vcmp.eq.f32.partialorder %v1289_v53, 8.507059e+37  ;;  %3965 = vset.pattern.permute.xlu0 %v4310_v19  ;;  %3966 = vset.pattern.permute.xlu1 %v4310_v19  ;;  %v588_v30 = vadd.f32 %v586_v48, %v4430_v11  ;;  %vm1408_vm5 = vcmask 64512  }
 0x430   : > { %v1268_v33 = vmul.f32 %v4073_v60, %v1267_v16  ;;  %v1323_v14 = vmul.f32 %v4713_v58, %v1314_v22  ;;  %3967 = vset.pattern.permute.xlu2 %v4310_v19  ;;  %vm522_vm6 = vcmask 1041409   ;;  %vm523_vm8 = vcmask 1042434  }
 0x431   : > { %vm525_vm9 = vcmask 1043459  }
 0x432   : > { %v4075_v35 = vpop.eup %4074  ;;  %v1269_v24 = vadd.f32 %v4073_v60, %v1268_v33  ;;  %v1339_v32 = vsel %vm465_vm7, %v1323_v14, 0.0 }
 0x433   : > { %v4077_v38 = vpop.eup %4076  ;;  %v1189_v39 = vadd.f32 1.0, %v4075_v35  ;;  %1340 = vadd.xlane.f32.xlu0 %v1339_v32 }
 0x434   : > { %v1273_v41 = vsel %vm1272_vm10, %v4073_v60, %v1269_v24  ;;  %v1281_v7 = vmul.f32 %v4077_v38, %v1188_v51  ;;  %vm1286_vm12 = vweird.f32 %v4077_v38  ;;  %v4759_v60 = vld [vmem:[%s5561_s4 + $0x8] sm:$0xf]  ;;  %v580_v51 = vpop.permute.xlu2 %579  ;;  %vm527_vm10 = vcmask 1044484  }
 0x435   : > { %v1278_v42 = vsel %vm1275_vm11, %v1277_v54, %v1273_v41  ;;  %4078 = vrcp.f32 %v1189_v39  ;;  %vm1287_vm14 = vmor %vm1285_vm13, %vm1286_vm12  ;;  %v1306_v2 = vand.u32 2147483648, %v1189_v39  ;;  %v1304_v5 = vand.u32 2147483647, %v1189_v39 }
 0x436   : > { %v1315_v44 = vmul.f32 %v1278_v42, %v4722_v36  ;;  %v1282_v46 = vsub.f32 1.0, %v1281_v7  ;;  %vm1300_vm2 = vweird.f32 %v1189_v39  ;;  %vm529_vm11 = vcmask 1045509  }
 0x437   : > { %v1307_v61 = vor.u32 1.1754944e-38, %v1306_v2  ;;  %vm1305_vm4 = vcmp.eq.f32.partialorder %v1304_v5, 8.507059e+37  ;;  %vm5571_vm12 = vcmask 1046534   ;;  %vm5570_vm13 = vcmask 1047559  }
 0x438   : > { %v1283_v52 = vmul.f32 %v4077_v38, %v1282_v46  ;;  %v1324_v8 = vmul.f32 %v4713_v58, %v1315_v44 }
 0x43a   : > { %v1284_v57 = vadd.f32 %v4077_v38, %v1283_v52  ;;  %v1342_v59 = vsel %vm465_vm7, %v1324_v8, 0.0 }
 0x43b   : > { %v4079_v62 = vpop.eup %4078  ;;  %1343 = vadd.xlane.f32.xlu0 %v1342_v59 }
 0x43c   : > { %v1288_v15 = vsel %vm1287_vm14, %v4077_v38, %v1284_v57  ;;  %v1296_v34 = vmul.f32 %v4079_v62, %v1189_v39  ;;  %vm1301_vm1 = vweird.f32 %v4079_v62  ;;  %v582_v39 = vadd.f32 %v580_v51, %v4430_v11 }
 0x43d   : > { %v1293_v43 = vsel %vm1290_vm15, %v1292_v55, %v1288_v15  ;;  %vm1302_vm3 = vmor %vm1300_vm2, %vm1301_vm1  ;;  %vm4804_vm14 = vcmp.eq.s32.totalorder %v4408_v40, %v4419_v50 }
 0x43e   : > { %v1316_v36 = vmul.f32 %v1293_v43, %v4729_v31  ;;  %v1297_v63 = vsub.f32 1.0, %v1296_v34 }
 0x440   : > { %v1298_v4 = vmul.f32 %v4079_v62, %v1297_v63  ;;  %v1325_v10 = vmul.f32 %v4713_v58, %v1316_v36 }
 0x442   : > { %v1299_v37 = vadd.f32 %v4079_v62, %v1298_v4  ;;  %v1345_v12 = vsel %vm465_vm7, %v1325_v10, 0.0 }
 0x443   : > { %1346 = vadd.xlane.f32.xlu0 %v1345_v12 }
 0x444   : > { %v1303_v13 = vsel %vm1302_vm3, %v4079_v62, %v1299_v37 }
 0x445   : > { %v1308_v9 = vsel %vm1305_vm4, %v1307_v61, %v1303_v13 }
 0x446   : > { %v1317_v17 = vmul.f32 %v1308_v9, %v4736_v25  ;;  %v1351_v25 = vperm.slane %v4759_v60, 2 }
 0x448   : > { %v1326_v31 = vmul.f32 %v4713_v58, %v1317_v17 }
 0x44a   : > { %v1348_v18 = vsel %vm465_vm7, %v1326_v31, 0.0 }
 0x44b   : > { %1349 = vadd.xlane.f32.xlu0 %v1348_v18 }
 0x486   : > { %v1329_v47 = vpop.xlane.xlu1 %1328 }
 0x487   : > { %v1352_v58 = vadd.f32 %v1351_v25, %v1329_v47 }
 0x489   : > { %1369 = vperm.xlu0 %3965, %v1352_v58  }
 0x48e   : > { %v1332_v27 = vpop.xlane.xlu0 %1331 }
 0x48f   : > { %v1353_v26 = vadd.f32 %v1351_v25, %v1332_v27 }
 0x491   : > { %1372 = vperm.xlu1 %3966, %v1353_v26   ;;  %1442 = vrot.lane.b32.xlu0 %v588_v30, %s4307_s26 }
 0x496   : > { %v1335_v22 = vpop.xlane.xlu2 %1334 }
 0x497   : > { %v1354_v16 = vadd.f32 %v1351_v25, %v1335_v22 }
 0x499   : > { %1375 = vperm.xlu2 %3967, %v1354_v16  }
 0x49e   : > { %v1338_v20 = vpop.xlane.xlu0 %1337 }
 0x49f   : > { %v1355_v33 = vadd.f32 %v1351_v25, %v1338_v20 }
 0x4a1   : > { %1378 = vperm.xlu1 %3966, %v1355_v33  }
 0x4a6   : > { %v1341_v3 = vpop.xlane.xlu0 %1340 }
 0x4a7   : > { %v1356_v14 = vadd.f32 %v1351_v25, %v1341_v3 }
 0x4a9   : > { %1381 = vperm.xlu2 %3967, %v1356_v14  }
 0x4ae   : > { %v1344_v35 = vpop.xlane.xlu0 %1343 }
 0x4af   : > { %v1357_v24 = vadd.f32 %v1351_v25, %v1344_v35 }
 0x4b1   : > { %1384 = vperm.xlu1 %3966, %v1357_v24  }
 0x4b6   : > { %v1347_v32 = vpop.xlane.xlu0 %1346 }
 0x4b7   : > { %v1358_v38 = vadd.f32 %v1351_v25, %v1347_v32 }
 0x4b9   : > { %1387 = vperm.xlu2 %3967, %v1358_v38   ;;  %1553 = vrot.lane.b32.xlu1 %v588_v30, %s4311_s12 }
 0x4ba   : > { %3968 = vset.pattern.permute.xlu1 %v4408_v40 }
 0x4be   : > { %v1350_v54 = vpop.xlane.xlu0 %1349 }
 0x4bf   : > { %v1359_v41 = vadd.f32 %v1351_v25, %v1350_v54 }
 0x4c1   : > { %1551 = vrot.lane.b32.xlu2 %v582_v39, %s4312_s13  ;;  %1439 = vrot.lane.b32.xlu1 %v582_v39, %s4309_s29 }
 0x4c2   : > { %1390 = vperm.xlu0 %3965, %v1359_v41   ;;  %3969 = vset.pattern.permute.xlu2 %v4408_v40 }
 0x4c9   : > { %1775 = vrot.lane.b32.xlu2 %v588_v30, %s4313_s14  ;;  %1664 = vrot.lane.b32.xlu1 %v588_v30, %s4314_s15 }
 0x4ca   : > { %1773 = vrot.lane.b32.xlu0 %v582_v39, %s4315_s17 }
 0x4cb   : > { %3970 = vset.pattern.permute.xlu0 %v4408_v40 }
 0x4d1   : > { %1662 = vrot.lane.b32.xlu2 %v582_v39, %s4316_s18 }
 0x4f3   : > { %v1376_v42 = vpop.permute.xlu2 %1375 }
 0x4f4   : > { %v1394_v34 = vperm.slane %v1376_v42, %v4419_v50 }
 0x4fb   : > { %v1370_v11 = vpop.permute.xlu0 %1369 }
 0x4fc   : > { %v1392_v59 = vperm.slane %v1370_v11, %v4419_v50 }
 0x503   : > { %v1443_v7 = vpop.permute.xlu0 %1442  ;;  %v1382_v44 = vpop.permute.xlu2 %1381 }
 0x504   : > { %3859 = vmatpush.xpose.msk.msra.mxu0 %vm1408_vm5, %v1443_v7  ;;  %v1373_v46 = vpop.permute.xlu1 %1372  ;;  %v1396_v4 = vperm.slane %v1382_v44, %v4419_v50 }
 0x505   : > { %v1393_v57 = vperm.slane %v1373_v46, %v4419_v50 }
 0x507   : > { %v1400_v62 = vsel %vm522_vm6, %v1393_v57, %v1392_v59 }
 0x508   : > { %v1401_v36 = vsel %vm523_vm8, %v1394_v34, %v1400_v62 }
 0x513   : > { %v1388_v49 = vpop.permute.xlu2 %1387  ;;  %v1379_v52 = vpop.permute.xlu1 %1378 }
 0x514   : > { %v1395_v55 = vperm.slane %v1379_v52, %v4419_v50  ;;  %v1398_v12 = vperm.slane %v1388_v49, %v4419_v50 }
 0x516   : > { %v1402_v63 = vsel %vm525_vm9, %v1395_v55, %v1401_v36 }
 0x517   : > { %v1403_v5 = vsel %vm527_vm10, %v1396_v4, %v1402_v63 }
 0x51b   : > { %v1552_v53 = vpop.permute.xlu2 %1551 }
 0x523   : > { %v1385_v8 = vpop.permute.xlu1 %1384  ;;  %v1776_v43 = vpop.permute.xlu2 %1775 }
 0x524   : > { %v1397_v2 = vperm.slane %v1385_v8, %v4419_v50 }
 0x526   : > { %v1404_v10 = vsel %vm529_vm11, %v1397_v2, %v1403_v5 }
 0x527   : > { %v1405_v9 = vsel %vm5571_vm12, %v1398_v12, %v1404_v10 }
 0x52b   : > { %v1554_v15 = vpop.permute.xlu1 %1553  ;;  %v1663_v48 = vpop.permute.xlu2 %1662 }
 0x52c   : > { %3861 = vmatpush.xpose.msk.msrb.mxu2 %vm1408_vm5, %v1554_v15 }
 0x52f   : > { %3862 = vmatmul.msk.f32.vlgmr.msrb.gmra.mxu2 %vm1408_vm5, %v1552_v53 }
 0x530   : > { %3865 = vmatpush.xpose.msk.msra.mxu2 %vm1408_vm5, %v1776_v43 }
 0x533   : > { %v1440_v37 = vpop.permute.xlu1 %1439 }
 0x534   : > { %v1391_v61 = vpop.permute.xlu0 %1390 }
 0x535   : > { %v1399_v13 = vperm.slane %v1391_v61, %v4419_v50 }
 0x537   : > { %v4794_v17 = vsel %vm5570_vm13, %v1399_v13, %v1405_v9 }
 0x538   : > { %3858 = vmatmul.msk.f32.vlgmr.msrb.gmra.mxu0 %vm1408_vm5, %v4794_v17 }
 0x53b   : > { %v1665_v31 = vpop.permute.xlu1 %1664 }
 0x53c   : > { %v1774_v18 = vpop.permute.xlu0 %1773  ;;  %3863 = vmatpush.xpose.msk.msrb.mxu0 %vm1408_vm5, %v1665_v31 }
 0x53d   : > { %3866 = vmatmul.msk.f32.vlgmr.msra.gmra.mxu2 %vm1408_vm5, %v1774_v18 }
 0x540   : > { %3860 = vmatmul.msk.f32.vlgmr.msra.gmra.mxu0 %vm1408_vm5, %v1440_v37 }
 0x548   : > { %3864 = vmatmul.msk.f32.vlgmr.msrb.gmra.mxu0 %vm1408_vm5, %v1663_v48 }
 0x5b2   : > { %v1576_v25 = vpop.f32.mrf.mxu2 }
 0x5b3   : > { %v1579_v58 = vmul.f32 0.35355338, %v1576_v25 }
 0x5b5   : > { %v1580_v51 = vsel %vm4804_vm14, -1e+09, %v1579_v58  ;;  %v4811_v30 = vpop.f32.mrf.mxu0 }
 0x5b6   : > { %v1581_v27 = vsel %vm1408_vm5, %v1580_v51, -inf }
 0x5b7   : > { %1582 = vmax.xlane.f32.xlu1 %v1581_v27 }
 0x5bd   : > { %v1465_v16 = vpop.f32.mrf.mxu0 }
 0x5be   : > { %v1468_v3 = vmul.f32 0.35355338, %v1465_v16 }
 0x5c0   : > { %v1798_v26 = vpop.f32.mrf.mxu2  ;;  %v4818_v14 = vsel %vm4804_vm14, -1e+09, %v1468_v3 }
 0x5c1   : > { %v1801_v22 = vmul.f32 0.35355338, %v1798_v26  ;;  %v1470_v35 = vsel %vm1408_vm5, %v4818_v14, -inf }
 0x5c3   : > { %v1802_v20 = vsel %vm4804_vm14, -1e+09, %v1801_v22 }
 0x5c4   : > { %v1803_v33 = vsel %vm1408_vm5, %v1802_v20, -inf }
 0x5c5   : > { %1804 = vmax.xlane.f32.xlu0 %v1803_v33  ;;  %v1687_v16 = vpop.f32.mrf.mxu0 }
 0x5c6   : > { %v1690_v33 = vmul.f32 0.35355338, %v1687_v16 }
 0x5cd   : > { %1471 = vmax.xlane.f32.xlu0 %v1470_v35  ;;  %v1691_v35 = vsel %vm4804_vm14, -1e+09, %v1690_v33 }
 0x62a   : > { %v1583_v24 = vpop.xlane.xlu1 %1582 }
 0x62b   : > { %v1584_v32 = vsub.f32 %v1580_v51, %v1583_v24  ;;  %v1692_v24 = vsel %vm1408_vm5, %v1691_v35, -inf }
 0x62d   : > { %v1585_v38 = vmul.f32 1.442695, %v1584_v32 }
 0x62f   : > { %4080 = vpow2.f32 %v1585_v38 }
 0x635   : > { %v4081_v54 = vpop.eup %4080 }
 0x636   : > { %v1587_v39 = vsel %vm1408_vm5, %v4081_v54, 0.0 }
 0x637   : > { %1588 = vadd.xlane.f32.xlu2 %v1587_v39 }
 0x638   : > { %v1805_v41 = vpop.xlane.xlu0 %1804 }
 0x639   : > { %v1806_v11 = vsub.f32 %v1802_v20, %v1805_v41 }
 0x63b   : > { %v1807_v7 = vmul.f32 1.442695, %v1806_v11 }
 0x63d   : > { %4082 = vpow2.f32 %v1807_v7 }
 0x640   : > { %v1472_v32 = vpop.xlane.xlu0 %1471 }
 0x641   : > { %v1473_v38 = vsub.f32 %v4818_v14, %v1472_v32 }
 0x643   : > { %v4083_v42 = vpop.eup %4082 }
 0x644   : > { %v1809_v44 = vsel %vm1408_vm5, %v4083_v42, 0.0 }
 0x645   : > { %1810 = vadd.xlane.f32.xlu1 %v1809_v44 }
 0x6aa   : > { %v1589_v46 = vpop.xlane.xlu2 %1588 }
 0x6ab   : > { %4084 = vrcp.f32 %v1589_v46  ;;  %v1601_v8 = vand.u32 2147483648, %v1589_v46  ;;  %v1599_v59 = vand.u32 2147483647, %v1589_v46  ;;  %vm1595_vm1 = vweird.f32 %v1589_v46 }
 0x6ad   : > { %v1602_v15 = vor.u32 1.1754944e-38, %v1601_v8  ;;  %vm1600_vm3 = vcmp.eq.f32.partialorder %v1599_v59, 8.507059e+37 }
 0x6b1   : > { %v4085_v49 = vpop.eup %4084 }
 0x6b2   : > { %v1591_v52 = vmul.f32 %v4085_v49, %v1589_v46  ;;  %vm1596_vm15 = vweird.f32 %v4085_v49 }
 0x6b3   : > { %vm1597_vm2 = vmor %vm1595_vm1, %vm1596_vm15 }
 0x6b4   : > { %v1592_v53 = vsub.f32 1.0, %v1591_v52 }
 0x6b6   : > { %v1593_v57 = vmul.f32 %v4085_v49, %v1592_v53 }
 0x6b8   : > { %v1594_v62 = vadd.f32 %v4085_v49, %v1593_v57  ;;  %v1811_v55 = vpop.xlane.xlu1 %1810 }
 0x6b9   : > { %4086 = vrcp.f32 %v1811_v55  ;;  %v1823_v37 = vand.u32 2147483648, %v1811_v55  ;;  %v1821_v61 = vand.u32 2147483647, %v1811_v55  ;;  %vm1817_vm0 = vweird.f32 %v1811_v55 }
 0x6ba   : > { %v1598_v34 = vsel %vm1597_vm2, %v4085_v49, %v1594_v62 }
 0x6bb   : > { %v1603_v43 = vsel %vm1600_vm3, %v1602_v15, %v1598_v34  ;;  %v1824_v31 = vor.u32 1.1754944e-38, %v1823_v37  ;;  %vm1822_vm1 = vcmp.eq.f32.partialorder %v1821_v61, 8.507059e+37 }
 0x6bc   : > { %v1605_v36 = vmul.f32 %v4081_v54, %v1603_v43  ;;  %v1474_v54 = vmul.f32 1.442695, %v1473_v38 }
 0x6be   : > { %v1613_v63 = vperm.slane %v1605_v36, 1  ;;  %v1606_v2 = vperm.slane %v1605_v36, 0  ;;  %v1627_v9 = vperm.slane %v1605_v36, 3  ;;  %v1634_v27 = vperm.slane %v1605_v36, 4 }
 0x6bf   : > { %v4087_v4 = vpop.eup %4086  ;;  %v1641_v26 = vperm.slane %v1605_v36, 5  ;;  %v1655_v3 = vperm.slane %v1605_v36, 7  ;;  %v1620_v39 = vperm.slane %v1605_v36, 2  ;;  %4088 = vpow2.f32 %v1474_v54 }
 0x6c0   : > { %v1813_v5 = vmul.f32 %v4087_v4, %v1811_v55  ;;  %1618 = vperm.xlu2 %3969, %v1613_v63   ;;  %1611 = vperm.xlu1 %3968, %v1606_v2   ;;  %vm1818_vm4 = vweird.f32 %v4087_v4 }
 0x6c1   : > { %vm1819_vm15 = vmor %vm1817_vm0, %vm1818_vm4 }
 0x6c2   : > { %v1814_v10 = vsub.f32 1.0, %v1813_v5 }
 0x6c4   : > { %v1815_v12 = vmul.f32 %v4087_v4, %v1814_v10 }
 0x6c5   : > { %v4089_v41 = vpop.eup %4088 }
 0x6c6   : > { %v1816_v13 = vadd.f32 %v4087_v4, %v1815_v12  ;;  %v1476_v7 = vsel %vm1408_vm5, %v4089_v41, 0.0 }
 0x6c8   : > { %v1820_v18 = vsel %vm1819_vm15, %v4087_v4, %v1816_v13  ;;  %1632 = vperm.xlu1 %3968, %v1627_v9  }
 0x6c9   : > { %v1825_v48 = vsel %vm1822_vm1, %v1824_v31, %v1820_v18 }
 0x6ca   : > { %v4824_v25 = vmul.f32 %v4083_v42, %v1825_v48  ;;  %v1648_v42 = vperm.slane %v1605_v36, 6 }
 0x6cc   : > { %v1828_v58 = vperm.slane %v4824_v25, 0  ;;  %v1835_v51 = vperm.slane %v4824_v25, 1  ;;  %v1849_v22 = vperm.slane %v4824_v25, 3  ;;  %v1856_v20 = vperm.slane %v4824_v25, 4 }
 0x6cd   : > { %v1842_v11 = vperm.slane %v4824_v25, 2  ;;  %v1863_v44 = vperm.slane %v4824_v25, 5 }
 0x6ce   : > { %1833 = vperm.xlu0 %3970, %v1828_v58  }
 0x6d0   : > { %1840 = vperm.xlu1 %3968, %v1835_v51  }
 0x6d6   : > { %1639 = vperm.xlu0 %3970, %v1634_v27  }
 0x6d8   : > { %1646 = vperm.xlu1 %3968, %v1641_v26  }
 0x6de   : > { %1854 = vperm.xlu0 %3970, %v1849_v22  }
 0x6e0   : > { %1861 = vperm.xlu1 %3968, %v1856_v20  }
 0x6e6   : > { %1660 = vperm.xlu0 %3970, %v1655_v3  }
 0x6e9   : > { %1693 = vmax.xlane.f32.xlu2 %v1692_v24 }
 0x701   : > { %1625 = vperm.xlu2 %3969, %v1620_v39  }
 0x709   : > { %1847 = vperm.xlu2 %3969, %v1842_v11  }
 0x70a   : > { %1477 = vadd.xlane.f32.xlu1 %v1476_v7 }
 0x711   : > { %1653 = vperm.xlu2 %3969, %v1648_v42  }
 0x719   : > { %1868 = vperm.xlu2 %3969, %v1863_v44  }
 0x71a   : > { %v4839_v49 = vpop.permute.xlu2 %1618 }
 0x732   : > { %v4837_v46 = vpop.permute.xlu1 %1611 }
 0x73a   : > { %v4841_v14 = vpop.permute.xlu1 %1632 }
 0x740   : > { %v4850_v22 = vpop.permute.xlu0 %1833 }
 0x742   : > { %v4843_v57 = vpop.permute.xlu1 %1840 }
 0x748   : > { %v4852_v16 = vpop.permute.xlu0 %1639 }
 0x74a   : > { %v4846_v55 = vpop.permute.xlu1 %1646 }
 0x750   : > { %v4854_v20 = vpop.permute.xlu0 %1854 }
 0x752   : > { %v4848_v15 = vpop.permute.xlu1 %1861 }
 0x758   : > { %v4856_v33 = vpop.permute.xlu0 %1660 }
 0x75c   : > { %v1694_v52 = vpop.xlane.xlu2 %1693 }
 0x75d   : > { %v1695_v53 = vsub.f32 %v1691_v35, %v1694_v52 }
 0x75f   : > { %v1696_v8 = vmul.f32 1.442695, %v1695_v53 }
 0x761   : > { %4090 = vpow2.f32 %v1696_v8 }
 0x767   : > { %v4091_v59 = vpop.eup %4090 }
 0x768   : > { %v1698_v62 = vsel %vm1408_vm5, %v4091_v59, 0.0 }
 0x769   : > { %1699 = vadd.xlane.f32.xlu0 %v1698_v62 }
 0x77d   : > { %v1478_v34 = vpop.xlane.xlu1 %1477 }
 0x77e   : > { %4092 = vrcp.f32 %v1478_v34  ;;  %v1490_v2 = vand.u32 2147483648, %v1478_v34  ;;  %v1488_v5 = vand.u32 2147483647, %v1478_v34  ;;  %vm1484_vm2 = vweird.f32 %v1478_v34 }
 0x780   : > { %v1491_v37 = vor.u32 1.1754944e-38, %v1490_v2  ;;  %vm1489_vm4 = vcmp.eq.f32.partialorder %v1488_v5, 8.507059e+37  ;;  %v1870_v2 = vperm.slane %v4824_v25, 6 }
 0x784   : > { %v4093_v43 = vpop.eup %4092 }
 0x785   : > { %v1480_v36 = vmul.f32 %v4093_v43, %v1478_v34  ;;  %vm1485_vm0 = vweird.f32 %v4093_v43 }
 0x786   : > { %vm1486_vm3 = vmor %vm1484_vm2, %vm1485_vm0 }
 0x787   : > { %v1481_v63 = vsub.f32 1.0, %v1480_v36 }
 0x789   : > { %v1482_v4 = vmul.f32 %v4093_v43, %v1481_v63 }
 0x78b   : > { %v1483_v10 = vadd.f32 %v4093_v43, %v1482_v4  ;;  %v1626_v4 = vpop.permute.xlu2 %1625 }
 0x78d   : > { %v1487_v12 = vsel %vm1486_vm3, %v4093_v43, %v1483_v10  ;;  %vm5569_vm3 = vcmask 130048  }
 0x78e   : > { %v1492_v61 = vsel %vm1489_vm4, %v1491_v37, %v1487_v12  ;;  %vm5568_vm4 = vcmask 195584  }
 0x78f   : > { %v1494_v13 = vmul.f32 %v4089_v41, %v1492_v61  ;;  %v1409_v61 = vsel %vm1408_vm5, %v4794_v17, 0.0 }
 0x791   : > { %v1509_v9 = vperm.slane %v1494_v13, 2  ;;  %v1502_v31 = vperm.slane %v1494_v13, 1  ;;  %v1495_v18 = vperm.slane %v1494_v13, 0  ;;  %v1537_v48 = vperm.slane %v1494_v13, 6 }
 0x792   : > { %v1516_v58 = vperm.slane %v1494_v13, 3  ;;  %v1523_v51 = vperm.slane %v1494_v13, 4  ;;  %v1530_v27 = vperm.slane %v1494_v13, 5  ;;  %v1544_v26 = vperm.slane %v1494_v13, 7 }
 0x793   : > { %1514 = vperm.xlu1 %3968, %v1509_v9   ;;  %1507 = vperm.xlu0 %3970, %v1502_v31   ;;  %v1848_v5 = vpop.permute.xlu2 %1847 }
 0x794   : > { %1500 = vperm.xlu2 %3969, %v1495_v18  }
 0x79b   : > { %1542 = vperm.xlu1 %3968, %v1537_v48   ;;  %1521 = vperm.xlu0 %3970, %v1516_v58   ;;  %v4860_v10 = vpop.permute.xlu2 %1653 }
 0x79c   : > { %1528 = vperm.xlu2 %3969, %v1523_v51  }
 0x7a3   : > { %1535 = vperm.xlu0 %3970, %v1530_v27   ;;  %v1869_v37 = vpop.permute.xlu2 %1868 }
 0x7a4   : > { %1549 = vperm.xlu2 %3969, %v1544_v26  }
 0x7dc   : > { %v1700_v3 = vpop.xlane.xlu0 %1699 }
 0x7dd   : > { %4094 = vrcp.f32 %v1700_v3  ;;  %v1712_v38 = vand.u32 2147483648, %v1700_v3  ;;  %v1710_v39 = vand.u32 2147483647, %v1700_v3  ;;  %vm1706_vm1 = vweird.f32 %v1700_v3 }
 0x7df   : > { %v1713_v11 = vor.u32 1.1754944e-38, %v1712_v38  ;;  %vm1711_vm2 = vcmp.eq.f32.partialorder %v1710_v39, 8.507059e+37 }
 0x7e3   : > { %v4095_v35 = vpop.eup %4094 }
 0x7e4   : > { %v1702_v24 = vmul.f32 %v4095_v35, %v1700_v3  ;;  %vm1707_vm15 = vweird.f32 %v4095_v35 }
 0x7e5   : > { %vm1708_vm0 = vmor %vm1706_vm1, %vm1707_vm15  ;;  %vm5581_vm15 = vcmask 23552  }
 0x7e6   : > { %v1703_v32 = vsub.f32 1.0, %v1702_v24  ;;  %vm5582_vm1 = vmmov %vm5581_vm15 }
 0x7e8   : > { %v1704_v54 = vmul.f32 %v4095_v35, %v1703_v32 }
 0x7ea   : > { %v1705_v41 = vadd.f32 %v4095_v35, %v1704_v54 }
 0x7ec   : > { %v1709_v7 = vsel %vm1708_vm0, %v4095_v35, %v1705_v41  ;;  %vm5567_vm0 = vcmask 523264  }
 0x7ed   : > { %v1714_v42 = vsel %vm1711_vm2, %v1713_v11, %v1709_v7 }
 0x7ee   : > { %v1716_v44 = vmul.f32 %v4091_v59, %v1714_v42  ;;  %v1877_v59 = vperm.slane %v4824_v25, 7  ;;  %v1501_v12 = vpop.permute.xlu2 %1500 }
 0x7ef   : > { %v1884_v38 = vsel %vm1408_vm5, %v1501_v12, %v4837_v46 }
 0x7f0   : > { %v1717_v52 = vperm.slane %v1716_v44, 0  ;;  %v1752_v53 = vperm.slane %v1716_v44, 5  ;;  %v1724_v8 = vperm.slane %v1716_v44, 1  ;;  %v1738_v62 = vperm.slane %v1716_v44, 3 }
 0x7f1   : > { %v1766_v34 = vperm.slane %v1716_v44, 7  ;;  %v1731_v43 = vperm.slane %v1716_v44, 2  ;;  %v1759_v36 = vperm.slane %v1716_v44, 6  ;;  %v1745_v63 = vperm.slane %v1716_v44, 4 }
 0x7f2   : > { %1722 = vperm.xlu1 %3968, %v1717_v52   ;;  %1757 = vperm.xlu0 %3970, %v1752_v53  }
 0x7f3   : > { %1729 = vperm.xlu2 %3969, %v1724_v8  }
 0x7f6   : > { %v1529_v13 = vpop.permute.xlu2 %1528 }
 0x7f7   : > { %v1888_v41 = vsel %vm1408_vm5, %v1529_v13, %v4852_v16 }
 0x7fa   : > { %1743 = vperm.xlu1 %3968, %v1738_v62   ;;  %1771 = vperm.xlu0 %3970, %v1766_v34  }
 0x7fb   : > { %1736 = vperm.xlu2 %3969, %v1731_v43  }
 0x7fe   : > { %v1550_v9 = vpop.permute.xlu2 %1549 }
 0x802   : > { %1764 = vperm.xlu1 %3968, %v1759_v36  }
 0x803   : > { %1750 = vperm.xlu2 %3969, %v1745_v63  }
 0x805   : > { %v1508_v31 = vpop.permute.xlu0 %1507  ;;  %v1515_v48 = vpop.permute.xlu1 %1514 }
 0x806   : > { %v1885_v26 = vsel %vm1408_vm5, %v1508_v31, %v4839_v49  ;;  %v1886_v17 = vsel %vm1408_vm5, %v1515_v48, %v1626_v4 }
 0x80a   : > { %1875 = vperm.xlu1 %3968, %v1870_v2  }
 0x80b   : > { %1882 = vperm.xlu2 %3969, %v1877_v59  }
 0x80d   : > { %v1522_v58 = vpop.permute.xlu0 %1521  ;;  %v4864_v25 = vpop.permute.xlu1 %1542 }
 0x815   : > { %v1536_v27 = vpop.permute.xlu0 %1535 }
 0x816   : > { %v1889_v46 = vsel %vm1408_vm5, %v1536_v27, %v4846_v55 }
 0x834   : > { %1410 = vadd.xlane.f32.xlu1 %v1409_v61 }
 0x84d   : > { %v1730_v18 = vpop.permute.xlu2 %1729 }
 0x84e   : > { %v1894_v3 = vsel %vm5569_vm3, %v1885_v26, %v1730_v18 }
 0x84f   : > { %v1903_v35 = vsel %vm5568_vm4, %v1894_v3, %v4843_v57 }
 0x850   : > { %v1911_v49 = vmul.f32 %v1903_v35, %v4638_v45 }
 0x852   : > { %v1925_v16 = vsel %vm465_vm7, %v1911_v49, 0.0 }
 0x853   : > { %v1926_v34 = vrot.slane %v1925_v16, 4 }
 0x855   : > { %v1737_v51 = vpop.permute.xlu2 %1736  ;;  %v1927_v61 = vadd.f32 %v1926_v34, %v1925_v16 }
 0x856   : > { %v1895_v24 = vsel %vm5569_vm3, %v1886_v17, %v1737_v51 }
 0x857   : > { %v1904_v11 = vsel %vm5568_vm4, %v1895_v24, %v1848_v5  ;;  %v1928_v51 = vrot.slane %v1927_v61, 2 }
 0x858   : > { %v1912_v52 = vmul.f32 %v1904_v11, %v4665_v28 }
 0x85a   : > { %v1932_v55 = vsel %vm465_vm7, %v1912_v52, 0.0 }
 0x85b   : > { %v1933_v5 = vrot.slane %v1932_v55, 4 }
 0x85d   : > { %v1751_v32 = vpop.permute.xlu2 %1750  ;;  %v1934_v48 = vadd.f32 %v1933_v5, %v1932_v55 }
 0x85e   : > { %v1897_v42 = vsel %vm5569_vm3, %v1888_v41, %v1751_v32  ;;  %v1929_v32 = vadd.f32 %v1928_v51, %v1927_v61  ;;  %v1890_v41 = vsel %vm1408_vm5, %v4864_v25, %v4860_v10 }
 0x85f   : > { %v1906_v45 = vsel %vm5568_vm4, %v1897_v42, %v4848_v15  ;;  %v1935_v35 = vrot.slane %v1934_v48, 2 }
 0x860   : > { %v1914_v28 = vmul.f32 %v1906_v45, %v4681_v0 }
 0x861   : > { %v1936_v49 = vadd.f32 %v1935_v35, %v1934_v48  ;;  %v345_v48 = vld [vmem:[%s5559_s2 + $0x50] sm:$0xff] }
 0x862   : > { %v369_v51 = vpack.c.bf16 %v345_v48, %v345_v48 }
 0x864   : > { %v1723_v54 = vpop.permute.xlu1 %1722  ;;  %v1758_v39 = vpop.permute.xlu0 %1757 }
 0x865   : > { %v1893_v7 = vsel %vm5569_vm3, %v1884_v38, %v1723_v54  ;;  %v1898_v8 = vsel %vm5569_vm3, %v1889_v46, %v1758_v39  ;;  %v1883_v63 = vpop.permute.xlu2 %1882 }
 0x866   : > { %v1902_v57 = vsel %vm5568_vm4, %v1893_v7, %v4850_v22  ;;  %v1891_v22 = vsel %vm1408_vm5, %v1550_v9, %v4856_v33  ;;  %v1907_v43 = vsel %vm5568_vm4, %v1898_v8, %v1869_v37  ;;  %v1946_v37 = vsel %vm465_vm7, %v1914_v28, 0.0 }
 0x867   : > { %v1910_v44 = vmul.f32 %v1902_v57, %v4635_v56  ;;  %v1887_v56 = vsel %vm1408_vm5, %v1522_v58, %v4841_v14  ;;  %v1915_v12 = vmul.f32 %v1907_v43, %v4684_v1  ;;  %v1947_v58 = vrot.slane %v1946_v37, 4 }
 0x868   : > { %v1930_v7 = vrot.slane %v1929_v32, 1  ;;  %v1937_v8 = vrot.slane %v1936_v49, 1 }
 0x869   : > { %v1918_v53 = vsel %vm465_vm7, %v1910_v44, 0.0  ;;  %v1948_v24 = vadd.f32 %v1947_v58, %v1946_v37  ;;  %v346_v58 = vld [vmem:[%s5559_s2 + $0x58] sm:$0xff] }
 0x86a   : > { %v1919_v62 = vrot.slane %v1918_v53, 4  ;;  %v1938_v43 = vadd.f32 %v1937_v8, %v1936_v49  ;;  %v388_v49 = vld [vmem:[%s5560_s3 + $0x28] sm:$0xff] }
 0x86b   : > { %v1949_v11 = vrot.slane %v1948_v24, 2 }
 0x86c   : > { %v1744_v36 = vpop.permute.xlu1 %1743  ;;  %v1772_v15 = vpop.permute.xlu0 %1771  ;;  %v1920_v4 = vadd.f32 %v1919_v62, %v1918_v53 }
 0x86d   : > { %v1896_v2 = vsel %vm5569_vm3, %v1887_v56, %v1744_v36  ;;  %v1900_v59 = vsel %vm5569_vm3, %v1891_v22, %v1772_v15  ;;  %v1950_v62 = vadd.f32 %v1949_v11, %v1948_v24  ;;  %v1931_v22 = vadd.f32 %v1930_v7, %v1929_v32  ;;  %v385_v7 = vld [vmem:[%s5560_s3 + $0x10] sm:$0xff] }
 0x86e   : > { %v1905_v33 = vsel %vm5568_vm4, %v1896_v2, %v4854_v20  ;;  %v1909_v14 = vsel %vm5568_vm4, %v1900_v59, %v1883_v63  ;;  %v1921_v31 = vrot.slane %v1920_v4, 2  ;;  %v1953_v20 = vsel %vm465_vm7, %v1915_v12, 0.0 }
 0x86f   : > { %v1913_v0 = vmul.f32 %v1905_v33, %v4668_v29  ;;  %v1917_v9 = vmul.f32 %v1909_v14, %v4693_v23  ;;  %v1954_v29 = vrot.slane %v1953_v20, 4  ;;  %v1951_v36 = vrot.slane %v1950_v62, 1 }
 0x870   : > { %v1922_v3 = vadd.f32 %v1921_v31, %v1920_v4 }
 0x871   : > { %v1939_v13 = vsel %vm465_vm7, %v1913_v0, 0.0  ;;  %v1967_v1 = vsel %vm465_vm7, %v1917_v9, 0.0  ;;  %v1955_v23 = vadd.f32 %v1954_v29, %v1953_v20  ;;  %v1952_v33 = vadd.f32 %v1951_v36, %v1950_v62  ;;  %v343_v20 = vld [vmem:[%s5559_s2 + $0x40] sm:$0xff] }
 0x872   : > { %v1940_v18 = vrot.slane %v1939_v13, 4  ;;  %v1968_v38 = vrot.slane %v1967_v1, 4  ;;  %v1923_v54 = vrot.slane %v1922_v3, 1  ;;  %v2063_v29 = vunpack.c.l.b16 %v369_v51 }
 0x873   : > { %v1956_v16 = vrot.slane %v1955_v23, 2 }
 0x874   : > { %v1941_v27 = vadd.f32 %v1940_v18, %v1939_v13  ;;  %v1765_v26 = vpop.permute.xlu1 %1764  ;;  %v1969_v42 = vadd.f32 %v1968_v38, %v1967_v1  ;;  %v1924_v52 = vadd.f32 %v1923_v54, %v1922_v3  ;;  %v367_v1 = vpack.c.bf16 %v343_v20, %v343_v20  ;;  %v389_v38 = vld [vmem:[%s5560_s3 + $0x30] sm:$0xff]  ;;  %v390_v54 = vld [vmem:[%s5560_s3 + $0x38] sm:$0xff] }
 0x875   : > { %v1899_v57 = vsel %vm5569_vm3, %v1890_v41, %v1765_v26  ;;  %v1957_v34 = vadd.f32 %v1956_v16, %v1955_v23  ;;  %v344_v26 = vld [vmem:[%s5559_s2 + $0x48] sm:$0xff]  ;;  %v387_v23 = vld [vmem:[%s5560_s3 + $0x20] sm:$0xff]  ;;  %v406_v41 = vpack.c.bf16 %v390_v54, %v390_v54  ;;  %v326_v54 = vld [vmem:[#allocation2 + $0x38] sm:$0xff] }
 0x876   : > { %v1942_v17 = vrot.slane %v1941_v27, 2  ;;  %v1970_v56 = vrot.slane %v1969_v42, 2  ;;  %v1982_v28 = vsel %vm522_vm6, %v1931_v22, %v1924_v52  ;;  %v368_v3 = vpack.c.bf16 %v344_v26, %v344_v26 }
 0x877   : > { %v1983_v59 = vsel %vm523_vm8, %v1938_v43, %v1982_v28  ;;  %v1958_v4 = vrot.slane %v1957_v34, 1  ;;  %v2061_v35 = vunpack.c.l.b16 %v367_v1  ;;  %v403_v11 = vpack.c.bf16 %v387_v23, %v387_v23 }
 0x878   : > { %v1943_v39 = vadd.f32 %v1942_v17, %v1941_v27  ;;  %v1971_v63 = vadd.f32 %v1970_v56, %v1969_v42  ;;  %v370_v27 = vpack.c.bf16 %v346_v58, %v346_v58  ;;  %v2062_v24 = vunpack.c.l.b16 %v368_v3  ;;  %v386_v42 = vld [vmem:[%s5560_s3 + $0x18] sm:$0xff] }
 0x879   : > { %v1959_v61 = vadd.f32 %v1958_v4, %v1957_v34  ;;  %v2010_v16 = vunpack.c.l.b16 %v406_v41  ;;  %v323_v41 = vld [vmem:[#allocation2 + $0x20] sm:$0xff] }
 0x87a   : > { %v1944_v45 = vrot.slane %v1943_v39, 1  ;;  %v1972_v5 = vrot.slane %v1971_v63, 1  ;;  %v2064_v17 = vunpack.c.l.b16 %v370_v27 }
 0x87c   : > { %v1876_v44 = vpop.permute.xlu1 %1875  ;;  %v1945_v55 = vadd.f32 %v1944_v45, %v1943_v39  ;;  %v1973_v13 = vadd.f32 %v1972_v5, %v1971_v63  ;;  %v2066_v32 = vpack.c.b16 %v2064_v17, %v2063_v29  ;;  %v405_v39 = vpack.c.bf16 %v389_v38, %v389_v38  ;;  %v325_v38 = vld [vmem:[#allocation2 + $0x30] sm:$0xff] }
 0x87d   : > { %v1908_v46 = vsel %vm5568_vm4, %v1899_v57, %v1876_v44  ;;  %v2065_v57 = vpack.c.b16 %v2062_v24, %v2061_v35  ;;  %v404_v44 = vpack.c.bf16 %v388_v49, %v388_v49  ;;  %v2007_v45 = vunpack.c.l.b16 %v403_v11  ;;  %v324_v49 = vld [vmem:[#allocation2 + $0x28] sm:$0xff] }
 0x87e   : > { %v1916_v53 = vmul.f32 %v1908_v46, %v4690_v21  ;;  %v1984_v21 = vsel %vm525_vm9, %v1945_v55, %v1983_v59  ;;  %2078 = vmatpush.bf16.msrb.mxu2 %v2066_v32  ;;  %v401_v46 = vpack.c.bf16 %v385_v7, %v385_v7  ;;  %v2009_v52 = vunpack.c.l.b16 %v405_v39  ;;  %v4221_v55 = vld [vmem:[%s4392_s19] sm:$0xff] }
 0x87f   : > { %v1985_v0 = vsel %vm527_vm10, %v1952_v33, %v1984_v21  ;;  %v2008_v8 = vunpack.c.l.b16 %v404_v44  ;;  %v383_v59 = vld [vmem:[%s5560_s3] sm:$0xff]  ;;  %vm5583_vm4 = vcmask 23552   ;;  %v333_v23 = vpack.c.bf16 %v325_v38, %v325_v38 }
 0x880   : > { %v1960_v10 = vsel %vm465_vm7, %v1916_v53, 0.0  ;;  %v1986_v9 = vsel %vm529_vm11, %v1959_v61, %v1985_v0  ;;  %v402_v53 = vpack.c.bf16 %v386_v42, %v386_v42  ;;  %v2014_v62 = vpack.c.b16 %v2010_v16, %v2009_v52 }
 0x881   : > { %v1961_v25 = vrot.slane %v1960_v10, 4  ;;  %v2013_v22 = vpack.c.b16 %v2008_v8, %v2007_v45  ;;  %v2005_v56 = vunpack.c.l.b16 %v401_v46  ;;  %v399_v4 = vpack.c.bf16 %v383_v59, %v383_v59  ;;  %v4982_v45 = vld [vmem:[%s5561_s4 + $0x10] sm:$0xff]  ;;  %v4222_v8 = vld [vmem:[%s5561_s4 + $0x8] sm:$0xf] }
 0x882   : > { %2079 = vmatpush.bf16.msrb.mxu2 %v2065_v57  ;;  %2027 = vmatpush.bf16.msra.mxu0 %v2014_v62  ;;  %v334_v39 = vpack.c.bf16 %v326_v54, %v326_v54  ;;  %v2135_v11 = vunpack.c.l.b16 %v333_v23  ;;  %v331_v42 = vpack.c.bf16 %v323_v41, %v323_v41  ;;  %v332_v57 = vpack.c.bf16 %v324_v49, %v324_v49 }
 0x883   : > { %v1962_v15 = vadd.f32 %v1961_v25, %v1960_v10  ;;  %v2006_v10 = vunpack.c.l.b16 %v402_v53  ;;  %v2003_v33 = vunpack.c.l.b16 %v399_v4  ;;  %v2159_v53 = vperm.slane %v4982_v45, 1 }
 0x884   : > { %v2136_v7 = vunpack.c.l.b16 %v334_v39  ;;  %v2133_v46 = vunpack.c.l.b16 %v331_v42  ;;  %v2134_v52 = vunpack.c.l.b16 %v332_v57  ;;  %v2086_v62 = vperm.slane %v4222_v8, 1 }
 0x885   : > { %v1963_v2 = vrot.slane %v1962_v15, 2  ;;  %v2012_v25 = vpack.c.b16 %v2006_v10, %v2005_v56 }
 0x886   : > { %2028 = vmatpush.bf16.msra.mxu0 %v2013_v22  ;;  %v2138_v44 = vpack.c.b16 %v2136_v7, %v2135_v11  ;;  %v2137_v16 = vpack.c.b16 %v2134_v52, %v2133_v46 }
 0x887   : > { %v1964_v14 = vadd.f32 %v1963_v2, %v1962_v15 }
 0x889   : > { %v1965_v12 = vrot.slane %v1964_v14, 1 }
 0x88a   : > { %2029 = vmatpush.bf16.msra.mxu0 %v2012_v25 }
 0x88b   : > { %v1966_v37 = vadd.f32 %v1965_v12, %v1964_v14 }
 0x88d   : > { %v1987_v31 = vsel %vm5571_vm12, %v1966_v37, %v1986_v9  ;;  %v1994_v37 = vperm.slane %v4759_v60, 0 }
 0x88e   : > { %v1988_v18 = vsel %vm5570_vm13, %v1973_v13, %v1987_v31 }
 0x88f   : > { %1989 = vrot.lane.b32.xlu0 %v1988_v18, %s4307_s26 }
 0x897   : > { %2161 = vrot.lane.b32.xlu0 %v2159_v53, %s4307_s26 }
 0x8a7   : > { %v1411_v34 = vpop.xlane.xlu1 %1410 }
 0x8a8   : > { %v1434_v28 = vmul.f32 %v4221_v55, %v1411_v34 }
 0x8aa   : > { %v1435_v43 = vsub.f32 %v1434_v28, %v4811_v30  ;;  %v384_v30 = vld [vmem:[%s5560_s3 + $0x8] sm:$0xff] }
 0x8ab   : > { %v400_v21 = vpack.c.bf16 %v384_v30, %v384_v30 }
 0x8ac   : > { %v1436_v36 = vmul.f32 0.14285715, %v1435_v43 }
 0x8ad   : > { %v2004_v14 = vunpack.c.l.b16 %v400_v21 }
 0x8ae   : > { %v4958_v15 = vadd.f32 %v4221_v55, %v1436_v36 }
 0x8af   : > { %v2011_v5 = vpack.c.b16 %v2004_v14, %v2003_v33 }
 0x8b0   : > { %3870 = vmatpush.xpose.msk.msra.mxu2 %vm5581_vm15, %v4958_v15  ;;  %3016 = vmatpush.msra.mxu1 %v4958_v15  ;;  %v2088_v63 = vmul.f32 %v4958_v15, %v4958_v15 }
 0x8b1   : > { %2030 = vmatpush.bf16.msra.mxu0 %v2011_v5 }
 0x8b2   : > { %v2089_v2 = vsel %vm5582_vm1, %v2088_v63, 0.0 }
 0x8b3   : > { %2090 = vadd.xlane.f32.xlu2 %v2089_v2 }
 0x8b5   : > { %2150 = vmatpush.bf16.msrb.mxu0 %v2138_v44 }
 0x8b9   : > { %2151 = vmatpush.bf16.msrb.mxu0 %v2137_v16 }
 0x901   : > { %v1990_v12 = vpop.permute.xlu0 %1989 }
 0x902   : > { %v1992_v0 = vsel %vm465_vm7, %v4425_v6, %v1990_v12 }
 0x903   : > { %v1993_v61 = vpack.c.bf16 %v1992_v0, %v1992_v0 }
 0x905   : > { %3867 = vmatmul.msk.bf16.vlgmr.msra.gmra.mxu0 %vm5567_vm0, %v1993_v61 }
 0x909   : > { %v2162_v33 = vpop.permute.xlu0 %2161 }
 0x926   : > { %v2091_v55 = vpop.xlane.xlu2 %2090 }
 0x927   : > { %v2116_v28 = vperm.slane %v2091_v55, %v4419_v50 }
 0x929   : > { %v2124_v36 = vadd.f32 %v2116_v28, %v2091_v55 }
 0x982   : > { %v2032_v13 = vpop.f32.mrf.mxu0 }
 0x983   : > { %v2033_v9 = vadd.f32 %v2032_v13, %v1994_v37 }
 0x985   : > { %v3868_v31 = vmul.f32 -1.442695, %v2033_v9 }
 0x987   : > { %4096 = vpow2.f32 %v3868_v31  ;;  %v2171_v31 = vperm.slane %v4982_v45, 3 }
 0x98a   : > { %v2034_v18 = vpop.f32.mrf.mxu0 }
 0x98b   : > { %v2157_v18 = vperm.slane %v4982_v45, 0 }
 0x98d   : > { %v4097_v48 = vpop.eup %4096 }
 0x98e   : > { %v2039_v58 = vadd.f32 1.0, %v4097_v48 }
 0x990   : > { %4098 = vrcp.f32 %v2039_v58  ;;  %v2051_v26 = vand.u32 2147483648, %v2039_v58  ;;  %v2049_v3 = vand.u32 2147483647, %v2039_v58  ;;  %vm2045_vm15 = vweird.f32 %v2039_v58 }
 0x992   : > { %v2052_v17 = vor.u32 1.1754944e-38, %v2051_v26  ;;  %vm2050_vm0 = vcmp.eq.f32.partialorder %v2049_v3, 8.507059e+37 }
 0x996   : > { %v4099_v20 = vpop.eup %4098 }
 0x997   : > { %v2041_v51 = vmul.f32 %v4099_v20, %v2039_v58  ;;  %vm2046_vm2 = vweird.f32 %v4099_v20 }
 0x998   : > { %vm2047_vm1 = vmor %vm2045_vm15, %vm2046_vm2 }
 0x999   : > { %v2042_v27 = vsub.f32 1.0, %v2041_v51  ;;  %v5013_v51 = vperm.slane %v4982_v45, 4 }
 0x99b   : > { %v2043_v1 = vmul.f32 %v4099_v20, %v2042_v27 }
 0x99d   : > { %v2044_v29 = vadd.f32 %v4099_v20, %v2043_v1 }
 0x99f   : > { %v2048_v60 = vsel %vm2047_vm1, %v4099_v20, %v2044_v29 }
 0x9a0   : > { %v2053_v35 = vsel %vm2050_vm0, %v2052_v17, %v2048_v60 }
 0x9a1   : > { %v2055_v24 = vmul.f32 %v2053_v35, %v2033_v9 }
 0x9a3   : > { %v2056_v32 = vpack.c.bf16 %v2055_v24, %v2055_v24 }
 0x9a5   : > { %3869 = vmatmul.msk.bf16.vlgmr.msrb.gmra.mxu2 %vm465_vm7, %v2056_v32 }
 0x9b5   : > { %3871 = vmatmul.msk.f32.vlgmr.msra.gmra.mxu2 %vm5583_vm4, %v4958_v15 }
 0xa28   : > { %v2081_v22 = vpop.f32.mrf.mxu2 }
 0xa29   : > { %v2085_v56 = vadd.f32 %v2081_v22, %v4425_v6  ;;  %v2165_v6 = vperm.slane %v4982_v45, 2  ;;  %v349_v22 = vld [vmem:[%s5559_s2 + $0x70] sm:$0xff] }
 0xa2a   : > { %v373_v55 = vpack.c.bf16 %v349_v22, %v349_v22 }
 0xa2b   : > { %v4990_v10 = vadd.f32 %v2086_v62, %v2085_v56  ;;  %v350_v56 = vld [vmem:[%s5559_s2 + $0x78] sm:$0xff] }
 0xa2c   : > { %v374_v28 = vpack.c.bf16 %v350_v56, %v350_v56 }
 0xa2d   : > { %v2128_v25 = vpack.c.bf16 %v4990_v10, %v4990_v10 }
 0xa2f   : > { %3872 = vmatmul.msk.bf16.vlgmr.msrb.gmra.mxu0 %vm465_vm7, %v2128_v25 }
 0xa30   : > { %v2083_v34 = vpop.f32.mrf.mxu2 }
 0xa38   : > { %v2112_v43 = vpop.f32.mrf.mxu2 }
 0xa39   : > { %v2125_v63 = vmul.f32 2.0, %v2112_v43 }
 0xa3b   : > { %v2126_v2 = vsub.f32 %v2124_v36, %v2125_v63 }
 0xa3d   : > { %v2127_v59 = vmax.f32 %v2126_v2, 0.0 }
 0xa3f   : > { %v2241_v30 = vperm.slane %v2127_v59, 4  ;;  %v2234_v4 = vperm.slane %v2127_v59, 3  ;;  %v2213_v21 = vperm.slane %v2127_v59, 0  ;;  %v2220_v0 = vperm.slane %v2127_v59, 1 }
 0xa40   : > { %v2227_v61 = vperm.slane %v2127_v59, 2  ;;  %v2248_v37 = vperm.slane %v2127_v59, 5  ;;  %v2255_v13 = vperm.slane %v2127_v59, 6  ;;  %v2262_v9 = vperm.slane %v2127_v59, 7 }
 0xa41   : > { %2246 = vperm.xlu2 %3969, %v2241_v30   ;;  %2239 = vperm.xlu1 %3968, %v2234_v4   ;;  %v2481_v59 = vunpack.c.l.b16 %v373_v55  ;;  %v2482_v30 = vunpack.c.l.b16 %v374_v28  ;;  %v347_v4 = vld [vmem:[%s5559_s2 + $0x60] sm:$0xff] }
 0xa42   : > { %2218 = vperm.xlu0 %3970, %v2213_v21   ;;  %v348_v21 = vld [vmem:[%s5559_s2 + $0x68] sm:$0xff] }
 0xa49   : > { %2167 = vrot.lane.b32.xlu1 %v2165_v6, %s4309_s29  ;;  %3971 = vset.pattern.permute.xlu2 %v4310_v19 }
 0xa4a   : > { %3973 = vset.pattern.permute.xlu1 %v4310_v19 }
 0xa9b   : > { %v2247_v7 = vpop.permute.xlu2 %2246 }
 0xa9c   : > { %v2274_v16 = vmul.f32 %v5013_v51, %v2247_v7 }
 0xaac   : > { %v5000_v14 = vpop.f32.mrf.mxu0 }
 0xaad   : > { %v2164_v5 = vadd.f32 %v2162_v33, %v5000_v14  ;;  %v5009_v48 = vadd.f32 %v2157_v18, %v5000_v14  ;;  %v371_v33 = vpack.c.bf16 %v347_v4, %v347_v4 }
 0xaaf   : > { %2202 = vrot.lane.b32.xlu0 %v2164_v5, %s4308_s27  ;;  %v2180_v20 = vrot.slane %v5009_v48, 3  ;;  %v2185_v26 = vperm.slane %v5009_v48, 0  ;;  %v2178_v24 = vrot.slane %v5009_v48, 1  ;;  %v2181_v54 = vrot.slane %v5009_v48, 4 }
 0xab0   : > { %v2179_v44 = vrot.slane %v5009_v48, 2  ;;  %v372_v5 = vpack.c.bf16 %v348_v21, %v348_v21 }
 0xab1   : > { %v2188_v3 = vperm.slane %v2180_v20, 0  ;;  %v2186_v41 = vperm.slane %v2178_v24, 0  ;;  %v2189_v11 = vperm.slane %v2181_v54, 0  ;;  %v2183_v24 = vrot.slane %v5009_v48, 6 }
 0xab2   : > { %v2187_v62 = vperm.slane %v2179_v44, 0 }
 0xab3   : > { %v2240_v27 = vpop.permute.xlu1 %2239 }
 0xab4   : > { %v2155_v12 = vpop.f32.mrf.mxu0  ;;  %v2219_v58 = vpop.permute.xlu0 %2218  ;;  %v2273_v60 = vmul.f32 %v5013_v51, %v2240_v27 }
 0xab5   : > { %v2270_v29 = vmul.f32 %v5013_v51, %v2219_v58 }
 0xab7   : > { %2225 = vperm.xlu0 %3970, %v2220_v0  }
 0xabf   : > { %2232 = vperm.xlu0 %3970, %v2227_v61   ;;  %v2182_v61 = vrot.slane %v5009_v48, 5 }
 0xac7   : > { %2253 = vperm.xlu0 %3970, %v2248_v37   ;;  %v2484_v37 = vpack.c.b16 %v2482_v30, %v2481_v59 }
 0xac9   : > { %2505 = vmatpush.bf16.msrb.mxu2 %v2484_v37 }
 0xacf   : > { %2260 = vperm.xlu0 %3970, %v2255_v13   ;;  %v2479_v13 = vunpack.c.l.b16 %v371_v33 }
 0xad7   : > { %2267 = vperm.xlu0 %3970, %v2262_v9   ;;  %v2480_v9 = vunpack.c.l.b16 %v372_v5 }
 0xad9   : > { %v2483_v27 = vpack.c.b16 %v2480_v9, %v2479_v13 }
 0xadb   : > { %2506 = vmatpush.bf16.msrb.mxu2 %v2483_v27 }
 0xadf   : > { %2173 = vrot.lane.b32.xlu0 %v2171_v31, %s4308_s27 }
 0xae0   : > { %3972 = vset.pattern.permute.xlu0 %v4310_v19 }
 0xb21   : > { %v5016_v1 = vpop.permute.xlu0 %2202 }
 0xb22   : > { %v2205_v17 = vadd.f32 %v5016_v1, %v2185_v26  ;;  %v2208_v35 = vadd.f32 %v5016_v1, %v2188_v3  ;;  %v2206_v42 = vadd.f32 %v5016_v1, %v2186_v41  ;;  %v2209_v46 = vadd.f32 %v5016_v1, %v2189_v11 }
 0xb23   : > { %v2207_v36 = vadd.f32 %v5016_v1, %v2187_v62  ;;  %v2190_v3 = vperm.slane %v2182_v61, 0 }
 0xb24   : > { %v5023_v32 = vadd.f32 %v2270_v29, %v2205_v17  ;;  %v5025_v38 = vadd.f32 %v2273_v60, %v2208_v35  ;;  %v5044_v43 = vadd.f32 %v2274_v16, %v2209_v46  ;;  %v2191_v16 = vperm.slane %v2183_v24, 0 }
 0xb25   : > { %v2210_v60 = vadd.f32 %v5016_v1, %v2190_v3 }
 0xb26   : > { %v3873_v23 = vmul.f32 -1.442695, %v5023_v32  ;;  %v3876_v39 = vmul.f32 -1.442695, %v5025_v38  ;;  %v3877_v12 = vmul.f32 -1.442695, %v5044_v43  ;;  %v2211_v56 = vadd.f32 %v5016_v1, %v2191_v16 }
 0xb28   : > { %4100 = vpow2.f32 %v3873_v23 }
 0xb29   : > { %v2226_v49 = vpop.permute.xlu0 %2225  ;;  %4102 = vpow2.f32 %v3876_v39 }
 0xb2a   : > { %v2271_v57 = vmul.f32 %v5013_v51, %v2226_v49 }
 0xb2c   : > { %v5034_v52 = vadd.f32 %v2271_v57, %v2206_v42 }
 0xb2e   : > { %v4101_v53 = vpop.eup %4100  ;;  %v3874_v8 = vmul.f32 -1.442695, %v5034_v52 }
 0xb2f   : > { %v4103_v25 = vpop.eup %4102  ;;  %v2310_v34 = vadd.f32 1.0, %v4101_v53 }
 0xb30   : > { %4104 = vpow2.f32 %v3874_v8  ;;  %v5054_v6 = vadd.f32 1.0, %v4103_v25 }
 0xb31   : > { %4106 = vrcp.f32 %v2310_v34  ;;  %v2233_v63 = vpop.permute.xlu0 %2232  ;;  %v2329_v39 = vand.u32 2147483648, %v2310_v34  ;;  %v2327_v11 = vand.u32 2147483647, %v2310_v34  ;;  %vm2323_vm0 = vweird.f32 %v2310_v34 }
 0xb32   : > { %v2272_v2 = vmul.f32 %v5013_v51, %v2233_v63  ;;  %4108 = vrcp.f32 %v5054_v6 }
 0xb33   : > { %4110 = vpow2.f32 %v3877_v12  ;;  %v2330_v62 = vor.u32 1.1754944e-38, %v2329_v39  ;;  %vm2328_vm15 = vcmp.eq.f32.partialorder %v2327_v11, 8.507059e+37 }
 0xb34   : > { %v5057_v0 = vadd.f32 %v2272_v2, %v2207_v36  ;;  %v2184_v2 = vrot.slane %v5009_v48, 7 }
 0xb36   : > { %v4105_v31 = vpop.eup %4104  ;;  %v3875_v18 = vmul.f32 -1.442695, %v5057_v0  ;;  %v2192_v48 = vperm.slane %v2184_v2, 0 }
 0xb37   : > { %v4107_v58 = vpop.eup %4106  ;;  %v2311_v20 = vadd.f32 1.0, %v4105_v31 }
 0xb38   : > { %v2319_v26 = vmul.f32 %v4107_v58, %v2310_v34  ;;  %4112 = vpow2.f32 %v3875_v18  ;;  %v5065_v54 = vpop.eup %4108  ;;  %vm2324_vm4 = vweird.f32 %v4107_v58 }
 0xb39   : > { %4114 = vrcp.f32 %v2311_v20  ;;  %v2254_v29 = vpop.permute.xlu0 %2253  ;;  %v4111_v49 = vpop.eup %4110  ;;  %vm2325_vm2 = vmor %vm2323_vm0, %vm2324_vm4  ;;  %v2364_v53 = vmul.f32 %v5065_v54, %v5054_v6  ;;  %v2344_v63 = vand.u32 2147483648, %v2311_v20  ;;  %v2342_v4 = vand.u32 2147483647, %v2311_v20 }
 0xb3a   : > { %v2320_v17 = vsub.f32 1.0, %v2319_v26  ;;  %v2275_v35 = vmul.f32 %v5013_v51, %v2254_v29  ;;  %v5077_v36 = vadd.f32 1.0, %v4111_v49  ;;  %vm2338_vm4 = vweird.f32 %v2311_v20 }
 0xb3b   : > { %v2365_v59 = vsub.f32 1.0, %v2364_v53  ;;  %v2345_v13 = vor.u32 1.1754944e-38, %v2344_v63 }
 0xb3c   : > { %v2321_v23 = vmul.f32 %v4107_v58, %v2320_v17  ;;  %v5067_v41 = vadd.f32 %v2275_v35, %v2210_v60 }
 0xb3d   : > { %v2366_v31 = vmul.f32 %v5065_v54, %v2365_v59 }
 0xb3e   : > { %v4113_v7 = vpop.eup %4112  ;;  %v2322_v42 = vadd.f32 %v4107_v58, %v2321_v23  ;;  %v3878_v57 = vmul.f32 -1.442695, %v5067_v41 }
 0xb3f   : > { %v4115_v44 = vpop.eup %4114  ;;  %v5070_v46 = vadd.f32 1.0, %v4113_v7  ;;  %v2367_v24 = vadd.f32 %v5065_v54, %v2366_v31 }
 0xb40   : > { %v2326_v8 = vsel %vm2325_vm2, %v4107_v58, %v2322_v42  ;;  %v2334_v22 = vmul.f32 %v4115_v44, %v2311_v20  ;;  %4116 = vpow2.f32 %v3878_v57  ;;  %vm2339_vm1 = vweird.f32 %v4115_v44 }
 0xb41   : > { %4118 = vrcp.f32 %v5070_v46  ;;  %v2261_v25 = vpop.permute.xlu0 %2260  ;;  %v2331_v34 = vsel %vm2328_vm15, %v2330_v62, %v2326_v8  ;;  %vm2340_vm0 = vmor %vm2338_vm4, %vm2339_vm1  ;;  %vm2343_vm2 = vcmp.eq.f32.partialorder %v2342_v4, 8.507059e+37  ;;  %v2212_v20 = vadd.f32 %v5016_v1, %v2192_v48 }
 0xb42   : > { %v2335_v55 = vsub.f32 1.0, %v2334_v22  ;;  %v2276_v28 = vmul.f32 %v5013_v51, %v2261_v25  ;;  %v2438_v33 = vmul.f32 %v2331_v34, %v5023_v32  ;;  %4120 = vrcp.f32 %v5077_v36 }
 0xb43   : > { %v2357_v60 = vand.u32 2147483647, %v5070_v46  ;;  %v2359_v35 = vand.u32 2147483648, %v5070_v46  ;;  %vm2369_vm15 = vweird.f32 %v5065_v54  ;;  %vm2353_vm4 = vweird.f32 %v5070_v46 }
 0xb44   : > { %v2336_v30 = vmul.f32 %v4115_v44, %v2335_v55  ;;  %v5080_v21 = vadd.f32 %v2276_v28, %v2211_v56  ;;  %v2446_v32 = vpack.c.bf16 %v2438_v33, %v2438_v33 }
 0xb45   : > { %vm2358_vm13 = vcmp.eq.f32.partialorder %v2357_v60, 8.507059e+37  ;;  %v2360_v53 = vor.u32 1.1754944e-38, %v2359_v35 }
 0xb46   : > { %v4117_v5 = vpop.eup %4116  ;;  %v2337_v12 = vadd.f32 %v4115_v44, %v2336_v30  ;;  %v3879_v61 = vmul.f32 -1.442695, %v5080_v21  ;;  %v2463_v11 = vunpack.c.l.b16 %v2446_v32 }
 0xb47   : > { %v4119_v37 = vpop.eup %4118  ;;  %v5085_v9 = vadd.f32 1.0, %v4117_v5 }
 0xb48   : > { %v2341_v18 = vsel %vm2340_vm0, %v4115_v44, %v2337_v12  ;;  %v2349_v58 = vmul.f32 %v4119_v37, %v5070_v46  ;;  %v5097_v23 = vpop.eup %4120  ;;  %vm2354_vm1 = vweird.f32 %v4119_v37  ;;  %vm2368_vm0 = vweird.f32 %v5054_v6 }
 0xb49   : > { %v2346_v27 = vsel %vm2343_vm2, %v2345_v13, %v2341_v18  ;;  %4122 = vrcp.f32 %v5085_v9  ;;  %v2268_v26 = vpop.permute.xlu0 %2267  ;;  %vm5106_vm2 = vmor %vm2368_vm0, %vm2369_vm15  ;;  %v2379_v46 = vmul.f32 %v5097_v23, %v5077_v36  ;;  %v2404_v13 = vand.u32 2147483648, %v5085_v9 }
 0xb4a   : > { %v2439_v3 = vmul.f32 %v2346_v27, %v5034_v52  ;;  %v2350_v29 = vsub.f32 1.0, %v2349_v58  ;;  %4124 = vpow2.f32 %v3879_v61  ;;  %v2277_v17 = vmul.f32 %v5013_v51, %v2268_v26  ;;  %vm2355_vm3 = vmor %vm2353_vm4, %vm2354_vm1 }
 0xb4b   : > { %v2372_v51 = vand.u32 2147483647, %v5054_v6  ;;  %v2374_v52 = vand.u32 2147483648, %v5054_v6  ;;  %v2371_v56 = vsel %vm5106_vm2, %v5065_v54, %v2367_v24  ;;  %v2380_v59 = vsub.f32 1.0, %v2379_v46  ;;  %v354_v24 = vld [vmem:[%s5559_s2 + $0x98] sm:$0xff] }
 0xb4c   : > { %v2447_v39 = vpack.c.bf16 %v2439_v3, %v2439_v3  ;;  %v2351_v49 = vmul.f32 %v4119_v37, %v2350_v29  ;;  %v5099_v1 = vadd.f32 %v2277_v17, %v2212_v20  ;;  %vm2398_vm1 = vweird.f32 %v5085_v9 }
 0xb4d   : > { %v2375_v34 = vor.u32 1.1754944e-38, %v2374_v52  ;;  %vm2373_vm15 = vcmp.eq.f32.partialorder %v2372_v51, 8.507059e+37  ;;  %v2381_v5 = vmul.f32 %v5097_v23, %v2380_v59  ;;  %v2389_v18 = vand.u32 2147483648, %v5077_v36 }
 0xb4e   : > { %v2464_v7 = vunpack.c.l.b16 %v2447_v39  ;;  %v2352_v42 = vadd.f32 %v4119_v37, %v2351_v49  ;;  %v3880_v57 = vmul.f32 -1.442695, %v5099_v1  ;;  %vm2383_vm0 = vweird.f32 %v5077_v36 }
 0xb4f   : > { %v4123_v16 = vpop.eup %4122  ;;  %v2376_v63 = vsel %vm2373_vm15, %v2375_v34, %v2371_v56  ;;  %v2382_v48 = vadd.f32 %v5097_v23, %v2381_v5  ;;  %v2387_v27 = vand.u32 2147483647, %v5077_v36  ;;  %v2405_v20 = vor.u32 1.1754944e-38, %v2404_v13  ;;  %v353_v36 = vld [vmem:[%s5559_s2 + $0x90] sm:$0xff] }
 0xb50   : > { %v4125_v8 = vpop.eup %4124  ;;  %v2471_v62 = vpack.c.b16 %v2464_v7, %v2463_v11  ;;  %v2356_v22 = vsel %vm2355_vm3, %v4119_v37, %v2352_v42  ;;  %v2394_v6 = vmul.f32 %v4123_v16, %v5085_v9  ;;  %4126 = vpow2.f32 %v3880_v57 }
 0xb51   : > { %v2361_v25 = vsel %vm2358_vm13, %v2360_v53, %v2356_v22  ;;  %v5117_v28 = vadd.f32 1.0, %v4125_v8  ;;  %v2441_v4 = vmul.f32 %v2376_v63, %v5025_v38  ;;  %vm2399_vm13 = vweird.f32 %v4123_v16 }
 0xb52   : > { %v2395_v55 = vsub.f32 1.0, %v2394_v6  ;;  %3881 = vmatmul.msk.bf16.vlgmr.msrb.gmra.mxu2 %vm465_vm7, %v2471_v62  ;;  %v2440_v2 = vmul.f32 %v2361_v25, %v5057_v0  ;;  %vm2384_vm3 = vweird.f32 %v5097_v23  ;;  %v2402_v38 = vand.u32 2147483647, %v5085_v9  ;;  %vm2400_vm4 = vmor %vm2398_vm1, %vm2399_vm13 }
 0xb53   : > { %4128 = vrcp.f32 %v5117_v28  ;;  %v2449_v37 = vpack.c.bf16 %v2441_v4, %v2441_v4  ;;  %vm2385_vm2 = vmor %vm2383_vm0, %vm2384_vm3  ;;  %v2390_v60 = vor.u32 1.1754944e-38, %v2389_v18  ;;  %vm2388_vm13 = vcmp.eq.f32.partialorder %v2387_v27, 8.507059e+37 }
 0xb54   : > { %v2396_v30 = vmul.f32 %v4123_v16, %v2395_v55  ;;  %v2448_v54 = vpack.c.bf16 %v2440_v2, %v2440_v2  ;;  %vm2403_vm15 = vcmp.eq.f32.partialorder %v2402_v38, 8.507059e+37  ;;  %v2386_v9 = vsel %vm2385_vm2, %v5097_v23, %v2382_v48 }
 0xb55   : > { %v2466_v32 = vunpack.c.l.b16 %v2449_v37  ;;  %v2391_v39 = vsel %vm2388_vm13, %v2390_v60, %v2386_v9  ;;  %v377_v49 = vpack.c.bf16 %v353_v36, %v353_v36  ;;  %v378_v51 = vpack.c.bf16 %v354_v24, %v354_v24 }
 0xb56   : > { %v4127_v33 = vpop.eup %4126  ;;  %v2397_v61 = vadd.f32 %v4123_v16, %v2396_v30  ;;  %v2465_v0 = vunpack.c.l.b16 %v2448_v54  ;;  %v2442_v44 = vmul.f32 %v2391_v39, %v5044_v43  ;;  %v2419_v25 = vand.u32 2147483648, %v5117_v28 }
 0xb57   : > { %v5123_v12 = vadd.f32 1.0, %v4127_v33  ;;  %v2699_v7 = vunpack.c.l.b16 %v377_v49  ;;  %v2700_v42 = vunpack.c.l.b16 %v378_v51  ;;  %vm2413_vm2 = vweird.f32 %v5117_v28 }
 0xb58   : > { %v2401_v58 = vsel %vm2400_vm4, %v4123_v16, %v2397_v61  ;;  %v2472_v3 = vpack.c.b16 %v2466_v32, %v2465_v0  ;;  %v2450_v62 = vpack.c.bf16 %v2442_v44, %v2442_v44  ;;  %v2417_v43 = vand.u32 2147483647, %v5117_v28 }
 0xb59   : > { %4130 = vrcp.f32 %v5123_v12  ;;  %v4129_v31 = vpop.eup %4128  ;;  %v2406_v17 = vsel %vm2403_vm15, %v2405_v20, %v2401_v58  ;;  %v2702_v16 = vpack.c.b16 %v2700_v42, %v2699_v7  ;;  %v2434_v22 = vand.u32 2147483648, %v5123_v12  ;;  %v351_v20 = vld [vmem:[%s5559_s2 + $0x80] sm:$0xff] }
 0xb5a   : > { %v2409_v26 = vmul.f32 %v4129_v31, %v5117_v28  ;;  %v2443_v23 = vmul.f32 %v2406_v17, %v5067_v41  ;;  %vm2414_vm1 = vweird.f32 %v4129_v31  ;;  %vm2428_vm4 = vweird.f32 %v5123_v12 }
 0xb5b   : > { %2723 = vmatpush.bf16.msrb.mxu3 %v2702_v16  ;;  %v2432_v41 = vand.u32 2147483647, %v5123_v12  ;;  %v2467_v55 = vunpack.c.l.b16 %v2450_v62  ;;  %vm2415_vm15 = vmor %vm2413_vm2, %vm2414_vm1  ;;  %v2435_v63 = vor.u32 1.1754944e-38, %v2434_v22  ;;  %v2420_v30 = vor.u32 1.1754944e-38, %v2419_v25 }
 0xb5c   : > { %v2410_v52 = vsub.f32 1.0, %v2409_v26  ;;  %v2451_v53 = vpack.c.bf16 %v2443_v23, %v2443_v23  ;;  %vm2418_vm12 = vcmp.eq.f32.partialorder %v2417_v43, 8.507059e+37  ;;  %v5157_v0 = vperm.slane %v4982_v45, 5  ;;  %v352_v26 = vld [vmem:[%s5559_s2 + $0x88] sm:$0xff] }
 0xb5d   : > { %vm2433_vm13 = vcmp.eq.f32.partialorder %v2432_v41, 8.507059e+37  ;;  %v375_v9 = vpack.c.bf16 %v351_v20, %v351_v20 }
 0xb5e   : > { %v2411_v46 = vmul.f32 %v4129_v31, %v2410_v52  ;;  %v2468_v6 = vunpack.c.l.b16 %v2451_v53 }
 0xb5f   : > { %v4131_v29 = vpop.eup %4130 }
 0xb60   : > { %v2424_v35 = vmul.f32 %v4131_v29, %v5123_v12  ;;  %vm2429_vm3 = vweird.f32 %v4131_v29  ;;  %v2412_v56 = vadd.f32 %v4129_v31, %v2411_v46  ;;  %v2473_v59 = vpack.c.b16 %v2468_v6, %v2467_v55 }
 0xb61   : > { %vm2430_vm0 = vmor %vm2428_vm4, %vm2429_vm3 }
 0xb62   : > { %3882 = vmatmul.msk.bf16.gmra.mxu2 %vm465_vm7, %v2472_v3  ;;  %v2425_v11 = vsub.f32 1.0, %v2424_v35  ;;  %v2416_v2 = vsel %vm2415_vm15, %v4129_v31, %v2412_v56  ;;  %v2697_v35 = vunpack.c.l.b16 %v375_v9 }
 0xb63   : > { %v2421_v33 = vsel %vm2418_vm12, %v2420_v30, %v2416_v2 }
 0xb64   : > { %v2426_v57 = vmul.f32 %v4131_v29, %v2425_v11  ;;  %v2444_v5 = vmul.f32 %v2421_v33, %v5080_v21 }
 0xb66   : > { %v2427_v8 = vadd.f32 %v4131_v29, %v2426_v57  ;;  %v2452_v61 = vpack.c.bf16 %v2444_v5, %v2444_v5 }
 0xb68   : > { %v2431_v34 = vsel %vm2430_vm0, %v4131_v29, %v2427_v8  ;;  %v2469_v37 = vunpack.c.l.b16 %v2452_v61  ;;  %v376_v29 = vpack.c.bf16 %v352_v26, %v352_v26 }
 0xb69   : > { %v2436_v4 = vsel %vm2433_vm13, %v2435_v63, %v2431_v34 }
 0xb6a   : > { %v2445_v54 = vmul.f32 %v2436_v4, %v5099_v1  ;;  %v2698_v36 = vunpack.c.l.b16 %v376_v29 }
 0xb6c   : > { %v2453_v12 = vpack.c.bf16 %v2445_v54, %v2445_v54  ;;  %v2701_v51 = vpack.c.b16 %v2698_v36, %v2697_v35 }
 0xb6e   : > { %v2470_v28 = vunpack.c.l.b16 %v2453_v12  ;;  %2724 = vmatpush.bf16.msrb.mxu3 %v2701_v51 }
 0xb70   : > { %v2474_v13 = vpack.c.b16 %v2470_v28, %v2469_v37 }
 0xb72   : > { %3883 = vmatmul.msk.bf16.gmra.mxu2 %vm465_vm7, %v2473_v59 }
 0xb82   : > { %3884 = vmatmul.msk.bf16.gmra.mxu2 %vm465_vm7, %v2474_v13 }
 0xbd5   : > { %v2508_v38 = vpop.f32.mrf.mxu2 }
 0xbd6   : > { %v5160_v48 = vadd.f32 %v2508_v38, %v5157_v0 }
 0xbd8   : > { %v3885_v31 = vmul.f32 -1.442695, %v5160_v48 }
 0xbda   : > { %4132 = vpow2.f32 %v3885_v31 }
 0xbdd   : > { %v2510_v1 = vpop.f32.mrf.mxu2 }
 0xbde   : > { %v5164_v21 = vadd.f32 %v2510_v1, %v5157_v0 }
 0xbe0   : > { %v4133_v18 = vpop.eup %4132  ;;  %v3886_v58 = vmul.f32 -1.442695, %v5164_v21 }
 0xbe1   : > { %v2552_v32 = vadd.f32 1.0, %v4133_v18 }
 0xbe2   : > { %4134 = vpow2.f32 %v3886_v58 }
 0xbe3   : > { %4136 = vrcp.f32 %v2552_v32  ;;  %v2571_v8 = vand.u32 2147483648, %v2552_v32  ;;  %vm2565_vm3 = vweird.f32 %v2552_v32  ;;  %v2569_v62 = vand.u32 2147483647, %v2552_v32 }
 0xbe5   : > { %v2513_v27 = vpop.f32.mrf.mxu2  ;;  %v2572_v63 = vor.u32 1.1754944e-38, %v2571_v8  ;;  %vm2570_vm0 = vcmp.eq.f32.partialorder %v2569_v62, 8.507059e+37 }
 0xbe6   : > { %v5174_v3 = vadd.f32 %v2513_v27, %v5157_v0 }
 0xbe8   : > { %v4135_v17 = vpop.eup %4134  ;;  %v3887_v60 = vmul.f32 -1.442695, %v5174_v3 }
 0xbe9   : > { %v4137_v24 = vpop.eup %4136  ;;  %v2553_v39 = vadd.f32 1.0, %v4135_v17 }
 0xbea   : > { %v2561_v49 = vmul.f32 %v4137_v24, %v2552_v32  ;;  %4138 = vpow2.f32 %v3887_v60  ;;  %vm2566_vm12 = vweird.f32 %v4137_v24 }
 0xbeb   : > { %4140 = vrcp.f32 %v2553_v39  ;;  %vm5184_vm1 = vmor %vm2565_vm3, %vm2566_vm12  ;;  %v2584_v56 = vand.u32 2147483647, %v2553_v39  ;;  %v2586_v41 = vand.u32 2147483648, %v2553_v39  ;;  %vm2580_vm2 = vweird.f32 %v2553_v39 }
 0xbec   : > { %v2562_v23 = vsub.f32 1.0, %v2561_v49 }
 0xbed   : > { %v2515_v52 = vpop.f32.mrf.mxu2  ;;  %v2587_v54 = vor.u32 1.1754944e-38, %v2586_v41  ;;  %vm2585_vm13 = vcmp.eq.f32.partialorder %v2584_v56, 8.507059e+37 }
 0xbee   : > { %v2563_v11 = vmul.f32 %v4137_v24, %v2562_v23  ;;  %v5178_v7 = vadd.f32 %v2515_v52, %v5157_v0 }
 0xbf0   : > { %v4139_v42 = vpop.eup %4138  ;;  %v3888_v57 = vmul.f32 -1.442695, %v5178_v7  ;;  %v2564_v53 = vadd.f32 %v4137_v24, %v2563_v11 }
 0xbf1   : > { %v4141_v44 = vpop.eup %4140  ;;  %v5181_v16 = vadd.f32 1.0, %v4139_v42 }
 0xbf2   : > { %v2576_v46 = vmul.f32 %v4141_v44, %v2553_v39  ;;  %4142 = vpow2.f32 %v3888_v57  ;;  %v2568_v43 = vsel %vm5184_vm1, %v4137_v24, %v2564_v53  ;;  %vm2581_vm4 = vweird.f32 %v4141_v44 }
 0xbf3   : > { %4144 = vrcp.f32 %v5181_v16  ;;  %v2573_v33 = vsel %vm2570_vm0, %v2572_v63, %v2568_v43  ;;  %vm2582_vm15 = vmor %vm2580_vm2, %vm2581_vm4  ;;  %v2601_v9 = vand.u32 2147483648, %v5181_v16  ;;  %vm2595_vm3 = vweird.f32 %v5181_v16 }
 0xbf4   : > { %v2577_v22 = vsub.f32 1.0, %v2576_v46  ;;  %v5196_v37 = vmul.f32 %v2573_v33, %v5160_v48  ;;  %v2599_v29 = vand.u32 2147483647, %v5181_v16 }
 0xbf5   : > { %v2518_v25 = vpop.f32.mrf.mxu2  ;;  %v2602_v23 = vor.u32 1.1754944e-38, %v2601_v9 }
 0xbf6   : > { %v2578_v34 = vmul.f32 %v4141_v44, %v2577_v22  ;;  %v5191_v55 = vadd.f32 %v2518_v25, %v5157_v0  ;;  %vm2600_vm0 = vcmp.eq.f32.partialorder %v2599_v29, 8.507059e+37 }
 0xbf8   : > { %v4143_v2 = vpop.eup %4142  ;;  %v2579_v59 = vadd.f32 %v4141_v44, %v2578_v34  ;;  %v3889_v30 = vmul.f32 -1.442695, %v5191_v55 }
 0xbf9   : > { %v4145_v4 = vpop.eup %4144  ;;  %v2555_v5 = vadd.f32 1.0, %v4143_v2 }
 0xbfa   : > { %v2583_v12 = vsel %vm2582_vm15, %v4141_v44, %v2579_v59  ;;  %v2591_v61 = vmul.f32 %v4145_v4, %v5181_v16  ;;  %4146 = vpow2.f32 %v3889_v30  ;;  %vm2596_vm12 = vweird.f32 %v4145_v4 }
 0xbfb   : > { %v2588_v28 = vsel %vm2585_vm13, %v2587_v54, %v2583_v12  ;;  %4148 = vrcp.f32 %v2555_v5  ;;  %vm5214_vm1 = vmor %vm2595_vm3, %vm2596_vm12  ;;  %v2614_v35 = vand.u32 2147483647, %v2555_v5  ;;  %v2616_v36 = vand.u32 2147483648, %v2555_v5 }
 0xbfc   : > { %v5199_v13 = vmul.f32 %v2588_v28, %v5164_v21  ;;  %v2592_v38 = vsub.f32 1.0, %v2591_v61  ;;  %vm2610_vm2 = vweird.f32 %v2555_v5 }
 0xbfd   : > { %v2520_v31 = vpop.f32.mrf.mxu2  ;;  %v2617_v16 = vor.u32 1.1754944e-38, %v2616_v36  ;;  %vm2615_vm13 = vcmp.eq.f32.partialorder %v2614_v35, 8.507059e+37 }
 0xbfe   : > { %v2688_v1 = vpack.c.bf16 %v5199_v13, %v5196_v37  ;;  %v2593_v18 = vmul.f32 %v4145_v4, %v2592_v38  ;;  %v5204_v58 = vadd.f32 %v2520_v31, %v5157_v0 }
 0xc00   : > { %v4147_v32 = vpop.eup %4146  ;;  %v3890_v27 = vmul.f32 -1.442695, %v5204_v58  ;;  %3893 = vmatmul.msk.bf16.vlgmr.msrb.gmra.mxu3 %vm465_vm7, %v2688_v1  ;;  %v2594_v26 = vadd.f32 %v4145_v4, %v2593_v18 }
 0xc01   : > { %v4149_v20 = vpop.eup %4148  ;;  %v5208_v48 = vadd.f32 1.0, %v4147_v32 }
 0xc02   : > { %v2606_v21 = vmul.f32 %v4149_v20, %v2555_v5  ;;  %4150 = vpow2.f32 %v3890_v27  ;;  %v2598_v39 = vsel %vm5214_vm1, %v4145_v4, %v2594_v26  ;;  %vm2611_vm4 = vweird.f32 %v4149_v20 }
 0xc03   : > { %4152 = vrcp.f32 %v5208_v48  ;;  %v2603_v44 = vsel %vm2600_vm0, %v2602_v23, %v2598_v39  ;;  %vm2612_vm15 = vmor %vm2610_vm2, %vm2611_vm4  ;;  %v2631_v4 = vand.u32 2147483648, %v5208_v48  ;;  %vm2625_vm3 = vweird.f32 %v5208_v48 }
 0xc04   : > { %v2607_v17 = vsub.f32 1.0, %v2606_v21  ;;  %v5226_v22 = vmul.f32 %v2603_v44, %v5174_v3 }
 0xc05   : > { %v2523_v24 = vpop.f32.mrf.mxu2  ;;  %v2632_v28 = vor.u32 1.1754944e-38, %v2631_v4 }
 0xc06   : > { %v2608_v49 = vmul.f32 %v4149_v20, %v2607_v17  ;;  %v5221_v51 = vadd.f32 %v2523_v24, %v5157_v0 }
 0xc08   : > { %v4151_v52 = vpop.eup %4150  ;;  %v2609_v11 = vadd.f32 %v4149_v20, %v2608_v49  ;;  %v3891_v42 = vmul.f32 -1.442695, %v5221_v51 }
 0xc09   : > { %v4153_v57 = vpop.eup %4152  ;;  %v2557_v53 = vadd.f32 1.0, %v4151_v52 }
 0xc0a   : > { %v2613_v46 = vsel %vm2612_vm15, %v4149_v20, %v2609_v11  ;;  %v2621_v8 = vmul.f32 %v4153_v57, %v5208_v48  ;;  %4154 = vpow2.f32 %v3891_v42  ;;  %vm2626_vm12 = vweird.f32 %v4153_v57 }
 0xc0b   : > { %v2618_v62 = vsel %vm2615_vm13, %v2617_v16, %v2613_v46  ;;  %4156 = vrcp.f32 %v2557_v53  ;;  %vm2627_vm1 = vmor %vm2625_vm3, %vm2626_vm12  ;;  %v2646_v54 = vand.u32 2147483648, %v2557_v53  ;;  %v2644_v61 = vand.u32 2147483647, %v2557_v53 }
 0xc0c   : > { %v5229_v6 = vmul.f32 %v2618_v62, %v5178_v7  ;;  %v2622_v56 = vsub.f32 1.0, %v2621_v8  ;;  %vm2640_vm2 = vweird.f32 %v2557_v53 }
 0xc0d   : > { %v2525_v41 = vpop.f32.mrf.mxu2  ;;  %v2647_v32 = vor.u32 1.1754944e-38, %v2646_v54  ;;  %vm2645_vm13 = vcmp.eq.f32.partialorder %v2644_v61, 8.507059e+37 }
 0xc0e   : > { %v2623_v25 = vmul.f32 %v4153_v57, %v2622_v56  ;;  %v5232_v43 = vadd.f32 %v2525_v41, %v5157_v0  ;;  %v2689_v34 = vpack.c.bf16 %v5229_v6, %v5226_v22  ;;  %v2629_v0 = vand.u32 2147483647, %v5208_v48 }
 0xc0f   : > { %v5260_v41 = vperm.slane %v4982_v45, 6 }
 0xc10   : > { %v4155_v63 = vpop.eup %4154  ;;  %v3892_v2 = vmul.f32 -1.442695, %v5232_v43  ;;  %3894 = vmatmul.msk.bf16.gmra.mxu3 %vm465_vm7, %v2689_v34  ;;  %v2624_v30 = vadd.f32 %v4153_v57, %v2623_v25  ;;  %vm2630_vm0 = vcmp.eq.f32.partialorder %v2629_v0, 8.507059e+37 }
 0xc11   : > { %v4157_v59 = vpop.eup %4156  ;;  %v2558_v3 = vadd.f32 1.0, %v4155_v63 }
 0xc12   : > { %v2636_v7 = vmul.f32 %v4157_v59, %v2557_v53  ;;  %4158 = vpow2.f32 %v3892_v2  ;;  %v2628_v5 = vsel %vm2627_vm1, %v4153_v57, %v2624_v30  ;;  %vm2641_vm4 = vweird.f32 %v4157_v59 }
 0xc13   : > { %4160 = vrcp.f32 %v2558_v3  ;;  %v2633_v18 = vsel %vm2630_vm0, %v2632_v28, %v2628_v5  ;;  %vm2642_vm15 = vmor %vm2640_vm2, %vm2641_vm4  ;;  %v2661_v39 = vand.u32 2147483648, %v2558_v3  ;;  %vm2655_vm3 = vweird.f32 %v2558_v3 }
 0xc14   : > { %v2637_v33 = vsub.f32 1.0, %v2636_v7  ;;  %v5242_v21 = vmul.f32 %v2633_v18, %v5191_v55  ;;  %v2659_v49 = vand.u32 2147483647, %v2558_v3 }
 0xc15   : > { %v2662_v42 = vor.u32 1.1754944e-38, %v2661_v39 }
 0xc16   : > { %v2638_v12 = vmul.f32 %v4157_v59, %v2637_v33  ;;  %vm2660_vm0 = vcmp.eq.f32.partialorder %v2659_v49, 8.507059e+37 }
 0xc18   : > { %v4159_v38 = vpop.eup %4158  ;;  %v2639_v31 = vadd.f32 %v4157_v59, %v2638_v12 }
 0xc19   : > { %v4161_v1 = vpop.eup %4160  ;;  %v2559_v27 = vadd.f32 1.0, %v4159_v38 }
 0xc1a   : > { %v2643_v20 = vsel %vm2642_vm15, %v4157_v59, %v2639_v31  ;;  %v2651_v48 = vmul.f32 %v4161_v1, %v2558_v3  ;;  %vm2656_vm12 = vweird.f32 %v4161_v1 }
 0xc1b   : > { %v2648_v26 = vsel %vm2645_vm13, %v2647_v32, %v2643_v20  ;;  %4162 = vrcp.f32 %v2559_v27  ;;  %vm2657_vm1 = vmor %vm2655_vm3, %vm2656_vm12  ;;  %v2676_v55 = vand.u32 2147483648, %v2559_v27  ;;  %v2674_v11 = vand.u32 2147483647, %v2559_v27 }
 0xc1c   : > { %v5245_v9 = vmul.f32 %v2648_v26, %v5204_v58  ;;  %v2652_v29 = vsub.f32 1.0, %v2651_v48  ;;  %vm2670_vm2 = vweird.f32 %v2559_v27  ;;  %v4223_v26 = vld [vmem:[%s5561_s4 + $0x10] sm:$0xff] }
 0xc1d   : > { %v2677_v16 = vor.u32 1.1754944e-38, %v2676_v55  ;;  %vm2675_vm13 = vcmp.eq.f32.partialorder %v2674_v11, 8.507059e+37 }
 0xc1e   : > { %v2653_v17 = vmul.f32 %v4161_v1, %v2652_v29  ;;  %v2690_v60 = vpack.c.bf16 %v5245_v9, %v5242_v21  ;;  %v5278_v29 = vperm.slane %v4223_v26, 7 }
 0xc20   : > { %3895 = vmatmul.msk.bf16.gmra.mxu3 %vm465_vm7, %v2690_v60  ;;  %v2654_v36 = vadd.f32 %v4161_v1, %v2653_v17 }
 0xc21   : > { %v4163_v35 = vpop.eup %4162 }
 0xc22   : > { %v2666_v24 = vmul.f32 %v4163_v35, %v2559_v27  ;;  %v2658_v52 = vsel %vm2657_vm1, %v4161_v1, %v2654_v36  ;;  %vm2671_vm4 = vweird.f32 %v4163_v35 }
 0xc23   : > { %v2663_v44 = vsel %vm2660_vm0, %v2662_v42, %v2658_v52  ;;  %vm2672_vm15 = vmor %vm2670_vm2, %vm2671_vm4 }
 0xc24   : > { %v2667_v23 = vsub.f32 1.0, %v2666_v24  ;;  %v5251_v8 = vmul.f32 %v2663_v44, %v5221_v51 }
 0xc26   : > { %v2668_v58 = vmul.f32 %v4163_v35, %v2667_v23 }
 0xc28   : > { %v2669_v57 = vadd.f32 %v4163_v35, %v2668_v58 }
 0xc2a   : > { %v2673_v53 = vsel %vm2672_vm15, %v4163_v35, %v2669_v57 }
 0xc2b   : > { %v2678_v46 = vsel %vm2675_vm13, %v2677_v16, %v2673_v53 }
 0xc2c   : > { %v5254_v62 = vmul.f32 %v2678_v46, %v5232_v43 }
 0xc2e   : > { %v2691_v56 = vpack.c.bf16 %v5254_v62, %v5251_v8 }
 0xc30   : > { %3896 = vmatmul.msk.bf16.gmra.mxu3 %vm465_vm7, %v2691_v56 }
 0xc83   : > { %v2726_v25 = vpop.f32.mrf.mxu3 }
 0xc84   : > { %v2727_v34 = vadd.f32 %v2726_v25, %v5260_v41 }
 0xc86   : > { %v3897_v63 = vmul.f32 -1.442695, %v2727_v34 }
 0xc88   : > { %4164 = vpow2.f32 %v3897_v63 }
 0xc8b   : > { %v2728_v2 = vpop.f32.mrf.mxu3 }
 0xc8c   : > { %v5264_v51 = vadd.f32 %v2728_v2, %v5260_v41 }
 0xc8e   : > { %v4165_v59 = vpop.eup %4164  ;;  %v3898_v43 = vmul.f32 -1.442695, %v5264_v51 }
 0xc8f   : > { %v2770_v3 = vadd.f32 1.0, %v4165_v59 }
 0xc90   : > { %4166 = vpow2.f32 %v3898_v43 }
 0xc91   : > { %4168 = vrcp.f32 %v2770_v3  ;;  %v2789_v12 = vand.u32 2147483648, %v2770_v3  ;;  %v2787_v38 = vand.u32 2147483647, %v2770_v3  ;;  %vm2783_vm3 = vweird.f32 %v2770_v3 }
 0xc93   : > { %v2731_v30 = vpop.f32.mrf.mxu3  ;;  %v2790_v20 = vor.u32 1.1754944e-38, %v2789_v12  ;;  %vm2788_vm4 = vcmp.eq.f32.partialorder %v2787_v38, 8.507059e+37 }
 0xc94   : > { %v5268_v7 = vadd.f32 %v2731_v30, %v5260_v41 }
 0xc96   : > { %v4167_v45 = vpop.eup %4166  ;;  %v3899_v4 = vmul.f32 -1.442695, %v5268_v7 }
 0xc97   : > { %v4169_v0 = vpop.eup %4168  ;;  %v2771_v33 = vadd.f32 1.0, %v4167_v45 }
 0xc98   : > { %v2779_v54 = vmul.f32 %v4169_v0, %v2770_v3  ;;  %4170 = vpow2.f32 %v3899_v4  ;;  %vm2784_vm12 = vweird.f32 %v4169_v0 }
 0xc99   : > { %4172 = vrcp.f32 %v2771_v33  ;;  %vm2785_vm1 = vmor %vm2783_vm3, %vm2784_vm12  ;;  %v2802_v39 = vand.u32 2147483647, %v2771_v33  ;;  %v2804_v49 = vand.u32 2147483648, %v2771_v33  ;;  %vm2798_vm2 = vweird.f32 %v2771_v33 }
 0xc9a   : > { %v2780_v5 = vsub.f32 1.0, %v2779_v54 }
 0xc9b   : > { %v2733_v61 = vpop.f32.mrf.mxu3  ;;  %v2805_v53 = vor.u32 1.1754944e-38, %v2804_v49  ;;  %vm2803_vm13 = vcmp.eq.f32.partialorder %v2802_v39, 8.507059e+37 }
 0xc9c   : > { %v2781_v28 = vmul.f32 %v4169_v0, %v2780_v5  ;;  %v5272_v31 = vadd.f32 %v2733_v61, %v5260_v41 }
 0xc9e   : > { %v4171_v1 = vpop.eup %4170  ;;  %v2782_v18 = vadd.f32 %v4169_v0, %v2781_v28  ;;  %v3900_v32 = vmul.f32 -1.442695, %v5272_v31 }
 0xc9f   : > { %v4173_v27 = vpop.eup %4172  ;;  %v2772_v48 = vadd.f32 1.0, %v4171_v1 }
 0xca0   : > { %v2786_v17 = vsel %vm2785_vm1, %v4169_v0, %v2782_v18  ;;  %v2794_v60 = vmul.f32 %v4173_v27, %v2771_v33  ;;  %4174 = vpow2.f32 %v3900_v32  ;;  %vm2799_vm0 = vweird.f32 %v4173_v27 }
 0xca1   : > { %v2791_v35 = vsel %vm2788_vm4, %v2790_v20, %v2786_v17  ;;  %4176 = vrcp.f32 %v2772_v48  ;;  %vm2800_vm15 = vmor %vm2798_vm2, %vm2799_vm0  ;;  %v2817_v59 = vand.u32 2147483647, %v2772_v48  ;;  %v2819_v43 = vand.u32 2147483648, %v2772_v48 }
 0xca2   : > { %v2898_v36 = vmul.f32 %v2791_v35, %v2727_v34  ;;  %v2795_v24 = vsub.f32 1.0, %v2794_v60  ;;  %vm2813_vm3 = vweird.f32 %v2772_v48 }
 0xca3   : > { %v2736_v23 = vpop.f32.mrf.mxu3  ;;  %vm2818_vm4 = vcmp.eq.f32.partialorder %v2817_v59, 8.507059e+37 }
 0xca4   : > { %v2796_v55 = vmul.f32 %v4173_v27, %v2795_v24  ;;  %v5281_v52 = vadd.f32 %v2736_v23, %v5260_v41  ;;  %v2907_v58 = vmul.f32 %v5278_v29, %v2898_v36 }
 0xca6   : > { %v4175_v11 = vpop.eup %4174  ;;  %v2797_v42 = vadd.f32 %v4173_v27, %v2796_v55  ;;  %v3901_v57 = vmul.f32 -1.442695, %v5281_v52  ;;  %v2915_v44 = vsel %vm465_vm7, %v2907_v58, 0.0 }
 0xca7   : > { %v4177_v16 = vpop.eup %4176  ;;  %v2773_v46 = vadd.f32 1.0, %v4175_v11  ;;  %2916 = vadd.xlane.f32.xlu1 %v2915_v44 }
 0xca8   : > { %v2801_v56 = vsel %vm2800_vm15, %v4173_v27, %v2797_v42  ;;  %v2809_v25 = vmul.f32 %v4177_v16, %v2772_v48  ;;  %4178 = vpow2.f32 %v3901_v57  ;;  %vm2814_vm12 = vweird.f32 %v4177_v16 }
 0xca9   : > { %v2806_v34 = vsel %vm2803_vm13, %v2805_v53, %v2801_v56  ;;  %4180 = vrcp.f32 %v2773_v46  ;;  %vm2815_vm1 = vmor %vm2813_vm3, %vm2814_vm12  ;;  %v2832_v27 = vand.u32 2147483647, %v2773_v46  ;;  %v2834_v20 = vand.u32 2147483648, %v2773_v46 }
 0xcaa   : > { %v2899_v63 = vmul.f32 %v2806_v34, %v5264_v51  ;;  %v2810_v2 = vsub.f32 1.0, %v2809_v25  ;;  %v2820_v51 = vor.u32 1.1754944e-38, %v2819_v43  ;;  %vm2828_vm2 = vweird.f32 %v2773_v46 }
 0xcab   : > { %v2738_v3 = vpop.f32.mrf.mxu3  ;;  %vm2833_vm13 = vcmp.eq.f32.partialorder %v2832_v27, 8.507059e+37 }
 0xcac   : > { %v2811_v30 = vmul.f32 %v4177_v16, %v2810_v2  ;;  %v5288_v45 = vadd.f32 %v2738_v3, %v5260_v41  ;;  %v2908_v4 = vmul.f32 %v5278_v29, %v2899_v63 }
 0xcae   : > { %v4179_v0 = vpop.eup %4178  ;;  %v2812_v33 = vadd.f32 %v4177_v16, %v2811_v30  ;;  %v3902_v54 = vmul.f32 -1.442695, %v5288_v45  ;;  %v2918_v5 = vsel %vm465_vm7, %v2908_v4, 0.0 }
 0xcaf   : > { %v4181_v12 = vpop.eup %4180  ;;  %v2774_v61 = vadd.f32 1.0, %v4179_v0  ;;  %2919 = vadd.xlane.f32.xlu2 %v2918_v5 }
 0xcb0   : > { %v2816_v28 = vsel %vm2815_vm1, %v4177_v16, %v2812_v33  ;;  %v2824_v38 = vmul.f32 %v4181_v12, %v2773_v46  ;;  %4182 = vpow2.f32 %v3902_v54  ;;  %vm2829_vm0 = vweird.f32 %v4181_v12 }
 0xcb1   : > { %v2821_v1 = vsel %vm2818_vm4, %v2820_v51, %v2816_v28  ;;  %4184 = vrcp.f32 %v2774_v61  ;;  %vm2830_vm15 = vmor %vm2828_vm2, %vm2829_vm0  ;;  %v2847_v44 = vand.u32 2147483647, %v2774_v61  ;;  %v2849_v16 = vand.u32 2147483648, %v2774_v61 }
 0xcb2   : > { %v2900_v18 = vmul.f32 %v2821_v1, %v5268_v7  ;;  %v2825_v32 = vsub.f32 1.0, %v2824_v38  ;;  %v2835_v7 = vor.u32 1.1754944e-38, %v2834_v20  ;;  %vm2843_vm3 = vweird.f32 %v2774_v61 }
 0xcb3   : > { %v2741_v48 = vpop.f32.mrf.mxu3  ;;  %vm2848_vm4 = vcmp.eq.f32.partialorder %v2847_v44, 8.507059e+37 }
 0xcb4   : > { %v2826_v26 = vmul.f32 %v4181_v12, %v2825_v32  ;;  %v5295_v17 = vadd.f32 %v2741_v48, %v5260_v41  ;;  %v2909_v60 = vmul.f32 %v5278_v29, %v2900_v18 }
 0xcb6   : > { %v4183_v35 = vpop.eup %4182  ;;  %v2827_v36 = vadd.f32 %v4181_v12, %v2826_v26  ;;  %v3903_v24 = vmul.f32 -1.442695, %v5295_v17  ;;  %v2921_v39 = vsel %vm465_vm7, %v2909_v60, 0.0 }
 0xcb7   : > { %v4185_v49 = vpop.eup %4184  ;;  %v2775_v23 = vadd.f32 1.0, %v4183_v35  ;;  %2922 = vadd.xlane.f32.xlu0 %v2921_v39 }
 0xcb8   : > { %v2831_v55 = vsel %vm2830_vm15, %v4181_v12, %v2827_v36  ;;  %v2839_v58 = vmul.f32 %v4185_v49, %v2774_v61  ;;  %4186 = vpow2.f32 %v3903_v24  ;;  %vm2844_vm12 = vweird.f32 %v4185_v49 }
 0xcb9   : > { %v2836_v11 = vsel %vm2833_vm13, %v2835_v7, %v2831_v55  ;;  %4188 = vrcp.f32 %v2775_v23  ;;  %vm2845_vm1 = vmor %vm2843_vm3, %vm2844_vm12  ;;  %v2864_v54 = vand.u32 2147483648, %v2775_v23  ;;  %v2862_v12 = vand.u32 2147483647, %v2775_v23 }
 0xcba   : > { %v2901_v42 = vmul.f32 %v2836_v11, %v5272_v31  ;;  %v2840_v57 = vsub.f32 1.0, %v2839_v58  ;;  %v2850_v31 = vor.u32 1.1754944e-38, %v2849_v16  ;;  %vm2858_vm2 = vweird.f32 %v2775_v23 }
 0xcbb   : > { %v2743_v53 = vpop.f32.mrf.mxu3  ;;  %v2865_v18 = vor.u32 1.1754944e-38, %v2864_v54  ;;  %vm2863_vm13 = vcmp.eq.f32.partialorder %v2862_v12, 8.507059e+37 }
 0xcbc   : > { %v2841_v46 = vmul.f32 %v4185_v49, %v2840_v57  ;;  %v5302_v56 = vadd.f32 %v2743_v53, %v5260_v41  ;;  %v2910_v25 = vmul.f32 %v5278_v29, %v2901_v42 }
 0xcbe   : > { %v4187_v34 = vpop.eup %4186  ;;  %v2842_v63 = vadd.f32 %v4185_v49, %v2841_v46  ;;  %v3904_v2 = vmul.f32 -1.442695, %v5302_v56  ;;  %v2924_v59 = vsel %vm465_vm7, %v2910_v25, 0.0 }
 0xcbf   : > { %v4189_v43 = vpop.eup %4188  ;;  %v2776_v3 = vadd.f32 1.0, %v4187_v34  ;;  %2925 = vadd.xlane.f32.xlu1 %v2924_v59 }
 0xcc0   : > { %v2846_v30 = vsel %vm2845_vm1, %v4185_v49, %v2842_v63  ;;  %v2854_v4 = vmul.f32 %v4189_v43, %v2775_v23  ;;  %4190 = vpow2.f32 %v3904_v2  ;;  %vm2859_vm0 = vweird.f32 %v4189_v43 }
 0xcc1   : > { %v2851_v41 = vsel %vm2848_vm4, %v2850_v31, %v2846_v30  ;;  %4192 = vrcp.f32 %v2776_v3  ;;  %vm2860_vm15 = vmor %vm2858_vm2, %vm2859_vm0  ;;  %v2879_v60 = vand.u32 2147483648, %v2776_v3  ;;  %v2877_v36 = vand.u32 2147483647, %v2776_v3  ;;  %v2168_v31 = vpop.permute.xlu1 %2167 }
 0xcc2   : > { %v2902_v0 = vmul.f32 %v2851_v41, %v5281_v52  ;;  %v2855_v33 = vsub.f32 1.0, %v2854_v4  ;;  %vm2873_vm3 = vweird.f32 %v2776_v3 }
 0xcc3   : > { %v2880_v23 = vor.u32 1.1754944e-38, %v2879_v60  ;;  %vm2878_vm4 = vcmp.eq.f32.partialorder %v2877_v36, 8.507059e+37 }
 0xcc4   : > { %v2856_v5 = vmul.f32 %v4189_v43, %v2855_v33  ;;  %v2911_v51 = vmul.f32 %v5278_v29, %v2902_v0  ;;  %v2174_v0 = vpop.permute.xlu0 %2173 }
 0xcc6   : > { %v4191_v61 = vpop.eup %4190  ;;  %v2857_v28 = vadd.f32 %v4189_v43, %v2856_v5  ;;  %v2927_v38 = vsel %vm465_vm7, %v2911_v51, 0.0 }
 0xcc7   : > { %v4193_v1 = vpop.eup %4192  ;;  %v2777_v32 = vadd.f32 1.0, %v4191_v61  ;;  %2928 = vadd.xlane.f32.xlu2 %v2927_v38  ;;  %v2170_v38 = vadd.f32 %v2168_v31, %v5000_v14 }
 0xcc8   : > { %v2861_v27 = vsel %vm2860_vm15, %v4189_v43, %v2857_v28  ;;  %v2869_v52 = vmul.f32 %v4193_v1, %v2776_v3  ;;  %vm2874_vm12 = vweird.f32 %v4193_v1  ;;  %v5322_v3 = vld [vmem:[%s5561_s4 + $0x18] sm:$0xf] }
 0xcc9   : > { %v2866_v20 = vsel %vm2863_vm13, %v2865_v18, %v2861_v27  ;;  %4194 = vrcp.f32 %v2777_v32  ;;  %vm2875_vm1 = vmor %vm2873_vm3, %vm2874_vm12  ;;  %v2894_v57 = vand.u32 2147483648, %v2777_v32  ;;  %v2892_v16 = vand.u32 2147483647, %v2777_v32 }
 0xcca   : > { %v2903_v48 = vmul.f32 %v2866_v20, %v5288_v45  ;;  %v2870_v26 = vsub.f32 1.0, %v2869_v52  ;;  %vm2888_vm2 = vweird.f32 %v2777_v32  ;;  %v2939_v30 = vperm.slane %v5322_v3, 2 }
 0xccb   : > { %v2895_v34 = vor.u32 1.1754944e-38, %v2894_v57  ;;  %vm2893_vm13 = vcmp.eq.f32.partialorder %v2892_v16, 8.507059e+37  ;;  %vm5590_vm12 = vcmask 1046534   ;;  %vm5591_vm3 = vcmask 1047559  }
 0xccc   : > { %v2871_v35 = vmul.f32 %v4193_v1, %v2870_v26  ;;  %v2912_v24 = vmul.f32 %v5278_v29, %v2903_v48 }
 0xcce   : > { %v2872_v39 = vadd.f32 %v4193_v1, %v2871_v35  ;;  %v2930_v49 = vsel %vm465_vm7, %v2912_v24, 0.0 }
 0xccf   : > { %v4195_v7 = vpop.eup %4194  ;;  %2931 = vadd.xlane.f32.xlu0 %v2930_v49 }
 0xcd0   : > { %v2876_v55 = vsel %vm2875_vm1, %v4193_v1, %v2872_v39  ;;  %v2884_v58 = vmul.f32 %v4195_v7, %v2777_v32  ;;  %vm2889_vm0 = vweird.f32 %v4195_v7  ;;  %v2176_v32 = vadd.f32 %v2174_v0, %v5000_v14 }
 0xcd1   : > { %v2881_v11 = vsel %vm2878_vm4, %v2880_v23, %v2876_v55  ;;  %vm2890_vm15 = vmor %vm2888_vm2, %vm2889_vm0 }
 0xcd2   : > { %v2904_v45 = vmul.f32 %v2881_v11, %v5295_v17  ;;  %v2885_v42 = vsub.f32 1.0, %v2884_v58 }
 0xcd4   : > { %v2886_v44 = vmul.f32 %v4195_v7, %v2885_v42  ;;  %v2913_v53 = vmul.f32 %v5278_v29, %v2904_v45 }
 0xcd6   : > { %v2887_v46 = vadd.f32 %v4195_v7, %v2886_v44  ;;  %v2933_v25 = vsel %vm465_vm7, %v2913_v53, 0.0 }
 0xcd7   : > { %2934 = vadd.xlane.f32.xlu1 %v2933_v25 }
 0xcd8   : > { %v2891_v63 = vsel %vm2890_vm15, %v4195_v7, %v2887_v46 }
 0xcd9   : > { %v2896_v2 = vsel %vm2893_vm13, %v2895_v34, %v2891_v63 }
 0xcda   : > { %v2905_v59 = vmul.f32 %v2896_v2, %v5302_v56 }
 0xcdc   : > { %v2914_v17 = vmul.f32 %v5278_v29, %v2905_v59 }
 0xcde   : > { %v2936_v43 = vsel %vm465_vm7, %v2914_v17, 0.0 }
 0xcdf   : > { %2937 = vadd.xlane.f32.xlu2 %v2936_v43 }
 0xd1a   : > { %v2917_v4 = vpop.xlane.xlu1 %2916 }
 0xd1b   : > { %v2940_v41 = vadd.f32 %v2939_v30, %v2917_v4 }
 0xd1d   : > { %2957 = vperm.xlu2 %3971, %v2940_v41  }
 0xd22   : > { %v2920_v33 = vpop.xlane.xlu2 %2919 }
 0xd23   : > { %v2941_v54 = vadd.f32 %v2939_v30, %v2920_v33 }
 0xd25   : > { %2960 = vperm.xlu0 %3972, %v2941_v54  }
 0xd2a   : > { %v2923_v56 = vpop.xlane.xlu0 %2922 }
 0xd2b   : > { %v2942_v29 = vadd.f32 %v2939_v30, %v2923_v56 }
 0xd2d   : > { %2963 = vperm.xlu2 %3971, %v2942_v29  }
 0xd32   : > { %v2926_v5 = vpop.xlane.xlu1 %2925 }
 0xd33   : > { %v2943_v12 = vadd.f32 %v2939_v30, %v2926_v5 }
 0xd35   : > { %2966 = vperm.xlu1 %3973, %v2943_v12  }
 0xd3a   : > { %v2929_v51 = vpop.xlane.xlu2 %2928 }
 0xd3b   : > { %v2944_v61 = vadd.f32 %v2939_v30, %v2929_v51 }
 0xd3d   : > { %2969 = vperm.xlu0 %3972, %v2944_v61  }
 0xd42   : > { %v2932_v28 = vpop.xlane.xlu0 %2931 }
 0xd43   : > { %v2945_v1 = vadd.f32 %v2939_v30, %v2932_v28 }
 0xd45   : > { %3026 = vrot.lane.b32.xlu0 %v2170_v38, %s4309_s29  ;;  %2972 = vperm.xlu2 %3971, %v2945_v1  }
 0xd4a   : > { %v2935_v18 = vpop.xlane.xlu1 %2934 }
 0xd4b   : > { %v2946_v27 = vadd.f32 %v2939_v30, %v2935_v18 }
 0xd4d   : > { %2975 = vperm.xlu1 %3973, %v2946_v27   ;;  %3029 = vrot.lane.b32.xlu2 %v2176_v32, %s4307_s26 }
 0xd4e   : > { %3976 = vset.pattern.permute.xlu2 %v4408_v40 }
 0xd52   : > { %v2938_v52 = vpop.xlane.xlu2 %2937 }
 0xd53   : > { %v2947_v20 = vadd.f32 %v2939_v30, %v2938_v52 }
 0xd55   : > { %2978 = vperm.xlu0 %3972, %v2947_v20   ;;  %3140 = vrot.lane.b32.xlu1 %v2176_v32, %s4311_s12 }
 0xd56   : > { %3138 = vrot.lane.b32.xlu2 %v2170_v38, %s4312_s13  ;;  %3974 = vset.pattern.permute.xlu1 %v4408_v40 }
 0xd5d   : > { %3362 = vrot.lane.b32.xlu0 %v2176_v32, %s4313_s14  ;;  %3251 = vrot.lane.b32.xlu1 %v2176_v32, %s4314_s15 }
 0xd5e   : > { %3249 = vrot.lane.b32.xlu2 %v2170_v38, %s4316_s18  ;;  %3975 = vset.pattern.permute.xlu0 %v4408_v40 }
 0xd65   : > { %3360 = vrot.lane.b32.xlu1 %v2170_v38, %s4315_s17 }
 0xd77   : > { %v2958_v14 = vpop.permute.xlu2 %2957 }
 0xd78   : > { %v2980_v7 = vperm.slane %v2958_v14, %v4419_v50 }
 0xd87   : > { %v2964_v48 = vpop.permute.xlu2 %2963 }
 0xd88   : > { %v2982_v58 = vperm.slane %v2964_v48, %v4419_v50 }
 0xd97   : > { %v2961_v60 = vpop.permute.xlu0 %2960 }
 0xd98   : > { %v2981_v49 = vperm.slane %v2961_v60, %v4419_v50 }
 0xd9a   : > { %v2988_v40 = vsel %vm522_vm6, %v2981_v49, %v2980_v7 }
 0xd9b   : > { %v2989_v45 = vsel %vm523_vm8, %v2982_v58, %v2988_v40 }
 0xd9f   : > { %v2973_v26 = vpop.permute.xlu2 %2972 }
 0xda0   : > { %v2985_v16 = vperm.slane %v2973_v26, %v4419_v50 }
 0xda7   : > { %v3030_v35 = vpop.permute.xlu2 %3029  ;;  %v2967_v24 = vpop.permute.xlu1 %2966 }
 0xda8   : > { %3906 = vmatpush.xpose.msk.msra.mxu0 %vm1408_vm5, %v3030_v35  ;;  %v2983_v55 = vperm.slane %v2967_v24, %v4419_v50 }
 0xdaa   : > { %v2990_v42 = vsel %vm525_vm9, %v2983_v55, %v2989_v45 }
 0xdaf   : > { %v2970_v36 = vpop.permute.xlu0 %2969 }
 0xdb0   : > { %v2984_v11 = vperm.slane %v2970_v36, %v4419_v50  ;;  %v3139_v25 = vpop.permute.xlu2 %3138 }
 0xdb2   : > { %v2991_v57 = vsel %vm527_vm10, %v2984_v11, %v2990_v42 }
 0xdb3   : > { %v2992_v34 = vsel %vm529_vm11, %v2985_v16, %v2991_v57 }
 0xdb7   : > { %v3027_v39 = vpop.permute.xlu0 %3026 }
 0xdb8   : > { %3907 = vmatmul.msk.f32.vlgmr.msra.gmra.mxu0 %vm1408_vm5, %v3027_v39  ;;  %v3250_v31 = vpop.permute.xlu2 %3249 }
 0xdbf   : > { %v2976_v23 = vpop.permute.xlu1 %2975 }
 0xdc0   : > { %v2986_v44 = vperm.slane %v2976_v23, %v4419_v50 }
 0xdc2   : > { %v2993_v2 = vsel %vm5590_vm12, %v2986_v44, %v2992_v34 }
 0xdc7   : > { %v3141_v53 = vpop.permute.xlu1 %3140  ;;  %v2979_v46 = vpop.permute.xlu0 %2978 }
 0xdc8   : > { %v2987_v63 = vperm.slane %v2979_v46, %v4419_v50  ;;  %3908 = vmatpush.xpose.msk.msrb.mxu1 %vm1408_vm5, %v3141_v53 }
 0xdca   : > { %v5356_v59 = vsel %vm5591_vm3, %v2987_v63, %v2993_v2 }
 0xdcb   : > { %3905 = vmatmul.msk.f32.vlgmr.msra.gmra.mxu1 %vm1408_vm5, %v5356_v59 }
 0xdcf   : > { %v3252_v17 = vpop.permute.xlu1 %3251  ;;  %v3363_v43 = vpop.permute.xlu0 %3362 }
 0xdd0   : > { %3910 = vmatpush.xpose.msk.msrb.mxu0 %vm1408_vm5, %v3252_v17  ;;  %3912 = vmatpush.xpose.msk.msra.mxu1 %vm1408_vm5, %v3363_v43 }
 0xdd3   : > { %3909 = vmatmul.msk.f32.vlgmr.msrb.gmra.mxu1 %vm1408_vm5, %v3139_v25  ;;  %3911 = vmatmul.msk.f32.vlgmr.msrb.gmra.mxu0 %vm1408_vm5, %v3250_v31 }
 0xdd7   : > { %v3361_v50 = vpop.permute.xlu1 %3360 }
 0xddb   : > { %3913 = vmatmul.msk.f32.vlgmr.msra.gmra.mxu1 %vm1408_vm5, %v3361_v50 }
 0xe35   : > { %v3052_v30 = vpop.f32.mrf.mxu0 }
 0xe36   : > { %v3055_v4 = vmul.f32 0.35355338, %v3052_v30 }
 0xe38   : > { %v3056_v41 = vsel %vm4804_vm14, -1e+09, %v3055_v4 }
 0xe39   : > { %v3057_v0 = vsel %vm1408_vm5, %v3056_v41, -inf }
 0xe3a   : > { %3058 = vmax.xlane.f32.xlu0 %v3057_v0 }
 0xe48   : > { %v5368_v33 = vpop.f32.mrf.mxu1 }
 0xe50   : > { %v3163_v54 = vpop.f32.mrf.mxu1  ;;  %v3274_v56 = vpop.f32.mrf.mxu0 }
 0xe51   : > { %v3166_v29 = vmul.f32 0.35355338, %v3163_v54  ;;  %v3277_v5 = vmul.f32 0.35355338, %v3274_v56 }
 0xe53   : > { %v3278_v12 = vsel %vm4804_vm14, -1e+09, %v3277_v5  ;;  %v5374_v51 = vsel %vm4804_vm14, -1e+09, %v3166_v29 }
 0xe54   : > { %v3279_v61 = vsel %vm1408_vm5, %v3278_v12, -inf  ;;  %v3168_v28 = vsel %vm1408_vm5, %v5374_v51, -inf }
 0xe55   : > { %3280 = vmax.xlane.f32.xlu1 %v3279_v61  ;;  %3169 = vmax.xlane.f32.xlu2 %v3168_v28 }
 0xe58   : > { %v3385_v38 = vpop.f32.mrf.mxu1 }
 0xe59   : > { %v3388_v1 = vmul.f32 0.35355338, %v3385_v38 }
 0xe5b   : > { %v5381_v18 = vsel %vm4804_vm14, -1e+09, %v3388_v1 }
 0xe5c   : > { %v3390_v32 = vsel %vm1408_vm5, %v5381_v18, -inf }
 0xe5d   : > { %3391 = vmax.xlane.f32.xlu0 %v3390_v32 }
 0xead   : > { %v3059_v27 = vpop.xlane.xlu0 %3058 }
 0xeae   : > { %v3060_v52 = vsub.f32 %v3056_v41, %v3059_v27 }
 0xeb0   : > { %v3061_v20 = vmul.f32 1.442695, %v3060_v52 }
 0xeb2   : > { %4196 = vpow2.f32 %v3061_v20 }
 0xeb8   : > { %v4197_v14 = vpop.eup %4196 }
 0xeb9   : > { %v3063_v48 = vsel %vm1408_vm5, %v4197_v14, 0.0 }
 0xeba   : > { %3064 = vadd.xlane.f32.xlu2 %v3063_v48 }
 0xec8   : > { %v3281_v26 = vpop.xlane.xlu1 %3280  ;;  %v5387_v24 = vpop.xlane.xlu2 %3169 }
 0xec9   : > { %v3282_v60 = vsub.f32 %v3278_v12, %v3281_v26  ;;  %v3171_v26 = vsub.f32 %v5374_v51, %v5387_v24 }
 0xecb   : > { %v3283_v35 = vmul.f32 1.442695, %v3282_v60  ;;  %v3172_v60 = vmul.f32 1.442695, %v3171_v26 }
 0xecd   : > { %4198 = vpow2.f32 %v3283_v35 }
 0xed0   : > { %v3392_v16 = vpop.xlane.xlu0 %3391 }
 0xed3   : > { %v4199_v36 = vpop.eup %4198 }
 0xed4   : > { %v3285_v47 = vsel %vm1408_vm5, %v4199_v36, 0.0 }
 0xed5   : > { %3286 = vadd.xlane.f32.xlu0 %v3285_v47 }
 0xf2d   : > { %v3065_v39 = vpop.xlane.xlu2 %3064 }
 0xf2e   : > { %4200 = vrcp.f32 %v3065_v39  ;;  %v3077_v40 = vand.u32 2147483648, %v3065_v39  ;;  %v3075_v58 = vand.u32 2147483647, %v3065_v39  ;;  %vm3071_vm1 = vweird.f32 %v3065_v39 }
 0xf30   : > { %v3078_v45 = vor.u32 1.1754944e-38, %v3077_v40  ;;  %vm3076_vm0 = vcmp.eq.f32.partialorder %v3075_v58, 8.507059e+37 }
 0xf34   : > { %v4201_v49 = vpop.eup %4200 }
 0xf35   : > { %v3067_v7 = vmul.f32 %v4201_v49, %v3065_v39  ;;  %vm3072_vm14 = vweird.f32 %v4201_v49 }
 0xf36   : > { %vm3073_vm4 = vmor %vm3071_vm1, %vm3072_vm14 }
 0xf37   : > { %v3068_v23 = vsub.f32 1.0, %v3067_v7 }
 0xf39   : > { %v3069_v55 = vmul.f32 %v4201_v49, %v3068_v23 }
 0xf3b   : > { %v3070_v11 = vadd.f32 %v4201_v49, %v3069_v55 }
 0xf3d   : > { %v3074_v42 = vsel %vm3073_vm4, %v4201_v49, %v3070_v11 }
 0xf3e   : > { %v3079_v57 = vsel %vm3076_vm0, %v3078_v45, %v3074_v42 }
 0xf3f   : > { %v3081_v44 = vmul.f32 %v4197_v14, %v3079_v57  ;;  %v3393_v14 = vsub.f32 %v5381_v18, %v3392_v16 }
 0xf41   : > { %v3096_v53 = vperm.slane %v3081_v44, 2  ;;  %v3089_v46 = vperm.slane %v3081_v44, 1  ;;  %v3082_v25 = vperm.slane %v3081_v44, 0  ;;  %v3103_v63 = vperm.slane %v3081_v44, 3 }
 0xf42   : > { %v3117_v43 = vperm.slane %v3081_v44, 5  ;;  %v3110_v1 = vperm.slane %v3081_v44, 4  ;;  %v3124_v32 = vperm.slane %v3081_v44, 6  ;;  %v3131_v20 = vperm.slane %v3081_v44, 7 }
 0xf43   : > { %3101 = vperm.xlu2 %3976, %v3096_v53   ;;  %3094 = vperm.xlu0 %3975, %v3089_v46   ;;  %v3394_v48 = vmul.f32 1.442695, %v3393_v14 }
 0xf44   : > { %3087 = vperm.xlu1 %3974, %v3082_v25  }
 0xf48   : > { %v3287_v34 = vpop.xlane.xlu0 %3286 }
 0xf49   : > { %4202 = vrcp.f32 %v3287_v34  ;;  %v3299_v50 = vand.u32 2147483648, %v3287_v34  ;;  %v3297_v4 = vand.u32 2147483647, %v3287_v34  ;;  %vm3293_vm15 = vweird.f32 %v3287_v34 }
 0xf4a   : > { %4204 = vpow2.f32 %v3394_v48 }
 0xf4b   : > { %3108 = vperm.xlu0 %3975, %v3103_v63   ;;  %v3300_v0 = vor.u32 1.1754944e-38, %v3299_v50  ;;  %vm3298_vm12 = vcmp.eq.f32.partialorder %v3297_v4, 8.507059e+37  ;;  %4206 = vpow2.f32 %v3172_v60 }
 0xf4f   : > { %v4203_v2 = vpop.eup %4202 }
 0xf50   : > { %v3289_v17 = vmul.f32 %v4203_v2, %v3287_v34  ;;  %vm3294_vm2 = vweird.f32 %v4203_v2  ;;  %v5401_v35 = vpop.eup %4204 }
 0xf51   : > { %vm3295_vm13 = vmor %vm3293_vm15, %vm3294_vm2  ;;  %v4207_v47 = vpop.eup %4206 }
 0xf52   : > { %v3290_v31 = vsub.f32 1.0, %v3289_v17  ;;  %v3174_v39 = vsel %vm1408_vm5, %v4207_v47, 0.0 }
 0xf53   : > { %3122 = vperm.xlu0 %3975, %v3117_v43  }
 0xf54   : > { %v3291_v30 = vmul.f32 %v4203_v2, %v3290_v31 }
 0xf56   : > { %v3292_v41 = vadd.f32 %v4203_v2, %v3291_v30 }
 0xf58   : > { %v3296_v54 = vsel %vm3295_vm13, %v4203_v2, %v3292_v41 }
 0xf59   : > { %v3301_v56 = vsel %vm3298_vm12, %v3300_v0, %v3296_v54  ;;  %vm5592_vm12 = vcmask 130048  }
 0xf5a   : > { %v5389_v29 = vmul.f32 %v4199_v36, %v3301_v56  ;;  %v3396_v36 = vsel %vm1408_vm5, %v5401_v35, 0.0 }
 0xf5c   : > { %v3339_v5 = vperm.slane %v5389_v29, 5  ;;  %v3311_v12 = vperm.slane %v5389_v29, 1  ;;  %v3304_v61 = vperm.slane %v5389_v29, 0  ;;  %v3318_v28 = vperm.slane %v5389_v29, 2 }
 0xf5d   : > { %v3325_v38 = vperm.slane %v5389_v29, 3  ;;  %v3332_v27 = vperm.slane %v5389_v29, 4  ;;  %v3346_v52 = vperm.slane %v5389_v29, 6 }
 0xf5e   : > { %3344 = vperm.xlu0 %3975, %v3339_v5   ;;  %3316 = vperm.xlu1 %3974, %v3311_v12  }
 0xf5f   : > { %3309 = vperm.xlu2 %3976, %v3304_v61  }
 0xf66   : > { %3323 = vperm.xlu1 %3974, %v3318_v28  }
 0xf67   : > { %3330 = vperm.xlu2 %3976, %v3325_v38  }
 0xf6e   : > { %3115 = vperm.xlu1 %3974, %v3110_v1  }
 0xf6f   : > { %3129 = vperm.xlu2 %3976, %v3124_v32  }
 0xf76   : > { %3337 = vperm.xlu1 %3974, %v3332_v27  }
 0xf77   : > { %3351 = vperm.xlu2 %3976, %v3346_v52  }
 0xf7e   : > { %3136 = vperm.xlu1 %3974, %v3131_v20  }
 0xf9d   : > { %v5408_v18 = vpop.permute.xlu2 %3101 }
 0xfa0   : > { %3397 = vadd.xlane.f32.xlu2 %v3396_v36 }
 0xfa8   : > { %3175 = vadd.xlane.f32.xlu1 %v3174_v39 }
 0xfb6   : > { %v5406_v49 = vpop.permute.xlu1 %3087 }
 0xfb9   : > { %v5412_v51 = vpop.permute.xlu2 %3309 }
 0xfc1   : > { %v5416_v23 = vpop.permute.xlu2 %3330 }
 0xfc9   : > { %v5420_v55 = vpop.permute.xlu2 %3129 }
 0xfd0   : > { %v5410_v7 = vpop.permute.xlu1 %3316 }
 0xfd1   : > { %v5424_v11 = vpop.permute.xlu2 %3351 }
 0xfd8   : > { %v5414_v24 = vpop.permute.xlu1 %3323 }
 0xfe0   : > { %v5418_v40 = vpop.permute.xlu1 %3115 }
 0xfe8   : > { %v5422_v58 = vpop.permute.xlu1 %3337 }
 0xff0   : > { %v5426_v45 = vpop.permute.xlu1 %3136 }
0x1013   : > { %v3398_v42 = vpop.xlane.xlu2 %3397 }
0x1014   : > { %4208 = vrcp.f32 %v3398_v42  ;;  %v3410_v12 = vand.u32 2147483648, %v3398_v42  ;;  %vm3404_vm2 = vweird.f32 %v3398_v42  ;;  %v3408_v61 = vand.u32 2147483647, %v3398_v42 }
0x1016   : > { %v3411_v38 = vor.u32 1.1754944e-38, %v3410_v12  ;;  %vm3409_vm13 = vcmp.eq.f32.partialorder %v3408_v61, 8.507059e+37 }
0x101a   : > { %v4209_v44 = vpop.eup %4208 }
0x101b   : > { %v3176_v57 = vpop.xlane.xlu1 %3175  ;;  %v3400_v46 = vmul.f32 %v4209_v44, %v3398_v42  ;;  %vm3405_vm0 = vweird.f32 %v4209_v44  ;;  %v3353_v42 = vperm.slane %v5389_v29, 7 }
0x101c   : > { %4210 = vrcp.f32 %v3176_v57  ;;  %v3188_v34 = vand.u32 2147483648, %v3176_v57  ;;  %v3186_v2 = vand.u32 2147483647, %v3176_v57  ;;  %vm3182_vm14 = vweird.f32 %v3176_v57  ;;  %vm3406_vm15 = vmor %vm3404_vm2, %vm3405_vm0 }
0x101d   : > { %v3401_v17 = vsub.f32 1.0, %v3400_v46 }
0x101e   : > { %v3189_v31 = vor.u32 1.1754944e-38, %v3188_v34  ;;  %vm3187_vm4 = vcmp.eq.f32.partialorder %v3186_v2, 8.507059e+37 }
0x101f   : > { %v3402_v4 = vmul.f32 %v4209_v44, %v3401_v17 }
0x1021   : > { %v3403_v5 = vadd.f32 %v4209_v44, %v3402_v4 }
0x1022   : > { %v4211_v16 = vpop.eup %4210 }
0x1023   : > { %v3178_v53 = vmul.f32 %v4211_v16, %v3176_v57  ;;  %vm3183_vm3 = vweird.f32 %v4211_v16  ;;  %v3407_v28 = vsel %vm3406_vm15, %v4209_v44, %v3403_v5 }
0x1024   : > { %vm3184_vm1 = vmor %vm3182_vm14, %vm3183_vm3  ;;  %v3412_v27 = vsel %vm3409_vm13, %v3411_v38, %v3407_v28  ;;  %vm5593_vm3 = vcmask 195584  }
0x1025   : > { %v3179_v25 = vsub.f32 1.0, %v3178_v53  ;;  %v3414_v20 = vmul.f32 %v5401_v35, %v3412_v27  ;;  %v2996_v53 = vsel %vm1408_vm5, %v5356_v59, 0.0  ;;  %vm5594_vm14 = vmmov %vm5592_vm12 }
0x1027   : > { %v3180_v63 = vmul.f32 %v4211_v16, %v3179_v25  ;;  %v3415_v48 = vperm.slane %v3414_v20, 0  ;;  %v3429_v60 = vperm.slane %v3414_v20, 2  ;;  %v3436_v36 = vperm.slane %v3414_v20, 3 }
0x1028   : > { %v3450_v39 = vperm.slane %v3414_v20, 5  ;;  %v3443_v57 = vperm.slane %v3414_v20, 4  ;;  %v3464_v35 = vperm.slane %v3414_v20, 7  ;;  %v3457_v44 = vperm.slane %v3414_v20, 6 }
0x1029   : > { %v3181_v43 = vadd.f32 %v4211_v16, %v3180_v63 }
0x102b   : > { %v3185_v50 = vsel %vm3184_vm1, %v4211_v16, %v3181_v43  ;;  %v3095_v16 = vpop.permute.xlu0 %3094  ;;  %vm5595_vm1 = vmmov %vm5593_vm3 }
0x102c   : > { %v3190_v30 = vsel %vm3187_vm4, %v3189_v31, %v3185_v50  ;;  %vm5596_vm4 = vmmov %vm5592_vm12 }
0x102d   : > { %v3192_v41 = vmul.f32 %v4207_v47, %v3190_v30  ;;  %v3422_v47 = vperm.slane %v3414_v20, 1  ;;  %vm5597_vm0 = vmmov %vm5595_vm1 }
0x102e   : > { %vm5598_vm2 = vmmov %vm5596_vm4 }
0x102f   : > { %v3221_v0 = vperm.slane %v3192_v41, 4  ;;  %v3200_v54 = vperm.slane %v3192_v41, 1  ;;  %v3193_v56 = vperm.slane %v3192_v41, 0  ;;  %v3242_v1 = vperm.slane %v3192_v41, 7  ;;  %vm5599_vm15 = vmmov %vm5597_vm0 }
0x1030   : > { %v3207_v32 = vperm.slane %v3192_v41, 2  ;;  %v3214_v52 = vperm.slane %v3192_v41, 3  ;;  %v3235_v14 = vperm.slane %v3192_v41, 6  ;;  %v3228_v26 = vperm.slane %v3192_v41, 5  ;;  %vm5600_vm13 = vmmov %vm5598_vm2 }
0x1031   : > { %3226 = vperm.xlu0 %3975, %v3221_v0   ;;  %3205 = vperm.xlu1 %3974, %v3200_v54  }
0x1032   : > { %3198 = vperm.xlu2 %3976, %v3193_v56  }
0x1033   : > { %v3109_v46 = vpop.permute.xlu0 %3108 }
0x1039   : > { %3247 = vperm.xlu0 %3975, %v3242_v1   ;;  %3212 = vperm.xlu1 %3974, %v3207_v32  }
0x103a   : > { %3219 = vperm.xlu2 %3976, %v3214_v52  }
0x103b   : > { %v3123_v34 = vpop.permute.xlu0 %3122 }
0x1041   : > { %3240 = vperm.xlu1 %3974, %v3235_v14   ;;  %3420 = vperm.xlu0 %3975, %v3415_v48  }
0x1042   : > { %3233 = vperm.xlu2 %3976, %v3228_v26  }
0x1043   : > { %v3345_v29 = vpop.permute.xlu0 %3344 }
0x1049   : > { %3434 = vperm.xlu1 %3974, %v3429_v60   ;;  %3441 = vperm.xlu0 %3975, %v3436_v36  }
0x104a   : > { %3427 = vperm.xlu2 %3976, %v3422_v47  }
0x1051   : > { %3455 = vperm.xlu1 %3974, %v3450_v39   ;;  %3358 = vperm.xlu0 %3975, %v3353_v42  }
0x1052   : > { %3448 = vperm.xlu2 %3976, %v3443_v57  }
0x1059   : > { %3469 = vperm.xlu1 %3974, %v3464_v35   ;;  %3977 = vset.pattern.permute.xlu0 %v4310_v19 }
0x105a   : > { %3462 = vperm.xlu2 %3976, %v3457_v44  }
0x1083   : > { %2997 = vadd.xlane.f32.xlu2 %v2996_v53 }
0x108c   : > { %v3199_v25 = vpop.permute.xlu2 %3198 }
0x108d   : > { %v3471_v59 = vsel %vm1408_vm5, %v5406_v49, %v3199_v25 }
0x108e   : > { %v3479_v12 = vsel %vm5594_vm14, %v3471_v59, %v5412_v51  ;;  %vm5603_vm14 = vmmov %vm5597_vm0 }
0x1094   : > { %v3220_v63 = vpop.permute.xlu2 %3219 }
0x1095   : > { %v3474_v32 = vsel %vm1408_vm5, %v3109_v46, %v3220_v63 }
0x109c   : > { %v3234_v2 = vpop.permute.xlu2 %3233 }
0x10a3   : > { %v3206_v17 = vpop.permute.xlu1 %3205  ;;  %v3227_v43 = vpop.permute.xlu0 %3226 }
0x10a4   : > { %v3428_v31 = vpop.permute.xlu2 %3427  ;;  %v3472_v50 = vsel %vm1408_vm5, %v3095_v16, %v3206_v17  ;;  %v3475_v54 = vsel %vm1408_vm5, %v5418_v40, %v3227_v43 }
0x10a5   : > { %v3480_v19 = vsel %vm5592_vm12, %v3472_v50, %v5410_v7  ;;  %v3483_v7 = vsel %vm5596_vm4, %v3475_v54, %v5422_v58  ;;  %vm5601_vm12 = vmmov %vm5598_vm2 }
0x10a6   : > { %v3488_v41 = vsel %vm5593_vm3, %v3480_v19, %v3428_v31  ;;  %v3482_v26 = vsel %vm5601_vm12, %v3474_v32, %v5416_v23  ;;  %vm5602_vm3 = vmmov %vm5597_vm0 }
0x10a7   : > { %v3496_v56 = vmul.f32 %v3488_v41, %v5199_v13  ;;  %vm5605_vm4 = vmmov %vm5597_vm0 }
0x10a9   : > { %v3510_v40 = vsel %vm465_vm7, %v3496_v56, 0.0 }
0x10ab   : > { %v3213_v30 = vpop.permute.xlu1 %3212  ;;  %v5434_v4 = vpop.permute.xlu0 %3247 }
0x10ac   : > { %v3449_v0 = vpop.permute.xlu2 %3448  ;;  %v3473_v51 = vsel %vm1408_vm5, %v5408_v18, %v3213_v30 }
0x10ad   : > { %v3491_v1 = vsel %vm5597_vm0, %v3483_v7, %v3449_v0  ;;  %v3481_v14 = vsel %vm5600_vm13, %v3473_v51, %v5414_v24  ;;  %v3476_v24 = vsel %vm1408_vm5, %v3123_v34, %v3234_v2 }
0x10ae   : > { %v3499_v52 = vmul.f32 %v3491_v1, %v5242_v21 }
0x10b0   : > { %v3531_v47 = vsel %vm465_vm7, %v3499_v52, 0.0 }
0x10b1   : > { %v3532_v44 = vrot.slane %v3531_v47, 4 }
0x10b3   : > { %v3241_v5 = vpop.permute.xlu1 %3240  ;;  %v3421_v61 = vpop.permute.xlu0 %3420  ;;  %v3533_v31 = vadd.f32 %v3532_v44, %v3531_v47 }
0x10b4   : > { %v3487_v28 = vsel %vm5595_vm1, %v3479_v12, %v3421_v61  ;;  %v3477_v49 = vsel %vm1408_vm5, %v5420_v55, %v3241_v5  ;;  %v3511_v55 = vrot.slane %v3510_v40, 4  ;;  %v3463_v20 = vpop.permute.xlu2 %3462  ;;  %vm5604_vm1 = vmmov %vm5598_vm2 }
0x10b5   : > { %v3495_v38 = vmul.f32 %v3487_v28, %v5196_v37  ;;  %v3485_v27 = vsel %vm5598_vm2, %v3477_v49, %v5424_v11  ;;  %v3534_v0 = vrot.slane %v3533_v31, 2  ;;  %v3478_v49 = vsel %vm1408_vm5, %v5426_v45, %v5434_v4  ;;  %vm5606_vm0 = vmmov %vm5604_vm1 }
0x10b6   : > { %v3493_v37 = vsel %vm5599_vm15, %v3485_v27, %v3463_v20  ;;  %v3512_v42 = vadd.f32 %v3511_v55, %v3510_v40  ;;  %vm5607_vm2 = vmmov %vm5602_vm3  ;;  %vm5608_vm5 = vcmask 1046534  }
0x10b7   : > { %v3503_v13 = vsel %vm465_vm7, %v3495_v38, 0.0  ;;  %v3501_v57 = vmul.f32 %v3493_v37, %v5251_v8 }
0x10b8   : > { %v3504_v58 = vrot.slane %v3503_v13, 4  ;;  %v3513_v25 = vrot.slane %v3512_v42, 2 }
0x10b9   : > { %v3545_v63 = vsel %vm465_vm7, %v3501_v57, 0.0 }
0x10ba   : > { %v3505_v36 = vadd.f32 %v3504_v58, %v3503_v13  ;;  %v3546_v2 = vrot.slane %v3545_v63, 4  ;;  %v3514_v19 = vadd.f32 %v3513_v25, %v3512_v42  ;;  %v3535_v13 = vadd.f32 %v3534_v0, %v3533_v31  ;;  %v398_v25 = vld [vmem:[%s5560_s3 + $0x78] sm:$0xff] }
0x10bb   : > { %v3435_v48 = vpop.permute.xlu1 %3434  ;;  %v3442_v60 = vpop.permute.xlu0 %3441 }
0x10bc   : > { %v3489_v18 = vsel %vm5602_vm3, %v3481_v14, %v3435_v48  ;;  %v3490_v11 = vsel %vm5603_vm14, %v3482_v26, %v3442_v60  ;;  %v3506_v16 = vrot.slane %v3505_v36, 2  ;;  %v3547_v61 = vadd.f32 %v3546_v2, %v3545_v63  ;;  %v395_v63 = vld [vmem:[%s5560_s3 + $0x60] sm:$0xff] }
0x10bd   : > { %v3497_v21 = vmul.f32 %v3489_v18, %v5226_v22  ;;  %v3498_v39 = vmul.f32 %v3490_v11, %v5229_v6  ;;  %v3484_v6 = vsel %vm5604_vm1, %v3476_v24, %v3345_v29  ;;  %v3515_v7 = vrot.slane %v3514_v19, 1 }
0x10be   : > { %v3507_v8 = vadd.f32 %v3506_v16, %v3505_v36  ;;  %v3548_v27 = vrot.slane %v3547_v61, 2  ;;  %v3536_v26 = vrot.slane %v3535_v13, 1  ;;  %v411_v31 = vpack.c.bf16 %v395_v63, %v395_v63 }
0x10bf   : > { %v3517_v35 = vsel %vm465_vm7, %v3497_v21, 0.0  ;;  %v3524_v23 = vsel %vm465_vm7, %v3498_v39, 0.0  ;;  %v3516_v20 = vadd.f32 %v3515_v7, %v3514_v19 }
0x10c0   : > { %v3518_v53 = vrot.slane %v3517_v35, 4  ;;  %v3525_v46 = vrot.slane %v3524_v23, 4  ;;  %v3508_v54 = vrot.slane %v3507_v8, 1  ;;  %v3549_v60 = vadd.f32 %v3548_v27, %v3547_v61 }
0x10c1   : > { %v3537_v42 = vadd.f32 %v3536_v26, %v3535_v13 }
0x10c2   : > { %v3519_v17 = vadd.f32 %v3518_v53, %v3517_v35  ;;  %v3526_v22 = vadd.f32 %v3525_v46, %v3524_v23  ;;  %v397_v46 = vld [vmem:[%s5560_s3 + $0x70] sm:$0xff] }
0x10c3   : > { %v3456_v43 = vpop.permute.xlu1 %3455  ;;  %v3359_v12 = vpop.permute.xlu0 %3358 }
0x10c4   : > { %v3520_v50 = vrot.slane %v3519_v17, 2  ;;  %v3527_v34 = vrot.slane %v3526_v22, 2  ;;  %v3492_v30 = vsel %vm5605_vm4, %v3484_v6, %v3456_v43  ;;  %v3486_v1 = vsel %vm5606_vm0, %v3478_v49, %v3359_v12  ;;  %v396_v6 = vld [vmem:[%s5560_s3 + $0x68] sm:$0xff] }
0x10c5   : > { %v3500_v41 = vmul.f32 %v3492_v30, %v5245_v9  ;;  %v3509_v9 = vadd.f32 %v3508_v54, %v3507_v8  ;;  %v414_v43 = vpack.c.bf16 %v398_v25, %v398_v25  ;;  %v393_v8 = vld [vmem:[%s5560_s3 + $0x50] sm:$0xff] }
0x10c6   : > { %v3521_v59 = vadd.f32 %v3520_v50, %v3519_v17  ;;  %v3528_v56 = vadd.f32 %v3527_v34, %v3526_v22  ;;  %v413_v22 = vpack.c.bf16 %v397_v46, %v397_v46  ;;  %v394_v50 = vld [vmem:[%s5560_s3 + $0x58] sm:$0xff]  ;;  %v412_v34 = vpack.c.bf16 %v396_v6, %v396_v6  ;;  %v317_v6 = vld [vmem:[#allocation4 + $0x30] sm:$0xff] }
0x10c7   : > { %v3538_v5 = vsel %vm465_vm7, %v3500_v41, 0.0  ;;  %v3567_v45 = vsel %vm522_vm6, %v3516_v20, %v3509_v9  ;;  %vm5609_vm6 = vcmask 1047559   ;;  %v409_v2 = vpack.c.bf16 %v393_v8, %v393_v8  ;;  %v355_v20 = vld [vmem:[%s5559_s2 + $0xa0] sm:$0xff] }
0x10c8   : > { %v3522_v28 = vrot.slane %v3521_v59, 1  ;;  %v3539_v29 = vrot.slane %v3538_v5, 4  ;;  %v3529_v32 = vrot.slane %v3528_v56, 1  ;;  %v3594_v30 = vunpack.c.l.b16 %v413_v22  ;;  %v315_v8 = vld [vmem:[#allocation4 + $0x20] sm:$0xff] }
0x10c9   : > { %v3595_v19 = vunpack.c.l.b16 %v414_v43  ;;  %v410_v41 = vpack.c.bf16 %v394_v50, %v394_v50  ;;  %v3593_v0 = vunpack.c.l.b16 %v412_v34  ;;  %v3670_v50 = vperm.slane %v5322_v3, 1 }
0x10ca   : > { %v3540_v38 = vadd.f32 %v3539_v29, %v3538_v5  ;;  %v3523_v58 = vadd.f32 %v3522_v28, %v3521_v59  ;;  %v3530_v4 = vadd.f32 %v3529_v32, %v3528_v56  ;;  %v3592_v59 = vunpack.c.l.b16 %v411_v31  ;;  %v391_v28 = vld [vmem:[%s5560_s3 + $0x40] sm:$0xff]  ;;  %v392_v29 = vld [vmem:[%s5560_s3 + $0x48] sm:$0xff] }
0x10cb   : > { %v3470_v40 = vpop.permute.xlu1 %3469  ;;  %v3599_v54 = vpack.c.b16 %v3595_v19, %v3594_v30  ;;  %v3590_v5 = vunpack.c.l.b16 %v409_v2  ;;  %v3591_v12 = vunpack.c.l.b16 %v410_v41  ;;  %v407_v7 = vpack.c.bf16 %v391_v28, %v391_v28  ;;  %v316_v31 = vld [vmem:[#allocation4 + $0x28] sm:$0xff] }
0x10cc   : > { %v3494_v51 = vsel %vm5607_vm2, %v3486_v1, %v3470_v40  ;;  %v3541_v52 = vrot.slane %v3540_v38, 2  ;;  %v3568_v36 = vsel %vm523_vm8, %v3523_v58, %v3567_v45  ;;  %v3598_v56 = vpack.c.b16 %v3593_v0, %v3592_v59  ;;  %v356_v45 = vld [vmem:[%s5559_s2 + $0xa8] sm:$0xff]  ;;  %v4224_v59 = vld [vmem:[%s5563_s6] sm:$0x3f] }
0x10cd   : > { %v3502_v55 = vmul.f32 %v3494_v51, %v5254_v62  ;;  %v3569_v39 = vsel %vm525_vm9, %v3530_v4, %v3568_v36  ;;  %v3550_v62 = vrot.slane %v3549_v60, 1  ;;  %3611 = vmatpush.bf16.msra.mxu0 %v3599_v54  ;;  %v3597_v61 = vpack.c.b16 %v3591_v12, %v3590_v5 }
0x10ce   : > { %v3542_v37 = vadd.f32 %v3541_v52, %v3540_v38  ;;  %v3570_v24 = vsel %vm527_vm10, %v3537_v42, %v3569_v39  ;;  %v408_v49 = vpack.c.bf16 %v392_v29, %v392_v29  ;;  %v3588_v38 = vunpack.c.l.b16 %v407_v7  ;;  %v357_v52 = vld [vmem:[%s5559_s2 + $0xb0] sm:$0xff]  ;;  %v318_v42 = vld [vmem:[#allocation4 + $0x38] sm:$0xff] }
0x10cf   : > { %v3552_v14 = vsel %vm465_vm7, %v3502_v55, 0.0  ;;  %v3551_v44 = vadd.f32 %v3550_v62, %v3549_v60  ;;  %vm5610_vm8 = vcmask 523264   ;;  %v3579_v51 = vperm.slane %v5322_v3, 0  ;;  %v358_v55 = vld [vmem:[%s5559_s2 + $0xb8] sm:$0xff] }
0x10d0   : > { %v3553_v48 = vrot.slane %v3552_v14, 4  ;;  %v3543_v18 = vrot.slane %v3542_v37, 1  ;;  %v3589_v1 = vunpack.c.l.b16 %v408_v49  ;;  %v379_v4 = vpack.c.bf16 %v355_v20, %v355_v20  ;;  %v4225_v20 = vld [vmem:[%s4392_s19] sm:$0xff] }
0x10d1   : > { %3612 = vmatpush.bf16.msra.mxu0 %v3598_v56  ;;  %v380_v26 = vpack.c.bf16 %v356_v45, %v356_v45  ;;  %v3672_v41 = vperm.slane %v4224_v59, 3 }
0x10d2   : > { %v3554_v11 = vadd.f32 %v3553_v48, %v3552_v14  ;;  %v3544_v47 = vadd.f32 %v3543_v18, %v3542_v37  ;;  %v3596_v40 = vpack.c.b16 %v3589_v1, %v3588_v38  ;;  %v381_v37 = vpack.c.bf16 %v357_v52, %v357_v52 }
0x10d3   : > { %v382_v14 = vpack.c.bf16 %v358_v55, %v358_v55  ;;  %v3645_v18 = vunpack.c.l.b16 %v379_v4 }
0x10d4   : > { %v3555_v21 = vrot.slane %v3554_v11, 2  ;;  %v3571_v23 = vsel %vm529_vm11, %v3544_v47, %v3570_v24  ;;  %v3647_v60 = vunpack.c.l.b16 %v381_v37 }
0x10d5   : > { %v3572_v53 = vsel %vm5608_vm5, %v3551_v44, %v3571_v23  ;;  %3613 = vmatpush.bf16.msra.mxu0 %v3597_v61  ;;  %v3648_v36 = vunpack.c.l.b16 %v382_v14 }
0x10d6   : > { %v3556_v57 = vadd.f32 %v3555_v21, %v3554_v11  ;;  %v3646_v11 = vunpack.c.l.b16 %v380_v26 }
0x10d7   : > { %v3650_v47 = vpack.c.b16 %v3648_v36, %v3647_v60 }
0x10d8   : > { %v3557_v35 = vrot.slane %v3556_v57, 1  ;;  %v3649_v39 = vpack.c.b16 %v3646_v11, %v3645_v18 }
0x10d9   : > { %3614 = vmatpush.bf16.msra.mxu0 %v3596_v40  ;;  %3662 = vmatpush.bf16.msrb.mxu1 %v3650_v47  ;;  %v3716_v40 = vperm.slane %v4224_v59, 4 }
0x10da   : > { %v3558_v16 = vadd.f32 %v3557_v35, %v3556_v57 }
0x10dc   : > { %v3573_v17 = vsel %vm5609_vm6, %v3558_v16, %v3572_v53 }
0x10dd   : > { %3574 = vrot.lane.b32.xlu0 %v3573_v17, %s4307_s26  ;;  %3663 = vmatpush.bf16.msrb.mxu1 %v3649_v39 }
0x10e1   : > { %3688 = vmatpush.msra.mxu1 %v318_v42 }
0x10e3   : > { %3689 = vmatpush.msra.mxu1 %v317_v6 }
0x10e5   : > { %3690 = vmatpush.msra.mxu1 %v316_v31 }
0x10e7   : > { %3691 = vmatpush.msra.mxu1 %v315_v8 }
0x10f6   : > { %v2998_v14 = vpop.xlane.xlu2 %2997 }
0x10f7   : > { %v3021_v45 = vmul.f32 %v2998_v14, %v4958_v15 }
0x10f9   : > { %v3022_v4 = vsub.f32 %v3021_v45, %v5368_v33 }
0x114f   : > { %v3575_v13 = vpop.permute.xlu0 %3574 }
0x1150   : > { %v3577_v9 = vsel %vm465_vm7, %v4990_v10, %v3575_v13 }
0x1151   : > { %v3578_v32 = vpack.c.bf16 %v3577_v9, %v3577_v9 }
0x1153   : > { %3914 = vmatmul.msk.bf16.vlgmr.msra.gmra.mxu0 %vm5610_vm8, %v3578_v32 }
0x11d0   : > { %v3616_v27 = vpop.f32.mrf.mxu0 }
0x11d1   : > { %v3617_v58 = vadd.f32 %v3616_v27, %v3579_v51  ;;  %v3721_v27 = vperm.slane %v4224_v59, 5 }
0x11d3   : > { %v3915_v48 = vmul.f32 -1.442695, %v3617_v58 }
0x11d5   : > { %4212 = vpow2.f32 %v3915_v48  ;;  %v3023_v48 = vmul.f32 0.14285715, %v3022_v4 }
0x11d7   : > { %v3024_v26 = vadd.f32 %v3023_v48, %v4958_v15 }
0x11d8   : > { %v3618_v21 = vpop.f32.mrf.mxu0 }
0x11db   : > { %v4213_v62 = vpop.eup %4212 }
0x11dc   : > { %v3623_v57 = vadd.f32 1.0, %v4213_v62 }
0x11de   : > { %4214 = vrcp.f32 %v3623_v57  ;;  %v3635_v44 = vand.u32 2147483648, %v3623_v57  ;;  %v3633_v53 = vand.u32 2147483647, %v3623_v57  ;;  %vm3629_vm10 = vweird.f32 %v3623_v57 }
0x11e0   : > { %v3636_v25 = vor.u32 1.1754944e-38, %v3635_v44  ;;  %vm3634_vm15 = vcmp.eq.f32.partialorder %v3633_v53, 8.507059e+37 }
0x11e4   : > { %v4215_v24 = vpop.eup %4214 }
0x11e5   : > { %v3625_v35 = vmul.f32 %v4215_v24, %v3623_v57  ;;  %vm3630_vm9 = vweird.f32 %v4215_v24 }
0x11e6   : > { %vm3631_vm11 = vmor %vm3629_vm10, %vm3630_vm9 }
0x11e7   : > { %v3626_v23 = vsub.f32 1.0, %v3625_v35 }
0x11e9   : > { %v3627_v16 = vmul.f32 %v4215_v24, %v3626_v23 }
0x11eb   : > { %v3628_v46 = vadd.f32 %v4215_v24, %v3627_v16 }
0x11ed   : > { %v3632_v63 = vsel %vm3631_vm11, %v4215_v24, %v3628_v46 }
0x11ee   : > { %v3637_v17 = vsel %vm3634_vm15, %v3636_v25, %v3632_v63 }
0x11ef   : > { %v3639_v22 = vmul.f32 %v3637_v17, %v3617_v58 }
0x11f1   : > { %v3640_v43 = vpack.c.bf16 %v3639_v22, %v3639_v22 }
0x11f3   : > { %3916 = vmatmul.msk.bf16.vlgmr.msrb.gmra.mxu1 %vm465_vm7, %v3640_v43 }
0x1270   : > { %v3665_v34 = vpop.f32.mrf.mxu1 }
0x1271   : > { %v3669_v2 = vadd.f32 %v3665_v34, %v4990_v10 }
0x1273   : > { %v3671_v30 = vadd.f32 %v3670_v50, %v3669_v2 }
0x1275   : > { %3917 = vmatmul.msk.f32.vlgmr.msra.gmra.mxu1 %vm465_vm7, %v3671_v30 }
0x1278   : > { %v3667_v19 = vpop.f32.mrf.mxu1 }
0x12f2   : > { %v3693_v0 = vpop.f32.mrf.mxu1 }
0x12f3   : > { %v3694_v54 = vadd.f32 %v3693_v0, %v3672_v41 }
0x12f5   : > { %v3918_v56 = vmul.f32 -1.442695, %v3694_v54 }
0x12f7   : > { %4216 = vpow2.f32 %v3918_v56 }
0x12fd   : > { %v4217_v5 = vpop.eup %4216 }
0x12fe   : > { %v3699_v12 = vadd.f32 1.0, %v4217_v5 }
0x1300   : > { %4218 = vrcp.f32 %v3699_v12  ;;  %v3711_v10 = vand.u32 2147483648, %v3699_v12  ;;  %v3709_v7 = vand.u32 2147483647, %v3699_v12  ;;  %vm3705_vm12 = vweird.f32 %v3699_v12 }
0x1302   : > { %v3712_v38 = vor.u32 1.1754944e-38, %v3711_v10  ;;  %vm3710_vm14 = vcmp.eq.f32.partialorder %v3709_v7, 8.507059e+37 }
0x1306   : > { %v4219_v3 = vpop.eup %4218 }
0x1307   : > { %v3701_v61 = vmul.f32 %v4219_v3, %v3699_v12  ;;  %vm3706_vm13 = vweird.f32 %v4219_v3 }
0x1308   : > { %vm3707_vm3 = vmor %vm3705_vm12, %vm3706_vm13 }
0x1309   : > { %v3702_v28 = vsub.f32 1.0, %v3701_v61 }
0x130b   : > { %v3703_v29 = vmul.f32 %v4219_v3, %v3702_v28 }
0x130d   : > { %v3704_v49 = vadd.f32 %v4219_v3, %v3703_v29 }
0x130f   : > { %v3708_v1 = vsel %vm3707_vm3, %v4219_v3, %v3704_v49 }
0x1310   : > { %v3713_v13 = vsel %vm3710_vm14, %v3712_v38, %v3708_v1 }
0x1311   : > { %v3715_v9 = vmul.f32 %v3713_v13, %v3694_v54 }
0x1313   : > { %v3717_v32 = vmul.f32 %v3716_v40, %v3715_v9 }
0x1315   : > { %v3718_v51 = vsel %vm465_vm7, %v3717_v32, 0.0  ;;  %vm5612_vm7 = vcmask 23552  }
0x1316   : > { %3719 = vadd.xlane.f32.xlu1 %v3718_v51 }
0x1389   : > { %v3720_v58 = vpop.xlane.xlu1 %3719 }
0x138a   : > { %v3722_v52 = vadd.f32 %v3721_v27, %v3720_v58 }
0x138c   : > { %3725 = vperm.xlu0 %3977, %v3722_v52  }
0x13fe   : > { %v3726_v55 = vpop.permute.xlu0 %3725 }
0x13ff   : > { %v3728_v37 = vmul.f32 %v4225_v20, %v3726_v55 }
0x1401   : > { %3730 = vrot.lane.b32.xlu0 %v3728_v37, %s4306_s20 }
0x1473   : > { %v3731_v60 = vpop.permute.xlu0 %3730 }
0x1474   : > { %v3733_v36 = vadd.f32 %v3731_v60, %v3024_v26 }
0x1476   : > { %3734 = vst.msk [vmem:[%s307_s11] sm:$0xff] %vm5612_vm7, %v3733_v36 }
0x1477 PF: > { %s19_s24 = sadd.s32 1, %s4300_s24  }
0x1478   : > { %p16_p7 = scmp.ge.s32.totalorder %s19_s24, 4  }
0x147a   :  { %18 = sbr.rel (!%p16_p7) target bundleno = 2 (0x2), region = 87 }
0x147f   :  { %3754 = vsyncpa [#allocation3], 1 }
0x1480   :  { %3756 = vsyncpa [#allocation3 + $0x1], 1 }
0x1481   :  { %3757 = vsyncpa [#allocation5], 1 }

</bundles_post_ra>
